<compile_context>
chip_gen: v7x
topology: tpu7x:2x2x1
jax: 0.10.0
libtpu: 0.0.40
codegen_flags: <defaults>
</compile_context>

<pallas_src>
import jax
import jax.numpy as jnp
from jax import lax
from jax.experimental import pallas as pl
from jax.experimental.pallas import tpu as pltpu


def _round_up(x, m):
    return ((x + m - 1) // m) * m


def _pad_gate_cols(w, H, Hp):
    """(..., 3H) -> (..., 3Hp): zero-pad each gate slab [r|z|n] to width Hp."""
    parts = [w[..., g * H:(g + 1) * H] for g in range(3)]
    pad = [(0, 0)] * (w.ndim - 1) + [(0, Hp - H)]
    return jnp.concatenate([jnp.pad(p, pad) for p in parts], axis=-1)


def rnn_context(input_bti, seq_lengths, w_ih, w_hh, b_ih, b_hh,
                *, compute_dtype=jnp.bfloat16, time_chunk=64):
    """Masked GRU over time (PyTorch RNNContext.forward).

    input_bti : (B, T, I)   w_ih : (I, 3H)   w_hh : (H, 3H)   b_* : (3H,)
    seq_lengths : (B,) int.  Returns (B, H) f32 (last valid hidden state).
    compute_dtype selects the streaming/matmul dtype (bf16 default, f32 for a
    bit-accurate path); gate math always accumulates in f32.
    """
    B, T, I = input_bti.shape
    H = w_hh.shape[0]
    assert w_ih.shape == (I, 3 * H) and w_hh.shape == (H, 3 * H)

    f32 = jnp.float32
    use_bf16 = jnp.dtype(compute_dtype) == jnp.dtype(jnp.bfloat16)
    w_dtype = jnp.bfloat16 if use_bf16 else f32
    gi_dtype = w_dtype

    # ---- lane/sublane-aligned sizes & batch tile -------------------------
    Hp = _round_up(H, 128)                    # each gate slab lane-dense
    Bp = _round_up(B, 8)
    if Bp >= 512 and Bp % 256 == 0:           # big batch: fill 256-wide MXU
        Bt = 256
    elif Bp >= 256 and Bp % 128 == 0:         # keep >=2 tiles for v7x 2 TCs
        Bt = 128
    elif Bp >= 16:
        cand = _round_up(Bp // 2, 8)
        Bt = cand if Bp % cand == 0 else Bp
    else:
        Bt = Bp

    # ---- padded / folded parameters ---------------------------------------
    w_ih_p = _pad_gate_cols(w_ih, H, Hp)                                   # (I, 3Hp)
    w_hh_p = jnp.pad(_pad_gate_cols(w_hh, H, Hp),
                     ((0, Hp - H), (0, 0))).astype(w_dtype)                # (Hp, 3Hp)
    b_ih32 = b_ih.astype(f32)
    b_hh32 = b_hh.astype(f32)
    # Fold r/z slabs of b_hh into the input bias; keep only the n-gate hidden
    # bias (PyTorch GRU: n = tanh(i_n + b_in + r * (W_hn h + b_hn))).
    b_gi = jnp.concatenate([b_ih32[:2 * H] + b_hh32[:2 * H], b_ih32[2 * H:]])
    b_gi = _pad_gate_cols(b_gi.reshape(1, 3 * H), H, Hp)                   # (1, 3Hp)
    b_hn = jnp.pad(b_hh32[2 * H:].reshape(1, H), ((0, 0), (0, Hp - H)))    # (1, Hp)

    # ---- hoisted input projection: one big parallel matmul (plain XLA) ----
    x_tbi = jnp.transpose(input_bti, (1, 0, 2))                # (T, B, I) small
    x_tbi = jnp.pad(x_tbi, ((0, 0), (0, Bp - B), (0, 0)))      # pad B only
    gi = jnp.dot(x_tbi.reshape(T * Bp, I), w_ih_p,
                 preferred_element_type=f32) + b_gi
    gi = gi.reshape(T, Bp, 3 * Hp).astype(gi_dtype)            # bf16 stream

    slen = jnp.pad(seq_lengths.astype(jnp.int32), (0, Bp - B)).reshape(Bp, 1)

    # ---- VMEM budget -> time-chunk length ---------------------------------
    try:
        vmem_phys = int(pltpu.get_tpu_info().vmem_capacity_bytes)
    except Exception:                          # noqa: BLE001 - conservative fallback
        vmem_phys = 64 * 1024 * 1024           # assume v7x (smallest VMEM)
    vmem_cap = (vmem_phys * 3) // 4            # leave headroom for compiler scratch

    gi_bytes = jnp.dtype(gi_dtype).itemsize
    whh_bytes = jnp.dtype(w_dtype).itemsize
    fixed = (2 * Hp * 3 * Hp * whh_bytes       # resident W_hh (worst case 2 bufs)
             + 4 * Hp * 4                      # n-gate bias
             + 4 * Bt * 4                      # lengths
             + 2 * Bt * Hp * 4                 # output block + running-h scratch
             + (2 << 20))                      # pipeline/compiler slack
    per_step = 2 * Bt * 3 * Hp * gi_bytes      # double-buffered gi per timestep
    tc_budget = max(1, (vmem_cap - fixed) // per_step)
    TC = max(1, min(int(time_chunk), T, int(tc_budget)))
    if TC >= 8:
        TC = (TC // 8) * 8                     # keep the unroll factor aligned
    grid = (Bp // Bt, pl.cdiv(T, TC))          # batch tiles x time chunks

    # ---- kernel (closes over static T for ragged-tail masking) ------------
    def kernel(gi_ref, whh_ref, bhn_ref, slen_ref, out_ref, h_ref):
        tc = gi_ref.shape[0]
        bt, hp = h_ref.shape
        c = pl.program_id(1)

        @pl.when(c == 0)
        def _():
            h_ref[...] = jnp.zeros_like(h_ref)
            out_ref[...] = jnp.zeros_like(out_ref)

        whh = whh_ref[...]                                        # resident
        bhn = jnp.broadcast_to(bhn_ref[...].astype(f32), (bt, hp))  # hoisted
        slen_v = slen_ref[...]                                    # (bt, 1) int32
        t0 = c * tc

        def step(j, carry):
            h, hn = carry                                         # (bt, hp) f32
            gi_t = gi_ref[j].astype(f32)                          # bf16 -> f32
            gh = jnp.dot(h.astype(whh.dtype), whh,
                         preferred_element_type=f32)              # (bt, 3hp)

            i_r, i_z, i_n = gi_t[:, :hp], gi_t[:, hp:2 * hp], gi_t[:, 2 * hp:]
            h_r, h_z, h_n = gh[:, :hp], gh[:, hp:2 * hp], gh[:, 2 * hp:]

            r = jax.nn.sigmoid(i_r + h_r)          # b_hh_r folded into gi
            z = jax.nn.sigmoid(i_z + h_z)          # b_hh_z folded into gi
            n = jnp.tanh(i_n + r * (h_n + bhn))    # n-gate hidden bias kept
            h_new = n + z * (h - n)                # == (1-z)*n + z*h

            if T % tc != 0:                        # mask the ragged tail chunk
                h_new = jnp.where(t0 + j < T, h_new, h)
            keep = (t0 + j + 1) <= slen_v          # (bt, 1) padding mask
            hn = jnp.where(keep, h_new, hn)        # true select (no 0*NaN)
            return h_new, hn

        h, hn = lax.fori_loop(0, tc, step, (h_ref[...], out_ref[...]),
                              unroll=min(tc, 8))
        h_ref[...] = h
        out_ref[...] = hn

    cost = pl.CostEstimate(
        flops=2 * T * Bp * Hp * 3 * Hp,
        transcendentals=3 * T * Bp * Hp,
        bytes_accessed=(T * Bp * 3 * Hp * gi_bytes
                        + Hp * 3 * Hp * whh_bytes + Bp * Hp * 4))

    def build(single_buffer_resident):
        pm = ({"pipeline_mode": pl.Buffered(1)} if single_buffer_resident else {})
        grid_spec = pltpu.PrefetchScalarGridSpec(
            num_scalar_prefetch=0,
            grid=grid,
            in_specs=[
                pl.BlockSpec((TC, Bt, 3 * Hp), lambda b, c: (c, b, 0)),   # gi chunk
                pl.BlockSpec((Hp, 3 * Hp), lambda b, c: (0, 0), **pm),    # W_hh
                pl.BlockSpec((1, Hp), lambda b, c: (0, 0), **pm),         # b_hh_n
                pl.BlockSpec((Bt, 1), lambda b, c: (b, 0)),               # lengths
            ],
            out_specs=pl.BlockSpec((Bt, Hp), lambda b, c: (b, 0)),
            scratch_shapes=[pltpu.VMEM((Bt, Hp), f32)],                   # running h
        )
        return pl.pallas_call(
            kernel,
            out_shape=jax.ShapeDtypeStruct((Bp, Hp), f32),
            grid_spec=grid_spec,
            compiler_params=pltpu.CompilerParams(
                dimension_semantics=("parallel", "arbitrary"),
                vmem_limit_bytes=int(vmem_cap)),
            cost_estimate=cost,
        )

    try:
        out = jax.block_until_ready(build(True)(gi, w_hh_p, b_hn, slen))
    except Exception:                          # noqa: BLE001
        # TODO(synk): drop fallback once pl.Buffered(1) single-buffering of the
        # constant-index W_hh / bias blocks is confirmed on all jax versions.
        out = jax.block_until_ready(build(False)(gi, w_hh_p, b_hn, slen))

    return out[:B, :H]


def rnn_context_ref(input_bti, seq_lengths, w_ih, w_hh, b_ih, b_hh):
    """Pure-JAX reference with the PyTorch module's semantics."""
    B, T, I = input_bti.shape
    H = w_hh.shape[0]
    wi, wh = w_ih.astype(jnp.float32), w_hh.astype(jnp.float32)
    bi, bh = b_ih.astype(jnp.float32), b_hh.astype(jnp.float32)
    h = jnp.zeros((B, H), jnp.float32)
    hn = jnp.zeros((B, H), jnp.float32)
    for t in range(T):
        x = input_bti[:, t, :].astype(jnp.float32)
        gi = x @ wi + bi
        gh = h @ wh + bh
        i_r, i_z, i_n = gi[:, :H], gi[:, H:2 * H], gi[:, 2 * H:]
        h_r, h_z, h_n = gh[:, :H], gh[:, H:2 * H], gh[:, 2 * H:]
        r = jax.nn.sigmoid(i_r + h_r)
        z = jax.nn.sigmoid(i_z + h_z)
        n = jnp.tanh(i_n + r * h_n)
        h = (1.0 - z) * n + z * h
        mask = (t + 1 <= seq_lengths)[:, None]
        hn = jnp.where(mask, h, hn)
    return hn


if __name__ == "__main__":
    # small, module-consistent shapes
    B, T, I, H = 2, 8, 16, 32

    key = jax.random.PRNGKey(0)
    k_x, k_wih, k_whh, k_bih, k_bhh = jax.random.split(key, 5)

    # PyTorch-style init: uniform(-1/sqrt(H), 1/sqrt(H)); weights pre-transposed
    bound = 1.0 / (H ** 0.5)
    w_ih = jax.random.uniform(k_wih, (I, 3 * H), jnp.float32, -bound, bound)
    w_hh = jax.random.uniform(k_whh, (H, 3 * H), jnp.float32, -bound, bound)
    b_ih = jax.random.uniform(k_bih, (3 * H,), jnp.float32, -bound, bound)
    b_hh = jax.random.uniform(k_bhh, (3 * H,), jnp.float32, -bound, bound)

    x = jax.random.normal(k_x, (B, T, I), jnp.float32)   # module layout (B, T, I)
    seq_lengths = jnp.array([5, 8], dtype=jnp.int32)

    ref = rnn_context_ref(x, seq_lengths, w_ih, w_hh, b_ih, b_hh)

    # precise path (f32 streaming + f32 recurrence matmul): tight tolerance
    out_f32 = jax.block_until_ready(
        rnn_context(x, seq_lengths, w_ih, w_hh, b_ih, b_hh,
                    compute_dtype=jnp.float32))
    assert out_f32.shape == (B, H)
    assert jnp.allclose(out_f32, ref, atol=1e-4, rtol=1e-4), \
        float(jnp.max(jnp.abs(out_f32 - ref)))

    # optimized default: bf16 gi streaming + bf16 W_hh on the MXU (f32 accum)
    out_bf = jax.block_until_ready(
        rnn_context(x, seq_lengths, w_ih, w_hh, b_ih, b_hh))
    assert jnp.allclose(out_bf, ref, atol=5e-2, rtol=5e-2), \
        float(jnp.max(jnp.abs(out_bf - ref)))

    # bf16 activations / weights end-to-end — looser tolerance
    out_bf2 = jax.block_until_ready(
        rnn_context(x.astype(jnp.bfloat16), seq_lengths,
                    w_ih.astype(jnp.bfloat16), w_hh.astype(jnp.bfloat16),
                    b_ih, b_hh))
    assert jnp.allclose(out_bf2.astype(jnp.float32), ref, atol=1e-1, rtol=1e-1)

    print("KERNEL_OK")
</pallas_src>

<mosaic_0001>
module attributes {stable_mosaic.version = 11 : i64} {
  func.func @kernel(%arg0: i32, %arg1: i32, %arg2: memref<8x8x384xf32, #tpu.memory_space<vmem>>, %arg3: memref<128x384xf32, #tpu.memory_space<vmem>>, %arg4: memref<1x128xf32, #tpu.memory_space<vmem>>, %arg5: memref<8x1xi32, #tpu.memory_space<vmem>>, %arg6: memref<8x128xf32, #tpu.memory_space<vmem>>, %arg7: memref<8x128xf32, #tpu.memory_space<vmem>>) attributes {dimension_semantics = [#tpu.dimension_semantics<parallel>, #tpu.dimension_semantics<arbitrary>], iteration_bounds = array<i64: 1, 1>, scalar_prefetch = 0 : i64, scratch_operands = 1 : i64, tpu.core_type = #tpu.core_type<tc>, window_params = [{transform_indices = @transform_0, window_bounds = array<i64: 8, 8, 384>}, {pipeline_mode = #tpu.pipeline_mode<synchronous>, transform_indices = @transform_1, window_bounds = array<i64: 128, 384>}, {pipeline_mode = #tpu.pipeline_mode<synchronous>, transform_indices = @transform_2, window_bounds = array<i64: 1, 128>}, {transform_indices = @transform_3, window_bounds = array<i64: 8, 1>}, {transform_indices = @transform_4, window_bounds = array<i64: 8, 128>}]} {
    %c0_i32 = arith.constant 0 : i32
    %0 = arith.cmpi eq, %arg1, %c0_i32 : i32
    %1 = arith.extui %0 : i1 to i32
    %c0_i32_0 = arith.constant 0 : i32
    %2 = arith.cmpi ne, %1, %c0_i32_0 : i32
    scf.if %2 {
      %cst_63 = arith.constant 0.000000e+00 : f32
      %301 = vector.broadcast %cst_63 : f32 to vector<8x128xf32>
      %c0_64 = arith.constant 0 : index
      %c0_65 = arith.constant 0 : index
      %302 = vector.load %arg7[%c0_64, %c0_65] : memref<8x128xf32, #tpu.memory_space<vmem>>, vector<8x128xf32>
      tpu.vector_store %arg7[%c0_64, %c0_65], %301 {strides = array<i32>} : memref<8x128xf32, #tpu.memory_space<vmem>>, vector<8x128xf32>,
      %cst_66 = arith.constant 0.000000e+00 : f32
      %303 = vector.broadcast %cst_66 : f32 to vector<8x128xf32>
      %c0_67 = arith.constant 0 : index
      %c0_68 = arith.constant 0 : index
      %304 = vector.load %arg6[%c0_67, %c0_68] : memref<8x128xf32, #tpu.memory_space<vmem>>, vector<8x128xf32>
      tpu.vector_store %arg6[%c0_67, %c0_68], %303 {strides = array<i32>} : memref<8x128xf32, #tpu.memory_space<vmem>>, vector<8x128xf32>,
    } else {
    }
    %c0 = arith.constant 0 : index
    %c0_1 = arith.constant 0 : index
    %3 = vector.load %arg3[%c0, %c0_1] : memref<128x384xf32, #tpu.memory_space<vmem>>, vector<128x384xf32>
    %c0_2 = arith.constant 0 : index
    %c0_3 = arith.constant 0 : index
    %4 = vector.load %arg4[%c0_2, %c0_3] : memref<1x128xf32, #tpu.memory_space<vmem>>, vector<1x128xf32>
    %5 = vector.shape_cast %4 : vector<1x128xf32> to vector<1x128xf32>
    %6 = vector.broadcast %5 : vector<1x128xf32> to vector<8x128xf32>
    %c0_4 = arith.constant 0 : index
    %c0_5 = arith.constant 0 : index
    %7 = vector.load %arg5[%c0_4, %c0_5] : memref<8x1xi32, #tpu.memory_space<vmem>>, vector<8x1xi32>
    %c8_i32 = arith.constant 8 : i32
    %8 = arith.muli %arg1, %c8_i32 : i32
    %c0_6 = arith.constant 0 : index
    %c0_7 = arith.constant 0 : index
    %9 = vector.load %arg7[%c0_6, %c0_7] : memref<8x128xf32, #tpu.memory_space<vmem>>, vector<8x128xf32>
    %c0_8 = arith.constant 0 : index
    %c0_9 = arith.constant 0 : index
    %10 = vector.load %arg6[%c0_8, %c0_9] : memref<8x128xf32, #tpu.memory_space<vmem>>, vector<8x128xf32>
    %c0_i32_10 = arith.constant 0 : i32
    %11 = arith.index_cast %c0_i32_10 : i32 to index
    %c0_11 = arith.constant 0 : index
    %c0_12 = arith.constant 0 : index
    %12 = vector.load %arg2[%11, %c0_11, %c0_12] : memref<8x8x384xf32, #tpu.memory_space<vmem>>, vector<1x8x384xf32>
    %13 = vector.shape_cast %12 : vector<1x8x384xf32> to vector<8x384xf32>
    %cst = arith.constant dense<0.000000e+00> : vector<8x384xf32>
    %14 = tpu.matmul %9, %3, %cst {dimension_numbers = #tpu.dot_dimension_numbers<[1], [0], [0], [1], [0, 0, 1, 1], [], []>} : vector<8x128xf32>, vector<128x384xf32>, vector<8x384xf32> -> vector<8x384xf32>
    %15 = vector.extract_strided_slice %13 {offsets = [0, 0], sizes = [8, 128], strides = [1, 1]} : vector<8x384xf32> to vector<8x128xf32>
    %16 = vector.extract_strided_slice %13 {offsets = [0, 128], sizes = [8, 128], strides = [1, 1]} : vector<8x384xf32> to vector<8x128xf32>
    %17 = vector.extract_strided_slice %13 {offsets = [0, 256], sizes = [8, 128], strides = [1, 1]} : vector<8x384xf32> to vector<8x128xf32>
    %18 = vector.extract_strided_slice %14 {offsets = [0, 0], sizes = [8, 128], strides = [1, 1]} : vector<8x384xf32> to vector<8x128xf32>
    %19 = vector.extract_strided_slice %14 {offsets = [0, 128], sizes = [8, 128], strides = [1, 1]} : vector<8x384xf32> to vector<8x128xf32>
    %20 = vector.extract_strided_slice %14 {offsets = [0, 256], sizes = [8, 128], strides = [1, 1]} : vector<8x384xf32> to vector<8x128xf32>
    %21 = arith.addf %15, %18 : vector<8x128xf32>
    %22 = arith.negf %21 : vector<8x128xf32>
    %23 = math.exp %22 : vector<8x128xf32>
    %cst_13 = arith.constant 1.000000e+00 : f32
    %24 = vector.broadcast %cst_13 : f32 to vector<8x128xf32>
    %25 = arith.addf %24, %23 : vector<8x128xf32>
    %26 = arith.divf %24, %25 : vector<8x128xf32>
    %27 = arith.addf %16, %19 : vector<8x128xf32>
    %28 = arith.negf %27 : vector<8x128xf32>
    %29 = math.exp %28 : vector<8x128xf32>
    %cst_14 = arith.constant 1.000000e+00 : f32
    %30 = vector.broadcast %cst_14 : f32 to vector<8x128xf32>
    %31 = arith.addf %30, %29 : vector<8x128xf32>
    %32 = arith.divf %30, %31 : vector<8x128xf32>
    %33 = arith.addf %20, %6 : vector<8x128xf32>
    %34 = arith.mulf %26, %33 : vector<8x128xf32>
    %35 = arith.addf %17, %34 : vector<8x128xf32>
    %36 = math.tanh %35 : vector<8x128xf32>
    %37 = arith.subf %9, %36 : vector<8x128xf32>
    %38 = arith.mulf %32, %37 : vector<8x128xf32>
    %39 = arith.addf %36, %38 : vector<8x128xf32>
    %40 = arith.addi %8, %c0_i32_10 : i32
    %c1_i32 = arith.constant 1 : i32
    %41 = arith.addi %40, %c1_i32 : i32
    %42 = vector.broadcast %41 : i32 to vector<8x1xi32>
    %43 = arith.cmpi sle, %42, %7 : vector<8x1xi32>
    %44 = vector.shape_cast %43 : vector<8x1xi1> to vector<8x1xi1>
    %45 = vector.broadcast %44 : vector<8x1xi1> to vector<8x128xi1>
    %46 = arith.select %45, %39, %10 : vector<8x128xi1>, vector<8x128xf32>
    %c1_i32_15 = arith.constant 1 : i32
    %47 = arith.index_cast %c1_i32_15 : i32 to index
    %c0_16 = arith.constant 0 : index
    %c0_17 = arith.constant 0 : index
    %48 = vector.load %arg2[%47, %c0_16, %c0_17] : memref<8x8x384xf32, #tpu.memory_space<vmem>>, vector<1x8x384xf32>
    %49 = vector.shape_cast %48 : vector<1x8x384xf32> to vector<8x384xf32>
    %cst_18 = arith.constant dense<0.000000e+00> : vector<8x384xf32>
    %50 = tpu.matmul %39, %3, %cst_18 {dimension_numbers = #tpu.dot_dimension_numbers<[1], [0], [0], [1], [0, 0, 1, 1], [], []>} : vector<8x128xf32>, vector<128x384xf32>, vector<8x384xf32> -> vector<8x384xf32>
    %51 = vector.extract_strided_slice %49 {offsets = [0, 0], sizes = [8, 128], strides = [1, 1]} : vector<8x384xf32> to vector<8x128xf32>
    %52 = vector.extract_strided_slice %49 {offsets = [0, 128], sizes = [8, 128], strides = [1, 1]} : vector<8x384xf32> to vector<8x128xf32>
    %53 = vector.extract_strided_slice %49 {offsets = [0, 256], sizes = [8, 128], strides = [1, 1]} : vector<8x384xf32> to vector<8x128xf32>
    %54 = vector.extract_strided_slice %50 {offsets = [0, 0], sizes = [8, 128], strides = [1, 1]} : vector<8x384xf32> to vector<8x128xf32>
    %55 = vector.extract_strided_slice %50 {offsets = [0, 128], sizes = [8, 128], strides = [1, 1]} : vector<8x384xf32> to vector<8x128xf32>
    %56 = vector.extract_strided_slice %50 {offsets = [0, 256], sizes = [8, 128], strides = [1, 1]} : vector<8x384xf32> to vector<8x128xf32>
    %57 = arith.addf %51, %54 : vector<8x128xf32>
    %58 = arith.negf %57 : vector<8x128xf32>
    %59 = math.exp %58 : vector<8x128xf32>
    %cst_19 = arith.constant 1.000000e+00 : f32
    %60 = vector.broadcast %cst_19 : f32 to vector<8x128xf32>
    %61 = arith.addf %60, %59 : vector<8x128xf32>
    %62 = arith.divf %60, %61 : vector<8x128xf32>
    %63 = arith.addf %52, %55 : vector<8x128xf32>
    %64 = arith.negf %63 : vector<8x128xf32>
    %65 = math.exp %64 : vector<8x128xf32>
    %cst_20 = arith.constant 1.000000e+00 : f32
    %66 = vector.broadcast %cst_20 : f32 to vector<8x128xf32>
    %67 = arith.addf %66, %65 : vector<8x128xf32>
    %68 = arith.divf %66, %67 : vector<8x128xf32>
    %69 = arith.addf %56, %6 : vector<8x128xf32>
    %70 = arith.mulf %62, %69 : vector<8x128xf32>
    %71 = arith.addf %53, %70 : vector<8x128xf32>
    %72 = math.tanh %71 : vector<8x128xf32>
    %73 = arith.subf %39, %72 : vector<8x128xf32>
    %74 = arith.mulf %68, %73 : vector<8x128xf32>
    %75 = arith.addf %72, %74 : vector<8x128xf32>
    %76 = arith.addi %8, %c1_i32_15 : i32
    %c1_i32_21 = arith.constant 1 : i32
    %77 = arith.addi %76, %c1_i32_21 : i32
    %78 = vector.broadcast %77 : i32 to vector<8x1xi32>
    %79 = arith.cmpi sle, %78, %7 : vector<8x1xi32>
    %80 = vector.shape_cast %79 : vector<8x1xi1> to vector<8x1xi1>
    %81 = vector.broadcast %80 : vector<8x1xi1> to vector<8x128xi1>
    %82 = arith.select %81, %75, %46 : vector<8x128xi1>, vector<8x128xf32>
    %c2_i32 = arith.constant 2 : i32
    %83 = arith.index_cast %c2_i32 : i32 to index
    %c0_22 = arith.constant 0 : index
    %c0_23 = arith.constant 0 : index
    %84 = vector.load %arg2[%83, %c0_22, %c0_23] : memref<8x8x384xf32, #tpu.memory_space<vmem>>, vector<1x8x384xf32>
    %85 = vector.shape_cast %84 : vector<1x8x384xf32> to vector<8x384xf32>
    %cst_24 = arith.constant dense<0.000000e+00> : vector<8x384xf32>
    %86 = tpu.matmul %75, %3, %cst_24 {dimension_numbers = #tpu.dot_dimension_numbers<[1], [0], [0], [1], [0, 0, 1, 1], [], []>} : vector<8x128xf32>, vector<128x384xf32>, vector<8x384xf32> -> vector<8x384xf32>
    %87 = vector.extract_strided_slice %85 {offsets = [0, 0], sizes = [8, 128], strides = [1, 1]} : vector<8x384xf32> to vector<8x128xf32>
    %88 = vector.extract_strided_slice %85 {offsets = [0, 128], sizes = [8, 128], strides = [1, 1]} : vector<8x384xf32> to vector<8x128xf32>
    %89 = vector.extract_strided_slice %85 {offsets = [0, 256], sizes = [8, 128], strides = [1, 1]} : vector<8x384xf32> to vector<8x128xf32>
    %90 = vector.extract_strided_slice %86 {offsets = [0, 0], sizes = [8, 128], strides = [1, 1]} : vector<8x384xf32> to vector<8x128xf32>
    %91 = vector.extract_strided_slice %86 {offsets = [0, 128], sizes = [8, 128], strides = [1, 1]} : vector<8x384xf32> to vector<8x128xf32>
    %92 = vector.extract_strided_slice %86 {offsets = [0, 256], sizes = [8, 128], strides = [1, 1]} : vector<8x384xf32> to vector<8x128xf32>
    %93 = arith.addf %87, %90 : vector<8x128xf32>
    %94 = arith.negf %93 : vector<8x128xf32>
    %95 = math.exp %94 : vector<8x128xf32>
    %cst_25 = arith.constant 1.000000e+00 : f32
    %96 = vector.broadcast %cst_25 : f32 to vector<8x128xf32>
    %97 = arith.addf %96, %95 : vector<8x128xf32>
    %98 = arith.divf %96, %97 : vector<8x128xf32>
    %99 = arith.addf %88, %91 : vector<8x128xf32>
    %100 = arith.negf %99 : vector<8x128xf32>
    %101 = math.exp %100 : vector<8x128xf32>
    %cst_26 = arith.constant 1.000000e+00 : f32
    %102 = vector.broadcast %cst_26 : f32 to vector<8x128xf32>
    %103 = arith.addf %102, %101 : vector<8x128xf32>
    %104 = arith.divf %102, %103 : vector<8x128xf32>
    %105 = arith.addf %92, %6 : vector<8x128xf32>
    %106 = arith.mulf %98, %105 : vector<8x128xf32>
    %107 = arith.addf %89, %106 : vector<8x128xf32>
    %108 = math.tanh %107 : vector<8x128xf32>
    %109 = arith.subf %75, %108 : vector<8x128xf32>
    %110 = arith.mulf %104, %109 : vector<8x128xf32>
    %111 = arith.addf %108, %110 : vector<8x128xf32>
    %112 = arith.addi %8, %c2_i32 : i32
    %c1_i32_27 = arith.constant 1 : i32
    %113 = arith.addi %112, %c1_i32_27 : i32
    %114 = vector.broadcast %113 : i32 to vector<8x1xi32>
    %115 = arith.cmpi sle, %114, %7 : vector<8x1xi32>
    %116 = vector.shape_cast %115 : vector<8x1xi1> to vector<8x1xi1>
    %117 = vector.broadcast %116 : vector<8x1xi1> to vector<8x128xi1>
    %118 = arith.select %117, %111, %82 : vector<8x128xi1>, vector<8x128xf32>
    %c3_i32 = arith.constant 3 : i32
    %119 = arith.index_cast %c3_i32 : i32 to index
    %c0_28 = arith.constant 0 : index
    %c0_29 = arith.constant 0 : index
    %120 = vector.load %arg2[%119, %c0_28, %c0_29] : memref<8x8x384xf32, #tpu.memory_space<vmem>>, vector<1x8x384xf32>
    %121 = vector.shape_cast %120 : vector<1x8x384xf32> to vector<8x384xf32>
    %cst_30 = arith.constant dense<0.000000e+00> : vector<8x384xf32>
    %122 = tpu.matmul %111, %3, %cst_30 {dimension_numbers = #tpu.dot_dimension_numbers<[1], [0], [0], [1], [0, 0, 1, 1], [], []>} : vector<8x128xf32>, vector<128x384xf32>, vector<8x384xf32> -> vector<8x384xf32>
    %123 = vector.extract_strided_slice %121 {offsets = [0, 0], sizes = [8, 128], strides = [1, 1]} : vector<8x384xf32> to vector<8x128xf32>
    %124 = vector.extract_strided_slice %121 {offsets = [0, 128], sizes = [8, 128], strides = [1, 1]} : vector<8x384xf32> to vector<8x128xf32>
    %125 = vector.extract_strided_slice %121 {offsets = [0, 256], sizes = [8, 128], strides = [1, 1]} : vector<8x384xf32> to vector<8x128xf32>
    %126 = vector.extract_strided_slice %122 {offsets = [0, 0], sizes = [8, 128], strides = [1, 1]} : vector<8x384xf32> to vector<8x128xf32>
    %127 = vector.extract_strided_slice %122 {offsets = [0, 128], sizes = [8, 128], strides = [1, 1]} : vector<8x384xf32> to vector<8x128xf32>
    %128 = vector.extract_strided_slice %122 {offsets = [0, 256], sizes = [8, 128], strides = [1, 1]} : vector<8x384xf32> to vector<8x128xf32>
    %129 = arith.addf %123, %126 : vector<8x128xf32>
    %130 = arith.negf %129 : vector<8x128xf32>
    %131 = math.exp %130 : vector<8x128xf32>
    %cst_31 = arith.constant 1.000000e+00 : f32
    %132 = vector.broadcast %cst_31 : f32 to vector<8x128xf32>
    %133 = arith.addf %132, %131 : vector<8x128xf32>
    %134 = arith.divf %132, %133 : vector<8x128xf32>
    %135 = arith.addf %124, %127 : vector<8x128xf32>
    %136 = arith.negf %135 : vector<8x128xf32>
    %137 = math.exp %136 : vector<8x128xf32>
    %cst_32 = arith.constant 1.000000e+00 : f32
    %138 = vector.broadcast %cst_32 : f32 to vector<8x128xf32>
    %139 = arith.addf %138, %137 : vector<8x128xf32>
    %140 = arith.divf %138, %139 : vector<8x128xf32>
    %141 = arith.addf %128, %6 : vector<8x128xf32>
    %142 = arith.mulf %134, %141 : vector<8x128xf32>
    %143 = arith.addf %125, %142 : vector<8x128xf32>
    %144 = math.tanh %143 : vector<8x128xf32>
    %145 = arith.subf %111, %144 : vector<8x128xf32>
    %146 = arith.mulf %140, %145 : vector<8x128xf32>
    %147 = arith.addf %144, %146 : vector<8x128xf32>
    %148 = arith.addi %8, %c3_i32 : i32
    %c1_i32_33 = arith.constant 1 : i32
    %149 = arith.addi %148, %c1_i32_33 : i32
    %150 = vector.broadcast %149 : i32 to vector<8x1xi32>
    %151 = arith.cmpi sle, %150, %7 : vector<8x1xi32>
    %152 = vector.shape_cast %151 : vector<8x1xi1> to vector<8x1xi1>
    %153 = vector.broadcast %152 : vector<8x1xi1> to vector<8x128xi1>
    %154 = arith.select %153, %147, %118 : vector<8x128xi1>, vector<8x128xf32>
    %c4_i32 = arith.constant 4 : i32
    %155 = arith.index_cast %c4_i32 : i32 to index
    %c0_34 = arith.constant 0 : index
    %c0_35 = arith.constant 0 : index
    %156 = vector.load %arg2[%155, %c0_34, %c0_35] : memref<8x8x384xf32, #tpu.memory_space<vmem>>, vector<1x8x384xf32>
    %157 = vector.shape_cast %156 : vector<1x8x384xf32> to vector<8x384xf32>
    %cst_36 = arith.constant dense<0.000000e+00> : vector<8x384xf32>
    %158 = tpu.matmul %147, %3, %cst_36 {dimension_numbers = #tpu.dot_dimension_numbers<[1], [0], [0], [1], [0, 0, 1, 1], [], []>} : vector<8x128xf32>, vector<128x384xf32>, vector<8x384xf32> -> vector<8x384xf32>
    %159 = vector.extract_strided_slice %157 {offsets = [0, 0], sizes = [8, 128], strides = [1, 1]} : vector<8x384xf32> to vector<8x128xf32>
    %160 = vector.extract_strided_slice %157 {offsets = [0, 128], sizes = [8, 128], strides = [1, 1]} : vector<8x384xf32> to vector<8x128xf32>
    %161 = vector.extract_strided_slice %157 {offsets = [0, 256], sizes = [8, 128], strides = [1, 1]} : vector<8x384xf32> to vector<8x128xf32>
    %162 = vector.extract_strided_slice %158 {offsets = [0, 0], sizes = [8, 128], strides = [1, 1]} : vector<8x384xf32> to vector<8x128xf32>
    %163 = vector.extract_strided_slice %158 {offsets = [0, 128], sizes = [8, 128], strides = [1, 1]} : vector<8x384xf32> to vector<8x128xf32>
    %164 = vector.extract_strided_slice %158 {offsets = [0, 256], sizes = [8, 128], strides = [1, 1]} : vector<8x384xf32> to vector<8x128xf32>
    %165 = arith.addf %159, %162 : vector<8x128xf32>
    %166 = arith.negf %165 : vector<8x128xf32>
    %167 = math.exp %166 : vector<8x128xf32>
    %cst_37 = arith.constant 1.000000e+00 : f32
    %168 = vector.broadcast %cst_37 : f32 to vector<8x128xf32>
    %169 = arith.addf %168, %167 : vector<8x128xf32>
    %170 = arith.divf %168, %169 : vector<8x128xf32>
    %171 = arith.addf %160, %163 : vector<8x128xf32>
    %172 = arith.negf %171 : vector<8x128xf32>
    %173 = math.exp %172 : vector<8x128xf32>
    %cst_38 = arith.constant 1.000000e+00 : f32
    %174 = vector.broadcast %cst_38 : f32 to vector<8x128xf32>
    %175 = arith.addf %174, %173 : vector<8x128xf32>
    %176 = arith.divf %174, %175 : vector<8x128xf32>
    %177 = arith.addf %164, %6 : vector<8x128xf32>
    %178 = arith.mulf %170, %177 : vector<8x128xf32>
    %179 = arith.addf %161, %178 : vector<8x128xf32>
    %180 = math.tanh %179 : vector<8x128xf32>
    %181 = arith.subf %147, %180 : vector<8x128xf32>
    %182 = arith.mulf %176, %181 : vector<8x128xf32>
    %183 = arith.addf %180, %182 : vector<8x128xf32>
    %184 = arith.addi %8, %c4_i32 : i32
    %c1_i32_39 = arith.constant 1 : i32
    %185 = arith.addi %184, %c1_i32_39 : i32
    %186 = vector.broadcast %185 : i32 to vector<8x1xi32>
    %187 = arith.cmpi sle, %186, %7 : vector<8x1xi32>
    %188 = vector.shape_cast %187 : vector<8x1xi1> to vector<8x1xi1>
    %189 = vector.broadcast %188 : vector<8x1xi1> to vector<8x128xi1>
    %190 = arith.select %189, %183, %154 : vector<8x128xi1>, vector<8x128xf32>
    %c5_i32 = arith.constant 5 : i32
    %191 = arith.index_cast %c5_i32 : i32 to index
    %c0_40 = arith.constant 0 : index
    %c0_41 = arith.constant 0 : index
    %192 = vector.load %arg2[%191, %c0_40, %c0_41] : memref<8x8x384xf32, #tpu.memory_space<vmem>>, vector<1x8x384xf32>
    %193 = vector.shape_cast %192 : vector<1x8x384xf32> to vector<8x384xf32>
    %cst_42 = arith.constant dense<0.000000e+00> : vector<8x384xf32>
    %194 = tpu.matmul %183, %3, %cst_42 {dimension_numbers = #tpu.dot_dimension_numbers<[1], [0], [0], [1], [0, 0, 1, 1], [], []>} : vector<8x128xf32>, vector<128x384xf32>, vector<8x384xf32> -> vector<8x384xf32>
    %195 = vector.extract_strided_slice %193 {offsets = [0, 0], sizes = [8, 128], strides = [1, 1]} : vector<8x384xf32> to vector<8x128xf32>
    %196 = vector.extract_strided_slice %193 {offsets = [0, 128], sizes = [8, 128], strides = [1, 1]} : vector<8x384xf32> to vector<8x128xf32>
    %197 = vector.extract_strided_slice %193 {offsets = [0, 256], sizes = [8, 128], strides = [1, 1]} : vector<8x384xf32> to vector<8x128xf32>
    %198 = vector.extract_strided_slice %194 {offsets = [0, 0], sizes = [8, 128], strides = [1, 1]} : vector<8x384xf32> to vector<8x128xf32>
    %199 = vector.extract_strided_slice %194 {offsets = [0, 128], sizes = [8, 128], strides = [1, 1]} : vector<8x384xf32> to vector<8x128xf32>
    %200 = vector.extract_strided_slice %194 {offsets = [0, 256], sizes = [8, 128], strides = [1, 1]} : vector<8x384xf32> to vector<8x128xf32>
    %201 = arith.addf %195, %198 : vector<8x128xf32>
    %202 = arith.negf %201 : vector<8x128xf32>
    %203 = math.exp %202 : vector<8x128xf32>
    %cst_43 = arith.constant 1.000000e+00 : f32
    %204 = vector.broadcast %cst_43 : f32 to vector<8x128xf32>
    %205 = arith.addf %204, %203 : vector<8x128xf32>
    %206 = arith.divf %204, %205 : vector<8x128xf32>
    %207 = arith.addf %196, %199 : vector<8x128xf32>
    %208 = arith.negf %207 : vector<8x128xf32>
    %209 = math.exp %208 : vector<8x128xf32>
    %cst_44 = arith.constant 1.000000e+00 : f32
    %210 = vector.broadcast %cst_44 : f32 to vector<8x128xf32>
    %211 = arith.addf %210, %209 : vector<8x128xf32>
    %212 = arith.divf %210, %211 : vector<8x128xf32>
    %213 = arith.addf %200, %6 : vector<8x128xf32>
    %214 = arith.mulf %206, %213 : vector<8x128xf32>
    %215 = arith.addf %197, %214 : vector<8x128xf32>
    %216 = math.tanh %215 : vector<8x128xf32>
    %217 = arith.subf %183, %216 : vector<8x128xf32>
    %218 = arith.mulf %212, %217 : vector<8x128xf32>
    %219 = arith.addf %216, %218 : vector<8x128xf32>
    %220 = arith.addi %8, %c5_i32 : i32
    %c1_i32_45 = arith.constant 1 : i32
    %221 = arith.addi %220, %c1_i32_45 : i32
    %222 = vector.broadcast %221 : i32 to vector<8x1xi32>
    %223 = arith.cmpi sle, %222, %7 : vector<8x1xi32>
    %224 = vector.shape_cast %223 : vector<8x1xi1> to vector<8x1xi1>
    %225 = vector.broadcast %224 : vector<8x1xi1> to vector<8x128xi1>
    %226 = arith.select %225, %219, %190 : vector<8x128xi1>, vector<8x128xf32>
    %c6_i32 = arith.constant 6 : i32
    %227 = arith.index_cast %c6_i32 : i32 to index
    %c0_46 = arith.constant 0 : index
    %c0_47 = arith.constant 0 : index
    %228 = vector.load %arg2[%227, %c0_46, %c0_47] : memref<8x8x384xf32, #tpu.memory_space<vmem>>, vector<1x8x384xf32>
    %229 = vector.shape_cast %228 : vector<1x8x384xf32> to vector<8x384xf32>
    %cst_48 = arith.constant dense<0.000000e+00> : vector<8x384xf32>
    %230 = tpu.matmul %219, %3, %cst_48 {dimension_numbers = #tpu.dot_dimension_numbers<[1], [0], [0], [1], [0, 0, 1, 1], [], []>} : vector<8x128xf32>, vector<128x384xf32>, vector<8x384xf32> -> vector<8x384xf32>
    %231 = vector.extract_strided_slice %229 {offsets = [0, 0], sizes = [8, 128], strides = [1, 1]} : vector<8x384xf32> to vector<8x128xf32>
    %232 = vector.extract_strided_slice %229 {offsets = [0, 128], sizes = [8, 128], strides = [1, 1]} : vector<8x384xf32> to vector<8x128xf32>
    %233 = vector.extract_strided_slice %229 {offsets = [0, 256], sizes = [8, 128], strides = [1, 1]} : vector<8x384xf32> to vector<8x128xf32>
    %234 = vector.extract_strided_slice %230 {offsets = [0, 0], sizes = [8, 128], strides = [1, 1]} : vector<8x384xf32> to vector<8x128xf32>
    %235 = vector.extract_strided_slice %230 {offsets = [0, 128], sizes = [8, 128], strides = [1, 1]} : vector<8x384xf32> to vector<8x128xf32>
    %236 = vector.extract_strided_slice %230 {offsets = [0, 256], sizes = [8, 128], strides = [1, 1]} : vector<8x384xf32> to vector<8x128xf32>
    %237 = arith.addf %231, %234 : vector<8x128xf32>
    %238 = arith.negf %237 : vector<8x128xf32>
    %239 = math.exp %238 : vector<8x128xf32>
    %cst_49 = arith.constant 1.000000e+00 : f32
    %240 = vector.broadcast %cst_49 : f32 to vector<8x128xf32>
    %241 = arith.addf %240, %239 : vector<8x128xf32>
    %242 = arith.divf %240, %241 : vector<8x128xf32>
    %243 = arith.addf %232, %235 : vector<8x128xf32>
    %244 = arith.negf %243 : vector<8x128xf32>
    %245 = math.exp %244 : vector<8x128xf32>
    %cst_50 = arith.constant 1.000000e+00 : f32
    %246 = vector.broadcast %cst_50 : f32 to vector<8x128xf32>
    %247 = arith.addf %246, %245 : vector<8x128xf32>
    %248 = arith.divf %246, %247 : vector<8x128xf32>
    %249 = arith.addf %236, %6 : vector<8x128xf32>
    %250 = arith.mulf %242, %249 : vector<8x128xf32>
    %251 = arith.addf %233, %250 : vector<8x128xf32>
    %252 = math.tanh %251 : vector<8x128xf32>
    %253 = arith.subf %219, %252 : vector<8x128xf32>
    %254 = arith.mulf %248, %253 : vector<8x128xf32>
    %255 = arith.addf %252, %254 : vector<8x128xf32>
    %256 = arith.addi %8, %c6_i32 : i32
    %c1_i32_51 = arith.constant 1 : i32
    %257 = arith.addi %256, %c1_i32_51 : i32
    %258 = vector.broadcast %257 : i32 to vector<8x1xi32>
    %259 = arith.cmpi sle, %258, %7 : vector<8x1xi32>
    %260 = vector.shape_cast %259 : vector<8x1xi1> to vector<8x1xi1>
    %261 = vector.broadcast %260 : vector<8x1xi1> to vector<8x128xi1>
    %262 = arith.select %261, %255, %226 : vector<8x128xi1>, vector<8x128xf32>
    %c7_i32 = arith.constant 7 : i32
    %263 = arith.index_cast %c7_i32 : i32 to index
    %c0_52 = arith.constant 0 : index
    %c0_53 = arith.constant 0 : index
    %264 = vector.load %arg2[%263, %c0_52, %c0_53] : memref<8x8x384xf32, #tpu.memory_space<vmem>>, vector<1x8x384xf32>
    %265 = vector.shape_cast %264 : vector<1x8x384xf32> to vector<8x384xf32>
    %cst_54 = arith.constant dense<0.000000e+00> : vector<8x384xf32>
    %266 = tpu.matmul %255, %3, %cst_54 {dimension_numbers = #tpu.dot_dimension_numbers<[1], [0], [0], [1], [0, 0, 1, 1], [], []>} : vector<8x128xf32>, vector<128x384xf32>, vector<8x384xf32> -> vector<8x384xf32>
    %267 = vector.extract_strided_slice %265 {offsets = [0, 0], sizes = [8, 128], strides = [1, 1]} : vector<8x384xf32> to vector<8x128xf32>
    %268 = vector.extract_strided_slice %265 {offsets = [0, 128], sizes = [8, 128], strides = [1, 1]} : vector<8x384xf32> to vector<8x128xf32>
    %269 = vector.extract_strided_slice %265 {offsets = [0, 256], sizes = [8, 128], strides = [1, 1]} : vector<8x384xf32> to vector<8x128xf32>
    %270 = vector.extract_strided_slice %266 {offsets = [0, 0], sizes = [8, 128], strides = [1, 1]} : vector<8x384xf32> to vector<8x128xf32>
    %271 = vector.extract_strided_slice %266 {offsets = [0, 128], sizes = [8, 128], strides = [1, 1]} : vector<8x384xf32> to vector<8x128xf32>
    %272 = vector.extract_strided_slice %266 {offsets = [0, 256], sizes = [8, 128], strides = [1, 1]} : vector<8x384xf32> to vector<8x128xf32>
    %273 = arith.addf %267, %270 : vector<8x128xf32>
    %274 = arith.negf %273 : vector<8x128xf32>
    %275 = math.exp %274 : vector<8x128xf32>
    %cst_55 = arith.constant 1.000000e+00 : f32
    %276 = vector.broadcast %cst_55 : f32 to vector<8x128xf32>
    %277 = arith.addf %276, %275 : vector<8x128xf32>
    %278 = arith.divf %276, %277 : vector<8x128xf32>
    %279 = arith.addf %268, %271 : vector<8x128xf32>
    %280 = arith.negf %279 : vector<8x128xf32>
    %281 = math.exp %280 : vector<8x128xf32>
    %cst_56 = arith.constant 1.000000e+00 : f32
    %282 = vector.broadcast %cst_56 : f32 to vector<8x128xf32>
    %283 = arith.addf %282, %281 : vector<8x128xf32>
    %284 = arith.divf %282, %283 : vector<8x128xf32>
    %285 = arith.addf %272, %6 : vector<8x128xf32>
    %286 = arith.mulf %278, %285 : vector<8x128xf32>
    %287 = arith.addf %269, %286 : vector<8x128xf32>
    %288 = math.tanh %287 : vector<8x128xf32>
    %289 = arith.subf %255, %288 : vector<8x128xf32>
    %290 = arith.mulf %284, %289 : vector<8x128xf32>
    %291 = arith.addf %288, %290 : vector<8x128xf32>
    %292 = arith.addi %8, %c7_i32 : i32
    %c1_i32_57 = arith.constant 1 : i32
    %293 = arith.addi %292, %c1_i32_57 : i32
    %294 = vector.broadcast %293 : i32 to vector<8x1xi32>
    %295 = arith.cmpi sle, %294, %7 : vector<8x1xi32>
    %296 = vector.shape_cast %295 : vector<8x1xi1> to vector<8x1xi1>
    %297 = vector.broadcast %296 : vector<8x1xi1> to vector<8x128xi1>
    %298 = arith.select %297, %291, %262 : vector<8x128xi1>, vector<8x128xf32>
    %c8_i32_58 = arith.constant 8 : i32
    %c0_59 = arith.constant 0 : index
    %c0_60 = arith.constant 0 : index
    %299 = vector.load %arg7[%c0_59, %c0_60] : memref<8x128xf32, #tpu.memory_space<vmem>>, vector<8x128xf32>
    tpu.vector_store %arg7[%c0_59, %c0_60], %291 {strides = array<i32>} : memref<8x128xf32, #tpu.memory_space<vmem>>, vector<8x128xf32>,
    %c0_61 = arith.constant 0 : index
    %c0_62 = arith.constant 0 : index
    %300 = vector.load %arg6[%c0_61, %c0_62] : memref<8x128xf32, #tpu.memory_space<vmem>>, vector<8x128xf32>
    tpu.vector_store %arg6[%c0_61, %c0_62], %298 {strides = array<i32>} : memref<8x128xf32, #tpu.memory_space<vmem>>, vector<8x128xf32>,
    return
  }
  func.func @transform_0(%arg0: i32, %arg1: i32) -> (i32, i32, i32) {
    %c0_i32 = arith.constant 0 : i32
    %c0_i32_0 = arith.constant 0 : i32
    return %arg1, %arg0, %c0_i32 : i32, i32, i32
  }
  func.func @transform_1(%arg0: i32, %arg1: i32) -> (i32, i32) {
    %c0_i32 = arith.constant 0 : i32
    %c0_i32_0 = arith.constant 0 : i32
    %c0_i32_1 = arith.constant 0 : i32
    return %c0_i32, %c0_i32_0 : i32, i32
  }
  func.func @transform_2(%arg0: i32, %arg1: i32) -> (i32, i32) {
    %c0_i32 = arith.constant 0 : i32
    %c0_i32_0 = arith.constant 0 : i32
    %c0_i32_1 = arith.constant 0 : i32
    return %c0_i32, %c0_i32_0 : i32, i32
  }
  func.func @transform_3(%arg0: i32, %arg1: i32) -> (i32, i32) {
    %c0_i32 = arith.constant 0 : i32
    %c0_i32_0 = arith.constant 0 : i32
    return %arg0, %c0_i32 : i32, i32
  }
  func.func @transform_4(%arg0: i32, %arg1: i32) -> (i32, i32) {
    %c0_i32 = arith.constant 0 : i32
    %c0_i32_0 = arith.constant 0 : i32
    return %arg0, %c0_i32 : i32, i32
  }
}

module attributes {stable_mosaic.version = 11 : i64} {
  func.func @kernel(%arg0: i32, %arg1: i32, %arg2: memref<8x8x384xf32, #tpu.memory_space<vmem>>, %arg3: memref<128x384xf32, #tpu.memory_space<vmem>>, %arg4: memref<1x128xf32, #tpu.memory_space<vmem>>, %arg5: memref<8x1xi32, #tpu.memory_space<vmem>>, %arg6: memref<8x128xf32, #tpu.memory_space<vmem>>, %arg7: memref<8x128xf32, #tpu.memory_space<vmem>>) attributes {dimension_semantics = [#tpu.dimension_semantics<parallel>, #tpu.dimension_semantics<arbitrary>], iteration_bounds = array<i64: 1, 1>, scalar_prefetch = 0 : i64, scratch_operands = 1 : i64, tpu.core_type = #tpu.core_type<tc>, window_params = [{transform_indices = @transform_0, window_bounds = array<i64: 8, 8, 384>}, {pipeline_mode = #tpu.pipeline_mode<synchronous>, transform_indices = @transform_1, window_bounds = array<i64: 128, 384>}, {pipeline_mode = #tpu.pipeline_mode<synchronous>, transform_indices = @transform_2, window_bounds = array<i64: 1, 128>}, {transform_indices = @transform_3, window_bounds = array<i64: 8, 1>}, {transform_indices = @transform_4, window_bounds = array<i64: 8, 128>}]} {
    %c0_i32 = arith.constant 0 : i32
    %0 = arith.cmpi eq, %arg1, %c0_i32 : i32
    %1 = arith.extui %0 : i1 to i32
    %c0_i32_0 = arith.constant 0 : i32
    %2 = arith.cmpi ne, %1, %c0_i32_0 : i32
    scf.if %2 {
      %cst_63 = arith.constant 0.000000e+00 : f32
      %301 = vector.broadcast %cst_63 : f32 to vector<8x128xf32>
      %c0_64 = arith.constant 0 : index
      %c0_65 = arith.constant 0 : index
      %302 = vector.load %arg7[%c0_64, %c0_65] : memref<8x128xf32, #tpu.memory_space<vmem>>, vector<8x128xf32>
      tpu.vector_store %arg7[%c0_64, %c0_65], %301 {strides = array<i32>} : memref<8x128xf32, #tpu.memory_space<vmem>>, vector<8x128xf32>,
      %cst_66 = arith.constant 0.000000e+00 : f32
      %303 = vector.broadcast %cst_66 : f32 to vector<8x128xf32>
      %c0_67 = arith.constant 0 : index
      %c0_68 = arith.constant 0 : index
      %304 = vector.load %arg6[%c0_67, %c0_68] : memref<8x128xf32, #tpu.memory_space<vmem>>, vector<8x128xf32>
      tpu.vector_store %arg6[%c0_67, %c0_68], %303 {strides = array<i32>} : memref<8x128xf32, #tpu.memory_space<vmem>>, vector<8x128xf32>,
    } else {
    }
    %c0 = arith.constant 0 : index
    %c0_1 = arith.constant 0 : index
    %3 = vector.load %arg3[%c0, %c0_1] : memref<128x384xf32, #tpu.memory_space<vmem>>, vector<128x384xf32>
    %c0_2 = arith.constant 0 : index
    %c0_3 = arith.constant 0 : index
    %4 = vector.load %arg4[%c0_2, %c0_3] : memref<1x128xf32, #tpu.memory_space<vmem>>, vector<1x128xf32>
    %5 = vector.shape_cast %4 : vector<1x128xf32> to vector<1x128xf32>
    %6 = vector.broadcast %5 : vector<1x128xf32> to vector<8x128xf32>
    %c0_4 = arith.constant 0 : index
    %c0_5 = arith.constant 0 : index
    %7 = vector.load %arg5[%c0_4, %c0_5] : memref<8x1xi32, #tpu.memory_space<vmem>>, vector<8x1xi32>
    %c8_i32 = arith.constant 8 : i32
    %8 = arith.muli %arg1, %c8_i32 : i32
    %c0_6 = arith.constant 0 : index
    %c0_7 = arith.constant 0 : index
    %9 = vector.load %arg7[%c0_6, %c0_7] : memref<8x128xf32, #tpu.memory_space<vmem>>, vector<8x128xf32>
    %c0_8 = arith.constant 0 : index
    %c0_9 = arith.constant 0 : index
    %10 = vector.load %arg6[%c0_8, %c0_9] : memref<8x128xf32, #tpu.memory_space<vmem>>, vector<8x128xf32>
    %c0_i32_10 = arith.constant 0 : i32
    %11 = arith.index_cast %c0_i32_10 : i32 to index
    %c0_11 = arith.constant 0 : index
    %c0_12 = arith.constant 0 : index
    %12 = vector.load %arg2[%11, %c0_11, %c0_12] : memref<8x8x384xf32, #tpu.memory_space<vmem>>, vector<1x8x384xf32>
    %13 = vector.shape_cast %12 : vector<1x8x384xf32> to vector<8x384xf32>
    %cst = arith.constant dense<0.000000e+00> : vector<8x384xf32>
    %14 = tpu.matmul %9, %3, %cst {dimension_numbers = #tpu.dot_dimension_numbers<[1], [0], [0], [1], [0, 0, 1, 1], [], []>} : vector<8x128xf32>, vector<128x384xf32>, vector<8x384xf32> -> vector<8x384xf32>
    %15 = vector.extract_strided_slice %13 {offsets = [0, 0], sizes = [8, 128], strides = [1, 1]} : vector<8x384xf32> to vector<8x128xf32>
    %16 = vector.extract_strided_slice %13 {offsets = [0, 128], sizes = [8, 128], strides = [1, 1]} : vector<8x384xf32> to vector<8x128xf32>
    %17 = vector.extract_strided_slice %13 {offsets = [0, 256], sizes = [8, 128], strides = [1, 1]} : vector<8x384xf32> to vector<8x128xf32>
    %18 = vector.extract_strided_slice %14 {offsets = [0, 0], sizes = [8, 128], strides = [1, 1]} : vector<8x384xf32> to vector<8x128xf32>
    %19 = vector.extract_strided_slice %14 {offsets = [0, 128], sizes = [8, 128], strides = [1, 1]} : vector<8x384xf32> to vector<8x128xf32>
    %20 = vector.extract_strided_slice %14 {offsets = [0, 256], sizes = [8, 128], strides = [1, 1]} : vector<8x384xf32> to vector<8x128xf32>
    %21 = arith.addf %15, %18 : vector<8x128xf32>
    %22 = arith.negf %21 : vector<8x128xf32>
    %23 = math.exp %22 : vector<8x128xf32>
    %cst_13 = arith.constant 1.000000e+00 : f32
    %24 = vector.broadcast %cst_13 : f32 to vector<8x128xf32>
    %25 = arith.addf %24, %23 : vector<8x128xf32>
    %26 = arith.divf %24, %25 : vector<8x128xf32>
    %27 = arith.addf %16, %19 : vector<8x128xf32>
    %28 = arith.negf %27 : vector<8x128xf32>
    %29 = math.exp %28 : vector<8x128xf32>
    %cst_14 = arith.constant 1.000000e+00 : f32
    %30 = vector.broadcast %cst_14 : f32 to vector<8x128xf32>
    %31 = arith.addf %30, %29 : vector<8x128xf32>
    %32 = arith.divf %30, %31 : vector<8x128xf32>
    %33 = arith.addf %20, %6 : vector<8x128xf32>
    %34 = arith.mulf %26, %33 : vector<8x128xf32>
    %35 = arith.addf %17, %34 : vector<8x128xf32>
    %36 = math.tanh %35 : vector<8x128xf32>
    %37 = arith.subf %9, %36 : vector<8x128xf32>
    %38 = arith.mulf %32, %37 : vector<8x128xf32>
    %39 = arith.addf %36, %38 : vector<8x128xf32>
    %40 = arith.addi %8, %c0_i32_10 : i32
    %c1_i32 = arith.constant 1 : i32
    %41 = arith.addi %40, %c1_i32 : i32
    %42 = vector.broadcast %41 : i32 to vector<8x1xi32>
    %43 = arith.cmpi sle, %42, %7 : vector<8x1xi32>
    %44 = vector.shape_cast %43 : vector<8x1xi1> to vector<8x1xi1>
    %45 = vector.broadcast %44 : vector<8x1xi1> to vector<8x128xi1>
    %46 = arith.select %45, %39, %10 : vector<8x128xi1>, vector<8x128xf32>
    %c1_i32_15 = arith.constant 1 : i32
    %47 = arith.index_cast %c1_i32_15 : i32 to index
    %c0_16 = arith.constant 0 : index
    %c0_17 = arith.constant 0 : index
    %48 = vector.load %arg2[%47, %c0_16, %c0_17] : memref<8x8x384xf32, #tpu.memory_space<vmem>>, vector<1x8x384xf32>
    %49 = vector.shape_cast %48 : vector<1x8x384xf32> to vector<8x384xf32>
    %cst_18 = arith.constant dense<0.000000e+00> : vector<8x384xf32>
    %50 = tpu.matmul %39, %3, %cst_18 {dimension_numbers = #tpu.dot_dimension_numbers<[1], [0], [0], [1], [0, 0, 1, 1], [], []>} : vector<8x128xf32>, vector<128x384xf32>, vector<8x384xf32> -> vector<8x384xf32>
    %51 = vector.extract_strided_slice %49 {offsets = [0, 0], sizes = [8, 128], strides = [1, 1]} : vector<8x384xf32> to vector<8x128xf32>
    %52 = vector.extract_strided_slice %49 {offsets = [0, 128], sizes = [8, 128], strides = [1, 1]} : vector<8x384xf32> to vector<8x128xf32>
    %53 = vector.extract_strided_slice %49 {offsets = [0, 256], sizes = [8, 128], strides = [1, 1]} : vector<8x384xf32> to vector<8x128xf32>
    %54 = vector.extract_strided_slice %50 {offsets = [0, 0], sizes = [8, 128], strides = [1, 1]} : vector<8x384xf32> to vector<8x128xf32>
    %55 = vector.extract_strided_slice %50 {offsets = [0, 128], sizes = [8, 128], strides = [1, 1]} : vector<8x384xf32> to vector<8x128xf32>
    %56 = vector.extract_strided_slice %50 {offsets = [0, 256], sizes = [8, 128], strides = [1, 1]} : vector<8x384xf32> to vector<8x128xf32>
    %57 = arith.addf %51, %54 : vector<8x128xf32>
    %58 = arith.negf %57 : vector<8x128xf32>
    %59 = math.exp %58 : vector<8x128xf32>
    %cst_19 = arith.constant 1.000000e+00 : f32
    %60 = vector.broadcast %cst_19 : f32 to vector<8x128xf32>
    %61 = arith.addf %60, %59 : vector<8x128xf32>
    %62 = arith.divf %60, %61 : vector<8x128xf32>
    %63 = arith.addf %52, %55 : vector<8x128xf32>
    %64 = arith.negf %63 : vector<8x128xf32>
    %65 = math.exp %64 : vector<8x128xf32>
    %cst_20 = arith.constant 1.000000e+00 : f32
    %66 = vector.broadcast %cst_20 : f32 to vector<8x128xf32>
    %67 = arith.addf %66, %65 : vector<8x128xf32>
    %68 = arith.divf %66, %67 : vector<8x128xf32>
    %69 = arith.addf %56, %6 : vector<8x128xf32>
    %70 = arith.mulf %62, %69 : vector<8x128xf32>
    %71 = arith.addf %53, %70 : vector<8x128xf32>
    %72 = math.tanh %71 : vector<8x128xf32>
    %73 = arith.subf %39, %72 : vector<8x128xf32>
    %74 = arith.mulf %68, %73 : vector<8x128xf32>
    %75 = arith.addf %72, %74 : vector<8x128xf32>
    %76 = arith.addi %8, %c1_i32_15 : i32
    %c1_i32_21 = arith.constant 1 : i32
    %77 = arith.addi %76, %c1_i32_21 : i32
    %78 = vector.broadcast %77 : i32 to vector<8x1xi32>
    %79 = arith.cmpi sle, %78, %7 : vector<8x1xi32>
    %80 = vector.shape_cast %79 : vector<8x1xi1> to vector<8x1xi1>
    %81 = vector.broadcast %80 : vector<8x1xi1> to vector<8x128xi1>
    %82 = arith.select %81, %75, %46 : vector<8x128xi1>, vector<8x128xf32>
    %c2_i32 = arith.constant 2 : i32
    %83 = arith.index_cast %c2_i32 : i32 to index
    %c0_22 = arith.constant 0 : index
    %c0_23 = arith.constant 0 : index
    %84 = vector.load %arg2[%83, %c0_22, %c0_23] : memref<8x8x384xf32, #tpu.memory_space<vmem>>, vector<1x8x384xf32>
    %85 = vector.shape_cast %84 : vector<1x8x384xf32> to vector<8x384xf32>
    %cst_24 = arith.constant dense<0.000000e+00> : vector<8x384xf32>
    %86 = tpu.matmul %75, %3, %cst_24 {dimension_numbers = #tpu.dot_dimension_numbers<[1], [0], [0], [1], [0, 0, 1, 1], [], []>} : vector<8x128xf32>, vector<128x384xf32>, vector<8x384xf32> -> vector<8x384xf32>
    %87 = vector.extract_strided_slice %85 {offsets = [0, 0], sizes = [8, 128], strides = [1, 1]} : vector<8x384xf32> to vector<8x128xf32>
    %88 = vector.extract_strided_slice %85 {offsets = [0, 128], sizes = [8, 128], strides = [1, 1]} : vector<8x384xf32> to vector<8x128xf32>
    %89 = vector.extract_strided_slice %85 {offsets = [0, 256], sizes = [8, 128], strides = [1, 1]} : vector<8x384xf32> to vector<8x128xf32>
    %90 = vector.extract_strided_slice %86 {offsets = [0, 0], sizes = [8, 128], strides = [1, 1]} : vector<8x384xf32> to vector<8x128xf32>
    %91 = vector.extract_strided_slice %86 {offsets = [0, 128], sizes = [8, 128], strides = [1, 1]} : vector<8x384xf32> to vector<8x128xf32>
    %92 = vector.extract_strided_slice %86 {offsets = [0, 256], sizes = [8, 128], strides = [1, 1]} : vector<8x384xf32> to vector<8x128xf32>
    %93 = arith.addf %87, %90 : vector<8x128xf32>
    %94 = arith.negf %93 : vector<8x128xf32>
    %95 = math.exp %94 : vector<8x128xf32>
    %cst_25 = arith.constant 1.000000e+00 : f32
    %96 = vector.broadcast %cst_25 : f32 to vector<8x128xf32>
    %97 = arith.addf %96, %95 : vector<8x128xf32>
    %98 = arith.divf %96, %97 : vector<8x128xf32>
    %99 = arith.addf %88, %91 : vector<8x128xf32>
    %100 = arith.negf %99 : vector<8x128xf32>
    %101 = math.exp %100 : vector<8x128xf32>
    %cst_26 = arith.constant 1.000000e+00 : f32
    %102 = vector.broadcast %cst_26 : f32 to vector<8x128xf32>
    %103 = arith.addf %102, %101 : vector<8x128xf32>
    %104 = arith.divf %102, %103 : vector<8x128xf32>
    %105 = arith.addf %92, %6 : vector<8x128xf32>
    %106 = arith.mulf %98, %105 : vector<8x128xf32>
    %107 = arith.addf %89, %106 : vector<8x128xf32>
    %108 = math.tanh %107 : vector<8x128xf32>
    %109 = arith.subf %75, %108 : vector<8x128xf32>
    %110 = arith.mulf %104, %109 : vector<8x128xf32>
    %111 = arith.addf %108, %110 : vector<8x128xf32>
    %112 = arith.addi %8, %c2_i32 : i32
    %c1_i32_27 = arith.constant 1 : i32
    %113 = arith.addi %112, %c1_i32_27 : i32
    %114 = vector.broadcast %113 : i32 to vector<8x1xi32>
    %115 = arith.cmpi sle, %114, %7 : vector<8x1xi32>
    %116 = vector.shape_cast %115 : vector<8x1xi1> to vector<8x1xi1>
    %117 = vector.broadcast %116 : vector<8x1xi1> to vector<8x128xi1>
    %118 = arith.select %117, %111, %82 : vector<8x128xi1>, vector<8x128xf32>
    %c3_i32 = arith.constant 3 : i32
    %119 = arith.index_cast %c3_i32 : i32 to index
    %c0_28 = arith.constant 0 : index
    %c0_29 = arith.constant 0 : index
    %120 = vector.load %arg2[%119, %c0_28, %c0_29] : memref<8x8x384xf32, #tpu.memory_space<vmem>>, vector<1x8x384xf32>
    %121 = vector.shape_cast %120 : vector<1x8x384xf32> to vector<8x384xf32>
    %cst_30 = arith.constant dense<0.000000e+00> : vector<8x384xf32>
    %122 = tpu.matmul %111, %3, %cst_30 {dimension_numbers = #tpu.dot_dimension_numbers<[1], [0], [0], [1], [0, 0, 1, 1], [], []>} : vector<8x128xf32>, vector<128x384xf32>, vector<8x384xf32> -> vector<8x384xf32>
    %123 = vector.extract_strided_slice %121 {offsets = [0, 0], sizes = [8, 128], strides = [1, 1]} : vector<8x384xf32> to vector<8x128xf32>
    %124 = vector.extract_strided_slice %121 {offsets = [0, 128], sizes = [8, 128], strides = [1, 1]} : vector<8x384xf32> to vector<8x128xf32>
    %125 = vector.extract_strided_slice %121 {offsets = [0, 256], sizes = [8, 128], strides = [1, 1]} : vector<8x384xf32> to vector<8x128xf32>
    %126 = vector.extract_strided_slice %122 {offsets = [0, 0], sizes = [8, 128], strides = [1, 1]} : vector<8x384xf32> to vector<8x128xf32>
    %127 = vector.extract_strided_slice %122 {offsets = [0, 128], sizes = [8, 128], strides = [1, 1]} : vector<8x384xf32> to vector<8x128xf32>
    %128 = vector.extract_strided_slice %122 {offsets = [0, 256], sizes = [8, 128], strides = [1, 1]} : vector<8x384xf32> to vector<8x128xf32>
    %129 = arith.addf %123, %126 : vector<8x128xf32>
    %130 = arith.negf %129 : vector<8x128xf32>
    %131 = math.exp %130 : vector<8x128xf32>
    %cst_31 = arith.constant 1.000000e+00 : f32
    %132 = vector.broadcast %cst_31 : f32 to vector<8x128xf32>
    %133 = arith.addf %132, %131 : vector<8x128xf32>
    %134 = arith.divf %132, %133 : vector<8x128xf32>
    %135 = arith.addf %124, %127 : vector<8x128xf32>
    %136 = arith.negf %135 : vector<8x128xf32>
    %137 = math.exp %136 : vector<8x128xf32>
    %cst_32 = arith.constant 1.000000e+00 : f32
    %138 = vector.broadcast %cst_32 : f32 to vector<8x128xf32>
    %139 = arith.addf %138, %137 : vector<8x128xf32>
    %140 = arith.divf %138, %139 : vector<8x128xf32>
    %141 = arith.addf %128, %6 : vector<8x128xf32>
    %142 = arith.mulf %134, %141 : vector<8x128xf32>
    %143 = arith.addf %125, %142 : vector<8x128xf32>
    %144 = math.tanh %143 : vector<8x128xf32>
    %145 = arith.subf %111, %144 : vector<8x128xf32>
    %146 = arith.mulf %140, %145 : vector<8x128xf32>
    %147 = arith.addf %144, %146 : vector<8x128xf32>
    %148 = arith.addi %8, %c3_i32 : i32
    %c1_i32_33 = arith.constant 1 : i32
    %149 = arith.addi %148, %c1_i32_33 : i32
    %150 = vector.broadcast %149 : i32 to vector<8x1xi32>
    %151 = arith.cmpi sle, %150, %7 : vector<8x1xi32>
    %152 = vector.shape_cast %151 : vector<8x1xi1> to vector<8x1xi1>
    %153 = vector.broadcast %152 : vector<8x1xi1> to vector<8x128xi1>
    %154 = arith.select %153, %147, %118 : vector<8x128xi1>, vector<8x128xf32>
    %c4_i32 = arith.constant 4 : i32
    %155 = arith.index_cast %c4_i32 : i32 to index
    %c0_34 = arith.constant 0 : index
    %c0_35 = arith.constant 0 : index
    %156 = vector.load %arg2[%155, %c0_34, %c0_35] : memref<8x8x384xf32, #tpu.memory_space<vmem>>, vector<1x8x384xf32>
    %157 = vector.shape_cast %156 : vector<1x8x384xf32> to vector<8x384xf32>
    %cst_36 = arith.constant dense<0.000000e+00> : vector<8x384xf32>
    %158 = tpu.matmul %147, %3, %cst_36 {dimension_numbers = #tpu.dot_dimension_numbers<[1], [0], [0], [1], [0, 0, 1, 1], [], []>} : vector<8x128xf32>, vector<128x384xf32>, vector<8x384xf32> -> vector<8x384xf32>
    %159 = vector.extract_strided_slice %157 {offsets = [0, 0], sizes = [8, 128], strides = [1, 1]} : vector<8x384xf32> to vector<8x128xf32>
    %160 = vector.extract_strided_slice %157 {offsets = [0, 128], sizes = [8, 128], strides = [1, 1]} : vector<8x384xf32> to vector<8x128xf32>
    %161 = vector.extract_strided_slice %157 {offsets = [0, 256], sizes = [8, 128], strides = [1, 1]} : vector<8x384xf32> to vector<8x128xf32>
    %162 = vector.extract_strided_slice %158 {offsets = [0, 0], sizes = [8, 128], strides = [1, 1]} : vector<8x384xf32> to vector<8x128xf32>
    %163 = vector.extract_strided_slice %158 {offsets = [0, 128], sizes = [8, 128], strides = [1, 1]} : vector<8x384xf32> to vector<8x128xf32>
    %164 = vector.extract_strided_slice %158 {offsets = [0, 256], sizes = [8, 128], strides = [1, 1]} : vector<8x384xf32> to vector<8x128xf32>
    %165 = arith.addf %159, %162 : vector<8x128xf32>
    %166 = arith.negf %165 : vector<8x128xf32>
    %167 = math.exp %166 : vector<8x128xf32>
    %cst_37 = arith.constant 1.000000e+00 : f32
    %168 = vector.broadcast %cst_37 : f32 to vector<8x128xf32>
    %169 = arith.addf %168, %167 : vector<8x128xf32>
    %170 = arith.divf %168, %169 : vector<8x128xf32>
    %171 = arith.addf %160, %163 : vector<8x128xf32>
    %172 = arith.negf %171 : vector<8x128xf32>
    %173 = math.exp %172 : vector<8x128xf32>
    %cst_38 = arith.constant 1.000000e+00 : f32
    %174 = vector.broadcast %cst_38 : f32 to vector<8x128xf32>
    %175 = arith.addf %174, %173 : vector<8x128xf32>
    %176 = arith.divf %174, %175 : vector<8x128xf32>
    %177 = arith.addf %164, %6 : vector<8x128xf32>
    %178 = arith.mulf %170, %177 : vector<8x128xf32>
    %179 = arith.addf %161, %178 : vector<8x128xf32>
    %180 = math.tanh %179 : vector<8x128xf32>
    %181 = arith.subf %147, %180 : vector<8x128xf32>
    %182 = arith.mulf %176, %181 : vector<8x128xf32>
    %183 = arith.addf %180, %182 : vector<8x128xf32>
    %184 = arith.addi %8, %c4_i32 : i32
    %c1_i32_39 = arith.constant 1 : i32
    %185 = arith.addi %184, %c1_i32_39 : i32
    %186 = vector.broadcast %185 : i32 to vector<8x1xi32>
    %187 = arith.cmpi sle, %186, %7 : vector<8x1xi32>
    %188 = vector.shape_cast %187 : vector<8x1xi1> to vector<8x1xi1>
    %189 = vector.broadcast %188 : vector<8x1xi1> to vector<8x128xi1>
    %190 = arith.select %189, %183, %154 : vector<8x128xi1>, vector<8x128xf32>
    %c5_i32 = arith.constant 5 : i32
    %191 = arith.index_cast %c5_i32 : i32 to index
    %c0_40 = arith.constant 0 : index
    %c0_41 = arith.constant 0 : index
    %192 = vector.load %arg2[%191, %c0_40, %c0_41] : memref<8x8x384xf32, #tpu.memory_space<vmem>>, vector<1x8x384xf32>
    %193 = vector.shape_cast %192 : vector<1x8x384xf32> to vector<8x384xf32>
    %cst_42 = arith.constant dense<0.000000e+00> : vector<8x384xf32>
    %194 = tpu.matmul %183, %3, %cst_42 {dimension_numbers = #tpu.dot_dimension_numbers<[1], [0], [0], [1], [0, 0, 1, 1], [], []>} : vector<8x128xf32>, vector<128x384xf32>, vector<8x384xf32> -> vector<8x384xf32>
    %195 = vector.extract_strided_slice %193 {offsets = [0, 0], sizes = [8, 128], strides = [1, 1]} : vector<8x384xf32> to vector<8x128xf32>
    %196 = vector.extract_strided_slice %193 {offsets = [0, 128], sizes = [8, 128], strides = [1, 1]} : vector<8x384xf32> to vector<8x128xf32>
    %197 = vector.extract_strided_slice %193 {offsets = [0, 256], sizes = [8, 128], strides = [1, 1]} : vector<8x384xf32> to vector<8x128xf32>
    %198 = vector.extract_strided_slice %194 {offsets = [0, 0], sizes = [8, 128], strides = [1, 1]} : vector<8x384xf32> to vector<8x128xf32>
    %199 = vector.extract_strided_slice %194 {offsets = [0, 128], sizes = [8, 128], strides = [1, 1]} : vector<8x384xf32> to vector<8x128xf32>
    %200 = vector.extract_strided_slice %194 {offsets = [0, 256], sizes = [8, 128], strides = [1, 1]} : vector<8x384xf32> to vector<8x128xf32>
    %201 = arith.addf %195, %198 : vector<8x128xf32>
    %202 = arith.negf %201 : vector<8x128xf32>
    %203 = math.exp %202 : vector<8x128xf32>
    %cst_43 = arith.constant 1.000000e+00 : f32
    %204 = vector.broadcast %cst_43 : f32 to vector<8x128xf32>
    %205 = arith.addf %204, %203 : vector<8x128xf32>
    %206 = arith.divf %204, %205 : vector<8x128xf32>
    %207 = arith.addf %196, %199 : vector<8x128xf32>
    %208 = arith.negf %207 : vector<8x128xf32>
    %209 = math.exp %208 : vector<8x128xf32>
    %cst_44 = arith.constant 1.000000e+00 : f32
    %210 = vector.broadcast %cst_44 : f32 to vector<8x128xf32>
    %211 = arith.addf %210, %209 : vector<8x128xf32>
    %212 = arith.divf %210, %211 : vector<8x128xf32>
    %213 = arith.addf %200, %6 : vector<8x128xf32>
    %214 = arith.mulf %206, %213 : vector<8x128xf32>
    %215 = arith.addf %197, %214 : vector<8x128xf32>
    %216 = math.tanh %215 : vector<8x128xf32>
    %217 = arith.subf %183, %216 : vector<8x128xf32>
    %218 = arith.mulf %212, %217 : vector<8x128xf32>
    %219 = arith.addf %216, %218 : vector<8x128xf32>
    %220 = arith.addi %8, %c5_i32 : i32
    %c1_i32_45 = arith.constant 1 : i32
    %221 = arith.addi %220, %c1_i32_45 : i32
    %222 = vector.broadcast %221 : i32 to vector<8x1xi32>
    %223 = arith.cmpi sle, %222, %7 : vector<8x1xi32>
    %224 = vector.shape_cast %223 : vector<8x1xi1> to vector<8x1xi1>
    %225 = vector.broadcast %224 : vector<8x1xi1> to vector<8x128xi1>
    %226 = arith.select %225, %219, %190 : vector<8x128xi1>, vector<8x128xf32>
    %c6_i32 = arith.constant 6 : i32
    %227 = arith.index_cast %c6_i32 : i32 to index
    %c0_46 = arith.constant 0 : index
    %c0_47 = arith.constant 0 : index
    %228 = vector.load %arg2[%227, %c0_46, %c0_47] : memref<8x8x384xf32, #tpu.memory_space<vmem>>, vector<1x8x384xf32>
    %229 = vector.shape_cast %228 : vector<1x8x384xf32> to vector<8x384xf32>
    %cst_48 = arith.constant dense<0.000000e+00> : vector<8x384xf32>
    %230 = tpu.matmul %219, %3, %cst_48 {dimension_numbers = #tpu.dot_dimension_numbers<[1], [0], [0], [1], [0, 0, 1, 1], [], []>} : vector<8x128xf32>, vector<128x384xf32>, vector<8x384xf32> -> vector<8x384xf32>
    %231 = vector.extract_strided_slice %229 {offsets = [0, 0], sizes = [8, 128], strides = [1, 1]} : vector<8x384xf32> to vector<8x128xf32>
    %232 = vector.extract_strided_slice %229 {offsets = [0, 128], sizes = [8, 128], strides = [1, 1]} : vector<8x384xf32> to vector<8x128xf32>
    %233 = vector.extract_strided_slice %229 {offsets = [0, 256], sizes = [8, 128], strides = [1, 1]} : vector<8x384xf32> to vector<8x128xf32>
    %234 = vector.extract_strided_slice %230 {offsets = [0, 0], sizes = [8, 128], strides = [1, 1]} : vector<8x384xf32> to vector<8x128xf32>
    %235 = vector.extract_strided_slice %230 {offsets = [0, 128], sizes = [8, 128], strides = [1, 1]} : vector<8x384xf32> to vector<8x128xf32>
    %236 = vector.extract_strided_slice %230 {offsets = [0, 256], sizes = [8, 128], strides = [1, 1]} : vector<8x384xf32> to vector<8x128xf32>
    %237 = arith.addf %231, %234 : vector<8x128xf32>
    %238 = arith.negf %237 : vector<8x128xf32>
    %239 = math.exp %238 : vector<8x128xf32>
    %cst_49 = arith.constant 1.000000e+00 : f32
    %240 = vector.broadcast %cst_49 : f32 to vector<8x128xf32>
    %241 = arith.addf %240, %239 : vector<8x128xf32>
    %242 = arith.divf %240, %241 : vector<8x128xf32>
    %243 = arith.addf %232, %235 : vector<8x128xf32>
    %244 = arith.negf %243 : vector<8x128xf32>
    %245 = math.exp %244 : vector<8x128xf32>
    %cst_50 = arith.constant 1.000000e+00 : f32
    %246 = vector.broadcast %cst_50 : f32 to vector<8x128xf32>
    %247 = arith.addf %246, %245 : vector<8x128xf32>
    %248 = arith.divf %246, %247 : vector<8x128xf32>
    %249 = arith.addf %236, %6 : vector<8x128xf32>
    %250 = arith.mulf %242, %249 : vector<8x128xf32>
    %251 = arith.addf %233, %250 : vector<8x128xf32>
    %252 = math.tanh %251 : vector<8x128xf32>
    %253 = arith.subf %219, %252 : vector<8x128xf32>
    %254 = arith.mulf %248, %253 : vector<8x128xf32>
    %255 = arith.addf %252, %254 : vector<8x128xf32>
    %256 = arith.addi %8, %c6_i32 : i32
    %c1_i32_51 = arith.constant 1 : i32
    %257 = arith.addi %256, %c1_i32_51 : i32
    %258 = vector.broadcast %257 : i32 to vector<8x1xi32>
    %259 = arith.cmpi sle, %258, %7 : vector<8x1xi32>
    %260 = vector.shape_cast %259 : vector<8x1xi1> to vector<8x1xi1>
    %261 = vector.broadcast %260 : vector<8x1xi1> to vector<8x128xi1>
    %262 = arith.select %261, %255, %226 : vector<8x128xi1>, vector<8x128xf32>
    %c7_i32 = arith.constant 7 : i32
    %263 = arith.index_cast %c7_i32 : i32 to index
    %c0_52 = arith.constant 0 : index
    %c0_53 = arith.constant 0 : index
    %264 = vector.load %arg2[%263, %c0_52, %c0_53] : memref<8x8x384xf32, #tpu.memory_space<vmem>>, vector<1x8x384xf32>
    %265 = vector.shape_cast %264 : vector<1x8x384xf32> to vector<8x384xf32>
    %cst_54 = arith.constant dense<0.000000e+00> : vector<8x384xf32>
    %266 = tpu.matmul %255, %3, %cst_54 {dimension_numbers = #tpu.dot_dimension_numbers<[1], [0], [0], [1], [0, 0, 1, 1], [], []>} : vector<8x128xf32>, vector<128x384xf32>, vector<8x384xf32> -> vector<8x384xf32>
    %267 = vector.extract_strided_slice %265 {offsets = [0, 0], sizes = [8, 128], strides = [1, 1]} : vector<8x384xf32> to vector<8x128xf32>
    %268 = vector.extract_strided_slice %265 {offsets = [0, 128], sizes = [8, 128], strides = [1, 1]} : vector<8x384xf32> to vector<8x128xf32>
    %269 = vector.extract_strided_slice %265 {offsets = [0, 256], sizes = [8, 128], strides = [1, 1]} : vector<8x384xf32> to vector<8x128xf32>
    %270 = vector.extract_strided_slice %266 {offsets = [0, 0], sizes = [8, 128], strides = [1, 1]} : vector<8x384xf32> to vector<8x128xf32>
    %271 = vector.extract_strided_slice %266 {offsets = [0, 128], sizes = [8, 128], strides = [1, 1]} : vector<8x384xf32> to vector<8x128xf32>
    %272 = vector.extract_strided_slice %266 {offsets = [0, 256], sizes = [8, 128], strides = [1, 1]} : vector<8x384xf32> to vector<8x128xf32>
    %273 = arith.addf %267, %270 : vector<8x128xf32>
    %274 = arith.negf %273 : vector<8x128xf32>
    %275 = math.exp %274 : vector<8x128xf32>
    %cst_55 = arith.constant 1.000000e+00 : f32
    %276 = vector.broadcast %cst_55 : f32 to vector<8x128xf32>
    %277 = arith.addf %276, %275 : vector<8x128xf32>
    %278 = arith.divf %276, %277 : vector<8x128xf32>
    %279 = arith.addf %268, %271 : vector<8x128xf32>
    %280 = arith.negf %279 : vector<8x128xf32>
    %281 = math.exp %280 : vector<8x128xf32>
    %cst_56 = arith.constant 1.000000e+00 : f32
    %282 = vector.broadcast %cst_56 : f32 to vector<8x128xf32>
    %283 = arith.addf %282, %281 : vector<8x128xf32>
    %284 = arith.divf %282, %283 : vector<8x128xf32>
    %285 = arith.addf %272, %6 : vector<8x128xf32>
    %286 = arith.mulf %278, %285 : vector<8x128xf32>
    %287 = arith.addf %269, %286 : vector<8x128xf32>
    %288 = math.tanh %287 : vector<8x128xf32>
    %289 = arith.subf %255, %288 : vector<8x128xf32>
    %290 = arith.mulf %284, %289 : vector<8x128xf32>
    %291 = arith.addf %288, %290 : vector<8x128xf32>
    %292 = arith.addi %8, %c7_i32 : i32
    %c1_i32_57 = arith.constant 1 : i32
    %293 = arith.addi %292, %c1_i32_57 : i32
    %294 = vector.broadcast %293 : i32 to vector<8x1xi32>
    %295 = arith.cmpi sle, %294, %7 : vector<8x1xi32>
    %296 = vector.shape_cast %295 : vector<8x1xi1> to vector<8x1xi1>
    %297 = vector.broadcast %296 : vector<8x1xi1> to vector<8x128xi1>
    %298 = arith.select %297, %291, %262 : vector<8x128xi1>, vector<8x128xf32>
    %c8_i32_58 = arith.constant 8 : i32
    %c0_59 = arith.constant 0 : index
    %c0_60 = arith.constant 0 : index
    %299 = vector.load %arg7[%c0_59, %c0_60] : memref<8x128xf32, #tpu.memory_space<vmem>>, vector<8x128xf32>
    tpu.vector_store %arg7[%c0_59, %c0_60], %291 {strides = array<i32>} : memref<8x128xf32, #tpu.memory_space<vmem>>, vector<8x128xf32>,
    %c0_61 = arith.constant 0 : index
    %c0_62 = arith.constant 0 : index
    %300 = vector.load %arg6[%c0_61, %c0_62] : memref<8x128xf32, #tpu.memory_space<vmem>>, vector<8x128xf32>
    tpu.vector_store %arg6[%c0_61, %c0_62], %298 {strides = array<i32>} : memref<8x128xf32, #tpu.memory_space<vmem>>, vector<8x128xf32>,
    return
  }
  func.func @transform_0(%arg0: i32, %arg1: i32) -> (i32, i32, i32) {
    %c0_i32 = arith.constant 0 : i32
    %c0_i32_0 = arith.constant 0 : i32
    return %arg1, %arg0, %c0_i32 : i32, i32, i32
  }
  func.func @transform_1(%arg0: i32, %arg1: i32) -> (i32, i32) {
    %c0_i32 = arith.constant 0 : i32
    %c0_i32_0 = arith.constant 0 : i32
    %c0_i32_1 = arith.constant 0 : i32
    return %c0_i32, %c0_i32_0 : i32, i32
  }
  func.func @transform_2(%arg0: i32, %arg1: i32) -> (i32, i32) {
    %c0_i32 = arith.constant 0 : i32
    %c0_i32_0 = arith.constant 0 : i32
    %c0_i32_1 = arith.constant 0 : i32
    return %c0_i32, %c0_i32_0 : i32, i32
  }
  func.func @transform_3(%arg0: i32, %arg1: i32) -> (i32, i32) {
    %c0_i32 = arith.constant 0 : i32
    %c0_i32_0 = arith.constant 0 : i32
    return %arg0, %c0_i32 : i32, i32
  }
  func.func @transform_4(%arg0: i32, %arg1: i32) -> (i32, i32) {
    %c0_i32 = arith.constant 0 : i32
    %c0_i32_0 = arith.constant 0 : i32
    return %arg0, %c0_i32 : i32, i32
  }
}

</mosaic_0001>

<bundles_post_ra>
// kernel: tpu_custom_call.1
= control target key start
LH: loop header
LB: loop body
LE: loop exit
PB: predicated region body
PF: predicated region fallthrough
CT: control target
= control target key end

     0   :  { %9 = vsyncpa [#allocation4], 0  ;;  %s3052_s0 = inlined_call_operand.hbm [shape: f32[8,8,384], index: 0, kind: input, shape index: {}]   ;;  %s3053_s1 = inlined_call_operand.hbm [shape: f32[128,384], index: 1, kind: input, shape index: {}]   ;;  %s3054_s2 = inlined_call_operand.vmem [shape: f32[1,128], index: 2, kind: input, shape index: {}]   ;;  %s3055_s3 = inlined_call_operand.vmem [shape: s32[8,1], index: 3, kind: input, shape index: {}]   ;;  %s3056_s4 = inlined_call_operand.hbm [shape: f32[8,128], index: 4, kind: output, shape index: {}]  }
   0x1   :  { %10 = vsyncpa [#allocation7], 0 }
   0x2   :  { %11 = vsyncpa [#allocation5], 0  ;;  %s2580_s15 = smov [#allocation3]   ;;  %s2508_s19 = scalar_lea.hbm %s3052_s0, 3072 }
   0x3   :  { %s17_s16 = sshll.u32 %s2580_s15, 4  ;;  %p2509_p0 = scmp.ne.s32.totalorder %s3052_s0, %s2508_s19  ;;  %s18_s16 = int_to_ptr.vmem [resolvable:$true] %s17_s16 }
   0x4   :  { %p2512_p1 = scmp.lt.u32.totalorder %s2508_s19, %s3052_s0 }
   0x6   :  { %p2514_p2 = pnand %p2512_p1, %p2509_p0 }
   0x8   :  { %2517 = shalt.err (!%p2514_p2)
}
   0x9   :  { %s2518_s24 = scalar_lea.vmem %s18_s16, 3072  ;;  %p2523_p4 = scmp.lt.s32.totalorder %s18_s16, %s18_s16 }
   0xa   :  { %p2519_p3 = scmp.ne.s32.totalorder %s18_s16, %s2518_s24  ;;  %p2524_p5 = scmp.lt.s32.totalorder %s2518_s24, %s2518_s24 }
   0xc   :  { %p2525_p6 = por %p2524_p5, %p2523_p4 }
   0xe   :  { %p2526_p7 = pnand %p2525_p6, %p2519_p3 }
  0x10   :  { %2529 = shalt.err (!%p2526_p7)
}
  0x11   :  { %s2581_s25 = smov 384   ;;  %s2582_s26 = smov 24  }
  0x12   :  { %23 = dma.hbm_to_vmem [thread:$0]  %s3052_s0, 3072, %s18_s16, [#allocation4], %s2581_s25, %s2581_s25, %s2582_s26  }
  0x13   :  { %s2583_s29 = smov [#allocation6]   ;;  %s2530_s7 = scalar_lea.hbm %s3053_s1, 6144 }
  0x14   :  { %s29_s30 = sshll.u32 %s2583_s29, 4  ;;  %p2531_p8 = scmp.ne.s32.totalorder %s3053_s1, %s2530_s7  ;;  %s30_s30 = int_to_ptr.vmem [resolvable:$true] %s29_s30 }
  0x15   :  { %p2534_p9 = scmp.lt.u32.totalorder %s2530_s7, %s3053_s1 }
  0x17   :  { %p2536_p10 = pnand %p2534_p9, %p2531_p8 }
  0x19   :  { %2539 = shalt.err (!%p2536_p10)
}
  0x1a   :  { %s2540_s12 = scalar_lea.vmem %s30_s30, 6144  ;;  %p2545_p12 = scmp.lt.s32.totalorder %s30_s30, %s30_s30 }
  0x1b   :  { %p2541_p11 = scmp.ne.s32.totalorder %s30_s30, %s2540_s12  ;;  %p2546_p13 = scmp.lt.s32.totalorder %s2540_s12, %s2540_s12 }
  0x1d   :  { %p2547_p0 = por %p2546_p13, %p2545_p12 }
  0x1f   :  { %p2548_p1 = pnand %p2547_p0, %p2541_p11 }
  0x21   :  { %2551 = shalt.err (!%p2548_p1)
}
  0x22   :  { %35 = dma.hbm_to_vmem [thread:$0]  %s3053_s1, 6144, %s30_s30, [#allocation7], %s2581_s25, %s2581_s25, %s2582_s26  }
  0x23   :  { %2574 = dma.done.wait [#allocation4], 3072  }
  0x24   :  { %2575 = vsyncadd [#allocation4], 4294964224 }
  0x25   :  { %2576 = dma.done.wait [#allocation7], 6144  }
  0x26   :  { %2577 = vsyncadd [#allocation7], 4294961152  ;;  %v2584_v0 = vmov 0.0|0.0   ;;  %v2585_v1 = vmov 0.0   ;;  %vm2586_vm0 = vmmov 0   ;;  %v2587_v2 = vmov 0  }
  0x27   :  { %2001 = vmatprep.subr.bf16.mxu1 %v2584_v0  ;;  %178 = vmatprep.mubr.f32.mxu0 %v2585_v1  ;;  %v53_v3 = vld [vmem:[#allocation6 + $0x8] sm:$0xff]  ;;  %v56_v4 = vld [vmem:[#allocation6 + $0x20] sm:$0xff]  ;;  %v55_v7 = vld [vmem:[#allocation6 + $0x18] sm:$0xff] }
  0x28   :  { %1721 = vmatprep.mubr.msk.f32.mxu1 %vm2586_vm0, %v2585_v1  ;;  %2426 = vset.pattern.permute.xlu0 %v2587_v2  ;;  %v52_v5 = vld [vmem:[#allocation6] sm:$0xff]  ;;  %v2644_v6 = vpack.c.bf16 %v56_v4, %v53_v3  ;;  %v59_v8 = vld [vmem:[#allocation6 + $0x38] sm:$0xff]  ;;  %v62_v9 = vld [vmem:[#allocation6 + $0x50] sm:$0xff] }
  0x29   :  { %2427 = vset.pattern.permute.xlu1 %v2587_v2  ;;  %v2646_v10 = vpack.c.bf16 %v55_v7, %v52_v5  ;;  %v2648_v11 = vpack.c.bf16 %v62_v9, %v59_v8  ;;  %v58_v12 = vld [vmem:[#allocation6 + $0x30] sm:$0xff]  ;;  %v61_v13 = vld [vmem:[#allocation6 + $0x48] sm:$0xff]  ;;  %v68_v15 = vld [vmem:[#allocation6 + $0x80] sm:$0xff] }
  0x2a   :  { %v65_v14 = vld [vmem:[#allocation6 + $0x68] sm:$0xff]  ;;  %1970 = vmatprep.subr.bf16.mxu0 %v2644_v6  ;;  %v2652_v16 = vpack.c.bf16 %v61_v13, %v58_v12  ;;  %v64_v18 = vld [vmem:[#allocation6 + $0x60] sm:$0xff]  ;;  %v67_v19 = vld [vmem:[#allocation6 + $0x78] sm:$0xff] }
  0x2b   :  { %1972 = vmatpush1.bf16.msra.mxu0 %v2646_v10  ;;  %v2655_v17 = vpack.c.bf16 %v68_v15, %v65_v14  ;;  %v71_v20 = vld [vmem:[#allocation6 + $0x98] sm:$0xff]  ;;  %v74_v21 = vld [vmem:[#allocation6 + $0xb0] sm:$0xff]  ;;  %v2658_v22 = vpack.c.bf16 %v67_v19, %v64_v18  ;;  %v73_v25 = vld [vmem:[#allocation6 + $0xa8] sm:$0xff] }
  0x2c   :  { %1974 = vmatprep.subr.bf16.mxu0 %v2648_v11  ;;  %v70_v23 = vld [vmem:[#allocation6 + $0x90] sm:$0xff]  ;;  %v2661_v24 = vpack.c.bf16 %v74_v21, %v71_v20  ;;  %v57_v27 = vld [vmem:[#allocation6 + $0x28] sm:$0xff]  ;;  %v80_v29 = vld [vmem:[#allocation6 + $0xe0] sm:$0xff] }
  0x2d   :  { %v54_v26 = vld [vmem:[#allocation6 + $0x10] sm:$0xff]  ;;  %v77_v28 = vld [vmem:[#allocation6 + $0xc8] sm:$0xff]  ;;  %v60_v31 = vld [vmem:[#allocation6 + $0x40] sm:$0xff]  ;;  %v2666_v33 = vpack.c.bf16 %v73_v25, %v70_v23 }
  0x2e   :  { %v2663_v30 = vpack.c.bf16 %v57_v27, %v54_v26  ;;  %v63_v32 = vld [vmem:[#allocation6 + $0x58] sm:$0xff]  ;;  %v76_v34 = vld [vmem:[#allocation6 + $0xc0] sm:$0xff]  ;;  %v2672_v36 = vpack.c.bf16 %v80_v29, %v77_v28  ;;  %v66_v38 = vld [vmem:[#allocation6 + $0x70] sm:$0xff] }
  0x2f   :  { %1976 = vmatpush1.bf16.msra.mxu0 %v2652_v16  ;;  %v2669_v35 = vpack.c.bf16 %v63_v32, %v60_v31  ;;  %v79_v37 = vld [vmem:[#allocation6 + $0xd8] sm:$0xff]  ;;  %v69_v39 = vld [vmem:[#allocation6 + $0x88] sm:$0xff]  ;;  %v86_v41 = vld [vmem:[#allocation6 + $0x110] sm:$0xff] }
  0x30   :  { %1978 = vmatprep.subr.bf16.mxu0 %v2655_v17  ;;  %2003 = vmatpush3.bf16.msra.mxu1 %v2663_v30  ;;  %v83_v40 = vld [vmem:[#allocation6 + $0xf8] sm:$0xff]  ;;  %v2676_v42 = vpack.c.bf16 %v79_v37, %v76_v34  ;;  %v82_v43 = vld [vmem:[#allocation6 + $0xf0] sm:$0xff]  ;;  %v2679_v44 = vpack.c.bf16 %v69_v39, %v66_v38  ;;  %v2684_v45 = vld [vmem:[%s3055_s3] sm:$0xff] }
  0x31   :  { %2004 = vmatprep.subr.bf16.mxu1 %v2584_v0  ;;  %v2687_v46 = vpack.c.bf16 %v86_v41, %v83_v40  ;;  %v85_v47 = vld [vmem:[#allocation6 + $0x108] sm:$0xff]  ;;  %v72_v48 = vld [vmem:[#allocation6 + $0xa0] sm:$0xff]  ;;  %v75_v49 = vld [vmem:[#allocation6 + $0xb8] sm:$0xff]  ;;  %vm1531_vm1 = vcmp.ge.s32.totalorder %v2684_v45, 1  ;;  %vm1534_vm2 = vcmp.ge.s32.totalorder %v2684_v45, 2  ;;  %vm1537_vm3 = vcmp.ge.s32.totalorder %v2684_v45, 3 }
  0x32   :  { %v89_v50 = vld [vmem:[#allocation6 + $0x128] sm:$0xff]  ;;  %v92_v51 = vld [vmem:[#allocation6 + $0x140] sm:$0xff]  ;;  %v279_v52 = vsel %vm1531_vm1, 1, %v2587_v2  ;;  %v2693_v53 = vpack.c.bf16 %v85_v47, %v82_v43  ;;  %v2696_v55 = vpack.c.bf16 %v75_v49, %v72_v48  ;;  %v91_v57 = vld [vmem:[#allocation6 + $0x138] sm:$0xff]  ;;  %v454_v21 = vsel %vm1534_vm2, 1, %v2587_v2 }
  0x33   :  { %1980 = vmatpush1.bf16.msra.mxu0 %v2658_v22  ;;  %281 = vperm.xlu0 %2426, %v279_v52   ;;  %v88_v54 = vld [vmem:[#allocation6 + $0x120] sm:$0xff]  ;;  %v2699_v56 = vpack.c.bf16 %v92_v51, %v89_v50  ;;  %v78_v58 = vld [vmem:[#allocation6 + $0xd0] sm:$0xff]  ;;  %v81_v59 = vld [vmem:[#allocation6 + $0xe8] sm:$0xff]  ;;  %vm1540_vm4 = vcmp.ge.s32.totalorder %v2684_v45, 4  ;;  %vm1543_vm5 = vcmp.ge.s32.totalorder %v2684_v45, 5  ;;  %vm1546_vm6 = vcmp.ge.s32.totalorder %v2684_v45, 6 }
  0x34   :  { %1982 = vmatprep.subr.bf16.mxu0 %v2661_v24  ;;  %2006 = vmatpush3.bf16.msra.mxu1 %v2669_v35  ;;  %v95_v60 = vld [vmem:[#allocation6 + $0x158] sm:$0xff]  ;;  %v98_v61 = vld [vmem:[#allocation6 + $0x170] sm:$0xff]  ;;  %v2703_v62 = vpack.c.bf16 %v91_v57, %v88_v54  ;;  %v2706_v3 = vpack.c.bf16 %v81_v59, %v78_v58  ;;  %v97_v5 = vld [vmem:[#allocation6 + $0x168] sm:$0xff]  ;;  %vm1549_vm7 = vcmp.ge.s32.totalorder %v2684_v45, 7  ;;  %vm1552_vm8 = vcmp.ge.s32.totalorder %v2684_v45, 8 }
  0x35   :  { %2007 = vmatprep.subr.bf16.mxu1 %v2584_v0  ;;  %v94_v63 = vld [vmem:[#allocation6 + $0x150] sm:$0xff]  ;;  %v2709_v4 = vpack.c.bf16 %v98_v61, %v95_v60  ;;  %v84_v7 = vld [vmem:[#allocation6 + $0x100] sm:$0xff]  ;;  %v87_v8 = vld [vmem:[#allocation6 + $0x118] sm:$0xff]  ;;  %v629_v60 = vsel %vm1537_vm3, 1, %v2587_v2 }
  0x36   :  { %v2713_v9 = vpack.c.bf16 %v97_v5, %v94_v63  ;;  %v2716_v12 = vpack.c.bf16 %v87_v8, %v84_v7  ;;  %v90_v13 = vld [vmem:[#allocation6 + $0x130] sm:$0xff]  ;;  %v93_v14 = vld [vmem:[#allocation6 + $0x148] sm:$0xff]  ;;  %v96_v18 = vld [vmem:[#allocation6 + $0x160] sm:$0xff]  ;;  %631 = vperm.xlu1 %2427, %v629_v60  }
  0x37   :  { %1984 = vmatpush1.bf16.msra.mxu0 %v2666_v33  ;;  %v2722_v15 = vpack.c.bf16 %v93_v14, %v90_v13  ;;  %v99_v19 = vld [vmem:[#allocation6 + $0x178] sm:$0xff]  ;;  %456 = vperm.xlu0 %2426, %v454_v21   ;;  %v111_v23 = vld [vmem:[#allocation3] sm:$0xff]  ;;  %v112_v29 = vld [vmem:[#allocation3 + $0x8] sm:$0xff] }
  0x38   :  { %1986 = vmatprep.subr.bf16.mxu0 %v2672_v36  ;;  %2009 = vmatpush3.bf16.msra.mxu1 %v2679_v44  ;;  %v2728_v20 = vpack.c.bf16 %v99_v19, %v96_v18  ;;  %v2774_v40 = vld [vmem:[%s3054_s2] ss:$0 sm:$0xff]  ;;  %v113_v48 = vld [vmem:[#allocation3 + $0x10] sm:$0xff]  ;;  %v286_v61 = vld [vmem:[#allocation3 + $0x18] sm:$0xff]  ;;  %s2588_s2 = smov [#allocation8]  }
  0x39   :  { %2010 = vmatprep.subr.bf16.mxu1 %v2584_v0  ;;  %v287_v18 = vld [vmem:[#allocation3 + $0x20] sm:$0xff]  ;;  %s1518_s16 = sshll.u32 %s2588_s2, 4  ;;  %s1519_s16 = int_to_ptr.vmem [resolvable:$true] %s1518_s16 }
  0x3a   :  { %s2552_s17 = scalar_lea.vmem %s1519_s16, 128  ;;  %p2557_p3 = scmp.lt.s32.totalorder %s1519_s16, %s1519_s16 }
  0x3b   :  { %1988 = vmatpush1.bf16.msra.mxu0 %v2676_v42  ;;  %p2553_p2 = scmp.ne.s32.totalorder %s1519_s16, %s2552_s17  ;;  %p2558_p4 = scmp.lt.s32.totalorder %s2552_s17, %s2552_s17 }
  0x3c   :  { %1990 = vmatprep.subr.bf16.mxu0 %v2687_v46  ;;  %2012 = vmatpush3.bf16.msra.mxu1 %v2696_v55 }
  0x3d   :  { %2013 = vmatprep.subr.bf16.mxu1 %v2584_v0  ;;  %p2559_p5 = por %p2558_p4, %p2557_p3 }
  0x3f   :  { %1992 = vmatpush1.bf16.msra.mxu0 %v2693_v53  ;;  %p2560_p6 = pnand %p2559_p5, %p2553_p2 }
  0x40   :  { %1994 = vmatprep.subr.bf16.mxu0 %v2699_v56  ;;  %2015 = vmatpush3.bf16.msra.mxu1 %v2706_v3 }
  0x41   :  { %2016 = vmatprep.subr.bf16.mxu1 %v2584_v0 }
  0x43   :  { %1996 = vmatpush1.bf16.msra.mxu0 %v2703_v62 }
  0x44   :  { %1998 = vmatprep.subr.bf16.mxu0 %v2709_v4  ;;  %2018 = vmatpush3.bf16.msra.mxu1 %v2716_v12 }
  0x45   :  { %2019 = vmatprep.subr.bf16.mxu1 %v2584_v0 }
  0x47   :  { %2000 = vmatpush1.bf16.msra.mxu0 %v2713_v9 }
  0x48   :  { %2026 = vmatprep.subr.bf16.mxu0 %v2644_v6  ;;  %2021 = vmatpush3.bf16.msra.mxu1 %v2722_v15 }
  0x49   :  { %2022 = vmatprep.subr.bf16.mxu1 %v2584_v0 }
  0x4a   :  { %179 = vmatmul.mubr.f32.vlgmr.msra.gmra.mrb[0].mxu0 %v2585_v1 }
  0x4b   :  { %2028 = vmatpush1.bf16.msra.mxu0 %v2646_v10  ;;  %353 = vmatprep.mubr.f32.mxu0 %v2585_v1 }
  0x4c   :  { %2030 = vmatprep.subr.bf16.mxu0 %v2648_v11  ;;  %2024 = vmatpush3.bf16.msra.mxu1 %v2728_v20 }
  0x4d   :  { %2057 = vmatprep.subr.bf16.mxu1 %v2584_v0 }
  0x4f   :  { %2032 = vmatpush1.bf16.msra.mxu0 %v2652_v16  ;;  %1722 = vmatmul.mubr.f32.vlgmr.msra.gmra.mrb[0].mxu1 %v2585_v1 }
  0x50   :  { %2034 = vmatprep.subr.bf16.mxu0 %v2655_v17  ;;  %2059 = vmatpush3.bf16.msra.mxu1 %v2663_v30 }
  0x51   :  { %2060 = vmatprep.subr.bf16.mxu1 %v2584_v0  ;;  %1756 = vmatprep.mubr.msk.f32.mxu1 %vm2586_vm0, %v2585_v1 }
  0x53   :  { %2036 = vmatpush1.bf16.msra.mxu0 %v2658_v22 }
  0x54   :  { %2038 = vmatprep.subr.bf16.mxu0 %v2661_v24  ;;  %2062 = vmatpush3.bf16.msra.mxu1 %v2669_v35 }
  0x55   :  { %2063 = vmatprep.subr.bf16.mxu1 %v2584_v0 }
  0x57   :  { %2040 = vmatpush1.bf16.msra.mxu0 %v2666_v33 }
  0x58   :  { %2042 = vmatprep.subr.bf16.mxu0 %v2672_v36  ;;  %2065 = vmatpush3.bf16.msra.mxu1 %v2679_v44 }
  0x59   :  { %2066 = vmatprep.subr.bf16.mxu1 %v2584_v0 }
  0x5b   :  { %2044 = vmatpush1.bf16.msra.mxu0 %v2676_v42 }
  0x5c   :  { %2046 = vmatprep.subr.bf16.mxu0 %v2687_v46  ;;  %2068 = vmatpush3.bf16.msra.mxu1 %v2696_v55 }
  0x5d   :  { %2069 = vmatprep.subr.bf16.mxu1 %v2584_v0 }
  0x5f   :  { %2048 = vmatpush1.bf16.msra.mxu0 %v2693_v53 }
  0x60   :  { %2050 = vmatprep.subr.bf16.mxu0 %v2699_v56  ;;  %2071 = vmatpush3.bf16.msra.mxu1 %v2706_v3 }
  0x61   :  { %2072 = vmatprep.subr.bf16.mxu1 %v2584_v0 }
  0x63   :  { %2052 = vmatpush1.bf16.msra.mxu0 %v2703_v62 }
  0x64   :  { %2054 = vmatprep.subr.bf16.mxu0 %v2709_v4  ;;  %2074 = vmatpush3.bf16.msra.mxu1 %v2716_v12 }
  0x65   :  { %2075 = vmatprep.subr.bf16.mxu1 %v2584_v0 }
  0x67   :  { %2056 = vmatpush1.bf16.msra.mxu0 %v2713_v9 }
  0x68   :  { %2082 = vmatprep.subr.bf16.mxu0 %v2644_v6  ;;  %2077 = vmatpush3.bf16.msra.mxu1 %v2722_v15 }
  0x69   :  { %2078 = vmatprep.subr.bf16.mxu1 %v2584_v0 }
  0x6c   :  { %2080 = vmatpush3.bf16.msra.mxu1 %v2728_v20 }
  0x6d   :  { %2113 = vmatprep.subr.bf16.mxu1 %v2584_v0 }
 0x11d   :  { %v180_v25 = vpop.f32.mrb[0].mxu0 }
 0x11e   :  { %v255_v26 = vadd.f32 %v180_v25, %v111_v23  ;;  %v182_v27 = vpop.f32.mrb[1].mxu0 }
 0x11f   :  { %v262_v32 = vadd.f32 %v182_v27, %v112_v29  ;;  %v288_v29 = vld [vmem:[#allocation3 + $0x28] sm:$0xff] }
 0x120   :  { %v1529_v28 = vmul.f32 -1.442695, %v255_v26 }
 0x121   :  { %v1530_v37 = vmul.f32 -1.442695, %v262_v32 }
 0x122   :  { %2428 = vpow2.f32 %v1529_v28  ;;  %v251_v31 = vpop.f32.mrb[0].mxu1 }
 0x123   :  { %v1723_v34 = vpop.f32.mrb[1].mxu1  ;;  %2430 = vpow2.f32 %v1530_v37  ;;  %v269_v41 = vadd.f32 %v2774_v40, %v251_v31 }
 0x12c   :  { %v2429_v38 = vpop.eup %2428 }
 0x12d   :  { %v259_v39 = vadd.f32 1.0, %v2429_v38  ;;  %v2431_v43 = vpop.eup %2430 }
 0x12e   :  { %v266_v50 = vadd.f32 1.0, %v2431_v43 }
 0x12f   :  { %2432 = vrcp.f32 %v259_v39 }
 0x139   :  { %v2433_v47 = vpop.eup %2432 }
 0x13a   :  { %v270_v49 = vmul.f32 %v2433_v47, %v269_v41  ;;  %v804_v47 = vsel %vm1540_vm4, 1, %v2587_v2 }
 0x13b   :  { %806 = vperm.xlu1 %2427, %v804_v47   ;;  %v637_v47 = vld [vmem:[#allocation3 + $0x50] sm:$0xff] }
 0x13c   :  { %v271_v51 = vadd.f32 %v270_v49, %v113_v48  ;;  %v461_v48 = vld [vmem:[#allocation3 + $0x30] sm:$0xff] }
 0x13e   :  { %2434 = vtanh.f32 %v271_v51 }
 0x13f   :  { %2436 = vrcp.f32 %v266_v50 }
 0x148   :  { %v2435_v52 = vpop.eup %2434 }
 0x149   :  { %v273_v54 = vsub.f32 0.0, %v2435_v52  ;;  %v2437_v57 = vpop.eup %2436 }
 0x14b   :  { %v274_v58 = vmul.f32 %v2437_v57, %v273_v54 }
 0x14d   :  { %v2777_v59 = vadd.f32 %v2435_v52, %v274_v58  ;;  %v462_v58 = vld [vmem:[#allocation3 + $0x38] sm:$0xff] }
 0x14f   :  { %354 = vmatmul.mubr.f32.vlgmr.msra.gmra.mrb[2].mxu0 %v2777_v59  ;;  %1757 = vmatmul.mubr.f32.vlgmr.msra.gmra.mrb[2].mxu1 %v2777_v59 }
 0x150   :  { %2084 = vmatpush1.bf16.msra.mxu0 %v2646_v10  ;;  %2115 = vmatpush3.bf16.msra.mxu1 %v2663_v30 }
 0x151   :  { %2086 = vmatprep.subr.bf16.mxu0 %v2648_v11  ;;  %2116 = vmatprep.subr.bf16.mxu1 %v2584_v0 }
 0x152   :  { %528 = vmatprep.mubr.f32.mxu0 %v2585_v1  ;;  %1791 = vmatprep.mubr.msk.f32.mxu1 %vm2586_vm0, %v2585_v1 }
 0x154   :  { %2088 = vmatpush1.bf16.msra.mxu0 %v2652_v16  ;;  %2118 = vmatpush3.bf16.msra.mxu1 %v2669_v35 }
 0x155   :  { %2090 = vmatprep.subr.bf16.mxu0 %v2655_v17  ;;  %2119 = vmatprep.subr.bf16.mxu1 %v2584_v0 }
 0x158   :  { %2092 = vmatpush1.bf16.msra.mxu0 %v2658_v22  ;;  %2121 = vmatpush3.bf16.msra.mxu1 %v2679_v44 }
 0x159   :  { %2094 = vmatprep.subr.bf16.mxu0 %v2661_v24  ;;  %2122 = vmatprep.subr.bf16.mxu1 %v2584_v0 }
 0x15c   :  { %2096 = vmatpush1.bf16.msra.mxu0 %v2666_v33  ;;  %2124 = vmatpush3.bf16.msra.mxu1 %v2696_v55 }
 0x15d   :  { %2098 = vmatprep.subr.bf16.mxu0 %v2672_v36  ;;  %2125 = vmatprep.subr.bf16.mxu1 %v2584_v0 }
 0x160   :  { %2100 = vmatpush1.bf16.msra.mxu0 %v2676_v42  ;;  %2127 = vmatpush3.bf16.msra.mxu1 %v2706_v3 }
 0x161   :  { %2102 = vmatprep.subr.bf16.mxu0 %v2687_v46  ;;  %2128 = vmatprep.subr.bf16.mxu1 %v2584_v0 }
 0x164   :  { %2104 = vmatpush1.bf16.msra.mxu0 %v2693_v53  ;;  %2130 = vmatpush3.bf16.msra.mxu1 %v2716_v12 }
 0x165   :  { %2106 = vmatprep.subr.bf16.mxu0 %v2699_v56  ;;  %2131 = vmatprep.subr.bf16.mxu1 %v2584_v0 }
 0x168   :  { %2108 = vmatpush1.bf16.msra.mxu0 %v2703_v62  ;;  %2133 = vmatpush3.bf16.msra.mxu1 %v2722_v15 }
 0x169   :  { %2110 = vmatprep.subr.bf16.mxu0 %v2709_v4  ;;  %2134 = vmatprep.subr.bf16.mxu1 %v2584_v0 }
 0x16c   :  { %2112 = vmatpush1.bf16.msra.mxu0 %v2713_v9  ;;  %2136 = vmatpush3.bf16.msra.mxu1 %v2728_v20 }
 0x16d   :  { %2138 = vmatprep.subr.bf16.mxu0 %v2644_v6  ;;  %2169 = vmatprep.subr.bf16.mxu1 %v2584_v0 }
 0x222   :  { %v355_v63 = vpop.f32.mrb[2].mxu0  ;;  %v426_v5 = vpop.f32.mrb[2].mxu1 }
 0x223   :  { %v430_v7 = vadd.f32 %v355_v63, %v286_v61  ;;  %v357_v8 = vpop.f32.mrb[3].mxu0  ;;  %v1758_v13 = vpop.f32.mrb[3].mxu1  ;;  %v444_v27 = vadd.f32 %v2774_v40, %v426_v5 }
 0x224   :  { %v437_v19 = vadd.f32 %v357_v8, %v287_v18 }
 0x225   :  { %v1532_v14 = vmul.f32 -1.442695, %v430_v7 }
 0x226   :  { %v1533_v21 = vmul.f32 -1.442695, %v437_v19 }
 0x227   :  { %2438 = vpow2.f32 %v1532_v14  ;;  %v463_v14 = vld [vmem:[#allocation3 + $0x40] sm:$0xff] }
 0x228   :  { %2440 = vpow2.f32 %v1533_v21 }
 0x231   :  { %v2439_v23 = vpop.eup %2438 }
 0x232   :  { %v434_v25 = vadd.f32 1.0, %v2439_v23  ;;  %v2441_v26 = vpop.eup %2440 }
 0x233   :  { %v441_v34 = vadd.f32 1.0, %v2441_v26 }
 0x234   :  { %2442 = vrcp.f32 %v434_v25 }
 0x23e   :  { %v2443_v28 = vpop.eup %2442 }
 0x23f   :  { %v445_v31 = vmul.f32 %v2443_v28, %v444_v27 }
 0x241   :  { %v446_v32 = vadd.f32 %v445_v31, %v288_v29  ;;  %v979_v29 = vsel %vm1543_vm5, 1, %v2587_v2  ;;  %v636_v31 = vld [vmem:[#allocation3 + $0x48] sm:$0xff] }
 0x242   :  { %981 = vperm.xlu0 %2426, %v979_v29  }
 0x243   :  { %2444 = vtanh.f32 %v446_v32 }
 0x244   :  { %2446 = vrcp.f32 %v441_v34 }
 0x24d   :  { %v2445_v37 = vpop.eup %2444 }
 0x24e   :  { %v448_v38 = vsub.f32 %v2777_v59, %v2445_v37  ;;  %v2447_v39 = vpop.eup %2446 }
 0x250   :  { %v449_v41 = vmul.f32 %v2447_v39, %v448_v38 }
 0x252   :  { %v2820_v43 = vadd.f32 %v2445_v37, %v449_v41 }
 0x254   :  { %529 = vmatmul.mubr.f32.vlgmr.msra.gmra.mrb[4].mxu0 %v2820_v43  ;;  %1792 = vmatmul.mubr.f32.vlgmr.msra.gmra.mrb[4].mxu1 %v2820_v43 }
 0x255   :  { %2140 = vmatpush1.bf16.msra.mxu0 %v2646_v10  ;;  %2171 = vmatpush3.bf16.msra.mxu1 %v2663_v30 }
 0x256   :  { %2142 = vmatprep.subr.bf16.mxu0 %v2648_v11  ;;  %2172 = vmatprep.subr.bf16.mxu1 %v2584_v0 }
 0x257   :  { %703 = vmatprep.mubr.f32.mxu0 %v2585_v1  ;;  %1826 = vmatprep.mubr.msk.f32.mxu1 %vm2586_vm0, %v2585_v1 }
 0x259   :  { %2144 = vmatpush1.bf16.msra.mxu0 %v2652_v16  ;;  %2174 = vmatpush3.bf16.msra.mxu1 %v2669_v35 }
 0x25a   :  { %2146 = vmatprep.subr.bf16.mxu0 %v2655_v17  ;;  %2175 = vmatprep.subr.bf16.mxu1 %v2584_v0 }
 0x25d   :  { %2148 = vmatpush1.bf16.msra.mxu0 %v2658_v22  ;;  %2177 = vmatpush3.bf16.msra.mxu1 %v2679_v44 }
 0x25e   :  { %2150 = vmatprep.subr.bf16.mxu0 %v2661_v24  ;;  %2178 = vmatprep.subr.bf16.mxu1 %v2584_v0 }
 0x261   :  { %2152 = vmatpush1.bf16.msra.mxu0 %v2666_v33  ;;  %2180 = vmatpush3.bf16.msra.mxu1 %v2696_v55 }
 0x262   :  { %2154 = vmatprep.subr.bf16.mxu0 %v2672_v36  ;;  %2181 = vmatprep.subr.bf16.mxu1 %v2584_v0 }
 0x265   :  { %2156 = vmatpush1.bf16.msra.mxu0 %v2676_v42  ;;  %2183 = vmatpush3.bf16.msra.mxu1 %v2706_v3 }
 0x266   :  { %2158 = vmatprep.subr.bf16.mxu0 %v2687_v46  ;;  %2184 = vmatprep.subr.bf16.mxu1 %v2584_v0 }
 0x269   :  { %2160 = vmatpush1.bf16.msra.mxu0 %v2693_v53  ;;  %2186 = vmatpush3.bf16.msra.mxu1 %v2716_v12 }
 0x26a   :  { %2162 = vmatprep.subr.bf16.mxu0 %v2699_v56  ;;  %2187 = vmatprep.subr.bf16.mxu1 %v2584_v0 }
 0x26d   :  { %2164 = vmatpush1.bf16.msra.mxu0 %v2703_v62  ;;  %2189 = vmatpush3.bf16.msra.mxu1 %v2722_v15 }
 0x26e   :  { %2166 = vmatprep.subr.bf16.mxu0 %v2709_v4  ;;  %2190 = vmatprep.subr.bf16.mxu1 %v2584_v0 }
 0x271   :  { %2168 = vmatpush1.bf16.msra.mxu0 %v2713_v9  ;;  %2192 = vmatpush3.bf16.msra.mxu1 %v2728_v20 }
 0x272   :  { %2194 = vmatprep.subr.bf16.mxu0 %v2644_v6  ;;  %2225 = vmatprep.subr.bf16.mxu1 %v2584_v0 }
 0x327   :  { %v530_v49 = vpop.f32.mrb[4].mxu0  ;;  %v601_v50 = vpop.f32.mrb[4].mxu1 }
 0x328   :  { %v605_v51 = vadd.f32 %v530_v49, %v461_v48  ;;  %v532_v52 = vpop.f32.mrb[5].mxu0  ;;  %v1793_v54 = vpop.f32.mrb[5].mxu1  ;;  %v619_v8 = vadd.f32 %v2774_v40, %v601_v50 }
 0x329   :  { %v612_v60 = vadd.f32 %v532_v52, %v462_v58  ;;  %v638_v58 = vld [vmem:[#allocation3 + $0x58] sm:$0xff] }
 0x32a   :  { %v1535_v57 = vmul.f32 -1.442695, %v605_v51 }
 0x32b   :  { %v1536_v61 = vmul.f32 -1.442695, %v612_v60 }
 0x32c   :  { %2448 = vpow2.f32 %v1535_v57 }
 0x32d   :  { %2450 = vpow2.f32 %v1536_v61 }
 0x336   :  { %v2449_v63 = vpop.eup %2448 }
 0x337   :  { %v609_v5 = vadd.f32 1.0, %v2449_v63  ;;  %v2451_v7 = vpop.eup %2450 }
 0x338   :  { %v616_v21 = vadd.f32 1.0, %v2451_v7 }
 0x339   :  { %2452 = vrcp.f32 %v609_v5 }
 0x343   :  { %v2453_v13 = vpop.eup %2452 }
 0x344   :  { %v620_v18 = vmul.f32 %v2453_v13, %v619_v8 }
 0x346   :  { %v621_v19 = vadd.f32 %v620_v18, %v463_v14  ;;  %v1154_v18 = vsel %vm1546_vm6, 1, %v2587_v2 }
 0x347   :  { %1156 = vperm.xlu1 %2427, %v1154_v18  }
 0x348   :  { %2454 = vtanh.f32 %v621_v19  ;;  %v811_v19 = vld [vmem:[#allocation3 + $0x60] sm:$0xff] }
 0x349   :  { %2456 = vrcp.f32 %v616_v21 }
 0x352   :  { %v2455_v23 = vpop.eup %2454 }
 0x353   :  { %v623_v25 = vsub.f32 %v2820_v43, %v2455_v23  ;;  %v2457_v26 = vpop.eup %2456 }
 0x355   :  { %v624_v27 = vmul.f32 %v2457_v26, %v623_v25 }
 0x357   :  { %v2863_v28 = vadd.f32 %v2455_v23, %v624_v27 }
 0x359   :  { %704 = vmatmul.mubr.f32.vlgmr.msra.gmra.mrb[6].mxu0 %v2863_v28  ;;  %1827 = vmatmul.mubr.f32.vlgmr.msra.gmra.mrb[6].mxu1 %v2863_v28 }
 0x35a   :  { %2196 = vmatpush1.bf16.msra.mxu0 %v2646_v10  ;;  %2227 = vmatpush3.bf16.msra.mxu1 %v2663_v30 }
 0x35b   :  { %2198 = vmatprep.subr.bf16.mxu0 %v2648_v11  ;;  %2228 = vmatprep.subr.bf16.mxu1 %v2584_v0 }
 0x35c   :  { %878 = vmatprep.mubr.f32.mxu0 %v2585_v1  ;;  %1861 = vmatprep.mubr.msk.f32.mxu1 %vm2586_vm0, %v2585_v1 }
 0x35e   :  { %2200 = vmatpush1.bf16.msra.mxu0 %v2652_v16  ;;  %2230 = vmatpush3.bf16.msra.mxu1 %v2669_v35 }
 0x35f   :  { %2202 = vmatprep.subr.bf16.mxu0 %v2655_v17  ;;  %2231 = vmatprep.subr.bf16.mxu1 %v2584_v0 }
 0x362   :  { %2204 = vmatpush1.bf16.msra.mxu0 %v2658_v22  ;;  %2233 = vmatpush3.bf16.msra.mxu1 %v2679_v44 }
 0x363   :  { %2206 = vmatprep.subr.bf16.mxu0 %v2661_v24  ;;  %2234 = vmatprep.subr.bf16.mxu1 %v2584_v0 }
 0x366   :  { %2208 = vmatpush1.bf16.msra.mxu0 %v2666_v33  ;;  %2236 = vmatpush3.bf16.msra.mxu1 %v2696_v55 }
 0x367   :  { %2210 = vmatprep.subr.bf16.mxu0 %v2672_v36  ;;  %2237 = vmatprep.subr.bf16.mxu1 %v2584_v0 }
 0x36a   :  { %2212 = vmatpush1.bf16.msra.mxu0 %v2676_v42  ;;  %2239 = vmatpush3.bf16.msra.mxu1 %v2706_v3 }
 0x36b   :  { %2214 = vmatprep.subr.bf16.mxu0 %v2687_v46  ;;  %2240 = vmatprep.subr.bf16.mxu1 %v2584_v0 }
 0x36e   :  { %2216 = vmatpush1.bf16.msra.mxu0 %v2693_v53  ;;  %2242 = vmatpush3.bf16.msra.mxu1 %v2716_v12 }
 0x36f   :  { %2218 = vmatprep.subr.bf16.mxu0 %v2699_v56  ;;  %2243 = vmatprep.subr.bf16.mxu1 %v2584_v0 }
 0x372   :  { %2220 = vmatpush1.bf16.msra.mxu0 %v2703_v62  ;;  %2245 = vmatpush3.bf16.msra.mxu1 %v2722_v15 }
 0x373   :  { %2222 = vmatprep.subr.bf16.mxu0 %v2709_v4  ;;  %2246 = vmatprep.subr.bf16.mxu1 %v2584_v0 }
 0x376   :  { %2224 = vmatpush1.bf16.msra.mxu0 %v2713_v9  ;;  %2248 = vmatpush3.bf16.msra.mxu1 %v2728_v20 }
 0x377   :  { %2250 = vmatprep.subr.bf16.mxu0 %v2644_v6  ;;  %2281 = vmatprep.subr.bf16.mxu1 %v2584_v0 }
 0x42c   :  { %v705_v32 = vpop.f32.mrb[6].mxu0  ;;  %v776_v34 = vpop.f32.mrb[6].mxu1 }
 0x42d   :  { %v780_v37 = vadd.f32 %v705_v32, %v636_v31  ;;  %v707_v38 = vpop.f32.mrb[7].mxu0  ;;  %v1828_v39 = vpop.f32.mrb[7].mxu1  ;;  %v794_v54 = vadd.f32 %v2774_v40, %v776_v34  ;;  %v812_v31 = vld [vmem:[#allocation3 + $0x68] sm:$0xff] }
 0x42e   :  { %v787_v48 = vadd.f32 %v707_v38, %v637_v47 }
 0x42f   :  { %v1538_v41 = vmul.f32 -1.442695, %v780_v37 }
 0x430   :  { %v1539_v49 = vmul.f32 -1.442695, %v787_v48  ;;  %v813_v48 = vld [vmem:[#allocation3 + $0x70] sm:$0xff] }
 0x431   :  { %2458 = vpow2.f32 %v1538_v41 }
 0x432   :  { %2460 = vpow2.f32 %v1539_v49 }
 0x43b   :  { %v2459_v50 = vpop.eup %2458 }
 0x43c   :  { %v784_v51 = vadd.f32 1.0, %v2459_v50  ;;  %v2461_v52 = vpop.eup %2460 }
 0x43d   :  { %v791_v63 = vadd.f32 1.0, %v2461_v52 }
 0x43e   :  { %2462 = vrcp.f32 %v784_v51 }
 0x448   :  { %v2463_v57 = vpop.eup %2462 }
 0x449   :  { %v795_v60 = vmul.f32 %v2463_v57, %v794_v54 }
 0x44b   :  { %v796_v61 = vadd.f32 %v795_v60, %v638_v58 }
 0x44d   :  { %2464 = vtanh.f32 %v796_v61  ;;  %v1329_v61 = vsel %vm1549_vm7, 1, %v2587_v2 }
 0x44e   :  { %2466 = vrcp.f32 %v791_v63  ;;  %1331 = vperm.xlu0 %2426, %v1329_v61   ;;  %v986_v63 = vld [vmem:[#allocation3 + $0x78] sm:$0xff] }
 0x457   :  { %v2465_v5 = vpop.eup %2464 }
 0x458   :  { %v798_v7 = vsub.f32 %v2863_v28, %v2465_v5  ;;  %v2467_v8 = vpop.eup %2466 }
 0x45a   :  { %v799_v13 = vmul.f32 %v2467_v8, %v798_v7 }
 0x45c   :  { %v2906_v14 = vadd.f32 %v2465_v5, %v799_v13 }
 0x45e   :  { %879 = vmatmul.mubr.f32.vlgmr.msra.gmra.mrb[8].mxu0 %v2906_v14  ;;  %1862 = vmatmul.mubr.f32.vlgmr.msra.gmra.mrb[8].mxu1 %v2906_v14 }
 0x45f   :  { %2252 = vmatpush1.bf16.msra.mxu0 %v2646_v10  ;;  %2283 = vmatpush3.bf16.msra.mxu1 %v2663_v30 }
 0x460   :  { %2254 = vmatprep.subr.bf16.mxu0 %v2648_v11  ;;  %2284 = vmatprep.subr.bf16.mxu1 %v2584_v0 }
 0x461   :  { %1053 = vmatprep.mubr.f32.mxu0 %v2585_v1  ;;  %1896 = vmatprep.mubr.msk.f32.mxu1 %vm2586_vm0, %v2585_v1 }
 0x463   :  { %2256 = vmatpush1.bf16.msra.mxu0 %v2652_v16  ;;  %2286 = vmatpush3.bf16.msra.mxu1 %v2669_v35 }
 0x464   :  { %2258 = vmatprep.subr.bf16.mxu0 %v2655_v17  ;;  %2287 = vmatprep.subr.bf16.mxu1 %v2584_v0 }
 0x467   :  { %2260 = vmatpush1.bf16.msra.mxu0 %v2658_v22  ;;  %2289 = vmatpush3.bf16.msra.mxu1 %v2679_v44 }
 0x468   :  { %2262 = vmatprep.subr.bf16.mxu0 %v2661_v24  ;;  %2290 = vmatprep.subr.bf16.mxu1 %v2584_v0 }
 0x46b   :  { %2264 = vmatpush1.bf16.msra.mxu0 %v2666_v33  ;;  %2292 = vmatpush3.bf16.msra.mxu1 %v2696_v55 }
 0x46c   :  { %2266 = vmatprep.subr.bf16.mxu0 %v2672_v36  ;;  %2293 = vmatprep.subr.bf16.mxu1 %v2584_v0 }
 0x46f   :  { %2268 = vmatpush1.bf16.msra.mxu0 %v2676_v42  ;;  %2295 = vmatpush3.bf16.msra.mxu1 %v2706_v3 }
 0x470   :  { %2270 = vmatprep.subr.bf16.mxu0 %v2687_v46  ;;  %2296 = vmatprep.subr.bf16.mxu1 %v2584_v0 }
 0x473   :  { %2272 = vmatpush1.bf16.msra.mxu0 %v2693_v53  ;;  %2298 = vmatpush3.bf16.msra.mxu1 %v2716_v12 }
 0x474   :  { %2274 = vmatprep.subr.bf16.mxu0 %v2699_v56  ;;  %2299 = vmatprep.subr.bf16.mxu1 %v2584_v0 }
 0x477   :  { %2276 = vmatpush1.bf16.msra.mxu0 %v2703_v62  ;;  %2301 = vmatpush3.bf16.msra.mxu1 %v2722_v15 }
 0x478   :  { %2278 = vmatprep.subr.bf16.mxu0 %v2709_v4  ;;  %2302 = vmatprep.subr.bf16.mxu1 %v2584_v0 }
 0x47b   :  { %2280 = vmatpush1.bf16.msra.mxu0 %v2713_v9  ;;  %2304 = vmatpush3.bf16.msra.mxu1 %v2728_v20 }
 0x47c   :  { %2306 = vmatprep.subr.bf16.mxu0 %v2644_v6  ;;  %2337 = vmatprep.subr.bf16.mxu1 %v2584_v0 }
 0x531   :  { %v880_v21 = vpop.f32.mrb[8].mxu0  ;;  %v951_v23 = vpop.f32.mrb[8].mxu1 }
 0x532   :  { %v955_v25 = vadd.f32 %v880_v21, %v811_v19  ;;  %v882_v26 = vpop.f32.mrb[9].mxu0  ;;  %v1863_v27 = vpop.f32.mrb[9].mxu1  ;;  %v969_v41 = vadd.f32 %v2774_v40, %v951_v23  ;;  %v987_v21 = vld [vmem:[#allocation3 + $0x80] sm:$0xff] }
 0x533   :  { %v962_v32 = vadd.f32 %v882_v26, %v812_v31 }
 0x534   :  { %v1541_v29 = vmul.f32 -1.442695, %v955_v25 }
 0x535   :  { %v1542_v34 = vmul.f32 -1.442695, %v962_v32  ;;  %v988_v32 = vld [vmem:[#allocation3 + $0x88] sm:$0xff] }
 0x536   :  { %2468 = vpow2.f32 %v1541_v29 }
 0x537   :  { %2470 = vpow2.f32 %v1542_v34 }
 0x540   :  { %v2469_v37 = vpop.eup %2468 }
 0x541   :  { %v959_v38 = vadd.f32 1.0, %v2469_v37  ;;  %v2471_v39 = vpop.eup %2470 }
 0x542   :  { %v966_v51 = vadd.f32 1.0, %v2471_v39 }
 0x543   :  { %2472 = vrcp.f32 %v959_v38 }
 0x54d   :  { %v2473_v47 = vpop.eup %2472 }
 0x54e   :  { %v970_v49 = vmul.f32 %v2473_v47, %v969_v41 }
 0x550   :  { %v971_v50 = vadd.f32 %v970_v49, %v813_v48 }
 0x552   :  { %2474 = vtanh.f32 %v971_v50 }
 0x553   :  { %2476 = vrcp.f32 %v966_v51 }
 0x55c   :  { %v2475_v52 = vpop.eup %2474 }
 0x55d   :  { %v973_v54 = vsub.f32 %v2906_v14, %v2475_v52  ;;  %v2477_v57 = vpop.eup %2476 }
 0x55f   :  { %v974_v58 = vmul.f32 %v2477_v57, %v973_v54 }
 0x561   :  { %v2949_v60 = vadd.f32 %v2475_v52, %v974_v58  ;;  %v1337_v58 = vld [vmem:[#allocation3 + $0xb0] sm:$0xff] }
 0x563   :  { %1054 = vmatmul.mubr.f32.vlgmr.msra.gmra.mrb[10].mxu0 %v2949_v60  ;;  %1897 = vmatmul.mubr.f32.vlgmr.msra.gmra.mrb[10].mxu1 %v2949_v60 }
 0x564   :  { %2308 = vmatpush1.bf16.msra.mxu0 %v2646_v10  ;;  %2339 = vmatpush3.bf16.msra.mxu1 %v2663_v30 }
 0x565   :  { %2310 = vmatprep.subr.bf16.mxu0 %v2648_v11  ;;  %2340 = vmatprep.subr.bf16.mxu1 %v2584_v0 }
 0x566   :  { %1228 = vmatprep.mubr.f32.mxu0 %v2585_v1  ;;  %1931 = vmatprep.mubr.msk.f32.mxu1 %vm2586_vm0, %v2585_v1 }
 0x568   :  { %2312 = vmatpush1.bf16.msra.mxu0 %v2652_v16  ;;  %2342 = vmatpush3.bf16.msra.mxu1 %v2669_v35 }
 0x569   :  { %2314 = vmatprep.subr.bf16.mxu0 %v2655_v17  ;;  %2343 = vmatprep.subr.bf16.mxu1 %v2584_v0 }
 0x56c   :  { %2316 = vmatpush1.bf16.msra.mxu0 %v2658_v22  ;;  %2345 = vmatpush3.bf16.msra.mxu1 %v2679_v44 }
 0x56d   :  { %2318 = vmatprep.subr.bf16.mxu0 %v2661_v24  ;;  %2346 = vmatprep.subr.bf16.mxu1 %v2584_v0 }
 0x570   :  { %2320 = vmatpush1.bf16.msra.mxu0 %v2666_v33  ;;  %2348 = vmatpush3.bf16.msra.mxu1 %v2696_v55 }
 0x571   :  { %2322 = vmatprep.subr.bf16.mxu0 %v2672_v36  ;;  %2349 = vmatprep.subr.bf16.mxu1 %v2584_v0 }
 0x574   :  { %2324 = vmatpush1.bf16.msra.mxu0 %v2676_v42  ;;  %2351 = vmatpush3.bf16.msra.mxu1 %v2706_v3 }
 0x575   :  { %2326 = vmatprep.subr.bf16.mxu0 %v2687_v46  ;;  %2352 = vmatprep.subr.bf16.mxu1 %v2584_v0 }
 0x578   :  { %2328 = vmatpush1.bf16.msra.mxu0 %v2693_v53  ;;  %2354 = vmatpush3.bf16.msra.mxu1 %v2716_v12 }
 0x579   :  { %2330 = vmatprep.subr.bf16.mxu0 %v2699_v56  ;;  %2355 = vmatprep.subr.bf16.mxu1 %v2584_v0 }
 0x57c   :  { %2332 = vmatpush1.bf16.msra.mxu0 %v2703_v62  ;;  %2357 = vmatpush3.bf16.msra.mxu1 %v2722_v15 }
 0x57d   :  { %2334 = vmatprep.subr.bf16.mxu0 %v2709_v4  ;;  %2358 = vmatprep.subr.bf16.mxu1 %v2584_v0 }
 0x580   :  { %2336 = vmatpush1.bf16.msra.mxu0 %v2713_v9  ;;  %2360 = vmatpush3.bf16.msra.mxu1 %v2728_v20 }
 0x581   :  { %2362 = vmatprep.subr.bf16.mxu0 %v2644_v6  ;;  %2393 = vmatprep.subr.bf16.mxu1 %v2584_v0 }
 0x636   :  { %v1055_v5 = vpop.f32.mrb[10].mxu0  ;;  %v1126_v7 = vpop.f32.mrb[10].mxu1 }
 0x637   :  { %v1130_v8 = vadd.f32 %v1055_v5, %v986_v63  ;;  %v1057_v13 = vpop.f32.mrb[11].mxu0  ;;  %v1898_v18 = vpop.f32.mrb[11].mxu1  ;;  %v1144_v29 = vadd.f32 %v2774_v40, %v1126_v7 }
 0x638   :  { %v1137_v23 = vadd.f32 %v1057_v13, %v987_v21 }
 0x639   :  { %v1544_v19 = vmul.f32 -1.442695, %v1130_v8 }
 0x63a   :  { %v1545_v25 = vmul.f32 -1.442695, %v1137_v23  ;;  %v282_v23 = vpop.permute.xlu0 %281 }
 0x63b   :  { %2478 = vpow2.f32 %v1544_v19  ;;  %v1338_v19 = vld [vmem:[#allocation3 + $0xb8] sm:$0xff]  ;;  %vm283_vm9 = vcmp.eq.s32.totalorder %v282_v23, 1 }
 0x63c   :  { %2480 = vpow2.f32 %v1545_v25 }
 0x645   :  { %v2479_v26 = vpop.eup %2478 }
 0x646   :  { %v1134_v6 = vadd.f32 1.0, %v2479_v26  ;;  %v2481_v27 = vpop.eup %2480 }
 0x647   :  { %v1141_v38 = vadd.f32 1.0, %v2481_v27  ;;  %v457_v27 = vpop.permute.xlu0 %456 }
 0x648   :  { %2482 = vrcp.f32 %v1134_v6  ;;  %v632_v6 = vpop.permute.xlu1 %631  ;;  %vm458_vm10 = vcmp.eq.s32.totalorder %v457_v27, 1 }
 0x649   :  { %vm633_vm11 = vcmp.eq.s32.totalorder %v632_v6, 1 }
 0x652   :  { %v2483_v31 = vpop.eup %2482 }
 0x653   :  { %v1145_v34 = vmul.f32 %v2483_v31, %v1144_v29  ;;  %v807_v29 = vpop.permute.xlu1 %806  ;;  %v982_v31 = vpop.permute.xlu0 %981 }
 0x654   :  { %vm808_vm12 = vcmp.eq.s32.totalorder %v807_v29, 1  ;;  %vm983_vm13 = vcmp.eq.s32.totalorder %v982_v31, 1 }
 0x655   :  { %v1146_v37 = vadd.f32 %v1145_v34, %v988_v32 }
 0x657   :  { %2484 = vtanh.f32 %v1146_v37  ;;  %v1157_v32 = vpop.permute.xlu1 %1156  ;;  %v284_v37 = vsel %vm283_vm9, %v2777_v59, 0.0 }
 0x658   :  { %2486 = vrcp.f32 %v1141_v38  ;;  %v459_v38 = vsel %vm458_vm10, %v2820_v43, %v284_v37  ;;  %vm1158_vm14 = vcmp.eq.s32.totalorder %v1157_v32, 1 }
 0x661   :  { %v2485_v39 = vpop.eup %2484 }
 0x662   :  { %v1148_v41 = vsub.f32 %v2949_v60, %v2485_v39  ;;  %v2487_v47 = vpop.eup %2486 }
 0x664   :  { %v1149_v48 = vmul.f32 %v2487_v47, %v1148_v41  ;;  %v634_v47 = vsel %vm633_vm11, %v2863_v28, %v459_v38 }
 0x666   :  { %v2992_v49 = vadd.f32 %v2485_v39, %v1149_v48  ;;  %v809_v48 = vsel %vm808_vm12, %v2906_v14, %v634_v47 }
 0x668   :  { %1229 = vmatmul.mubr.f32.vlgmr.msra.gmra.mrb[12].mxu0 %v2992_v49  ;;  %1932 = vmatmul.mubr.f32.vlgmr.msra.gmra.mrb[12].mxu1 %v2992_v49 }
 0x669   :  { %2364 = vmatpush1.bf16.msra.mxu0 %v2646_v10  ;;  %2395 = vmatpush3.bf16.msra.mxu1 %v2663_v30  ;;  %v1161_v10 = vld [vmem:[#allocation3 + $0x90] sm:$0xff] }
 0x66a   :  { %2366 = vmatprep.subr.bf16.mxu0 %v2648_v11  ;;  %2396 = vmatprep.subr.bf16.mxu1 %v2584_v0 }
 0x66b   :  { %1403 = vmatprep.mubr.f32.mxu0 %v2585_v1  ;;  %1966 = vmatprep.mubr.msk.f32.mxu1 %vm2586_vm0, %v2585_v1  ;;  %v1504_v1 = vsel %vm1552_vm8, 1, %v2587_v2 }
 0x66c   :  { %1506 = vperm.xlu1 %2427, %v1504_v1  }
 0x66d   :  { %2368 = vmatpush1.bf16.msra.mxu0 %v2652_v16  ;;  %2398 = vmatpush3.bf16.msra.mxu1 %v2669_v35 }
 0x66e   :  { %2370 = vmatprep.subr.bf16.mxu0 %v2655_v17  ;;  %2399 = vmatprep.subr.bf16.mxu1 %v2584_v0 }
 0x671   :  { %2372 = vmatpush1.bf16.msra.mxu0 %v2658_v22  ;;  %2401 = vmatpush3.bf16.msra.mxu1 %v2679_v44 }
 0x672   :  { %2374 = vmatprep.subr.bf16.mxu0 %v2661_v24  ;;  %2402 = vmatprep.subr.bf16.mxu1 %v2584_v0 }
 0x675   :  { %2376 = vmatpush1.bf16.msra.mxu0 %v2666_v33  ;;  %2404 = vmatpush3.bf16.msra.mxu1 %v2696_v55  ;;  %v1162_v33 = vld [vmem:[#allocation3 + $0x98] sm:$0xff] }
 0x676   :  { %2378 = vmatprep.subr.bf16.mxu0 %v2672_v36  ;;  %2405 = vmatprep.subr.bf16.mxu1 %v2584_v0 }
 0x679   :  { %2380 = vmatpush1.bf16.msra.mxu0 %v2676_v42  ;;  %2407 = vmatpush3.bf16.msra.mxu1 %v2706_v3 }
 0x67a   :  { %2382 = vmatprep.subr.bf16.mxu0 %v2687_v46  ;;  %2408 = vmatprep.subr.bf16.mxu1 %v2584_v0  ;;  %v1163_v46 = vld [vmem:[#allocation3 + $0xa0] sm:$0xff] }
 0x67d   :  { %2384 = vmatpush1.bf16.msra.mxu0 %v2693_v53  ;;  %2410 = vmatpush3.bf16.msra.mxu1 %v2716_v12 }
 0x67e   :  { %2386 = vmatprep.subr.bf16.mxu0 %v2699_v56  ;;  %2411 = vmatprep.subr.bf16.mxu1 %v2584_v0 }
 0x681   :  { %2388 = vmatpush1.bf16.msra.mxu0 %v2703_v62  ;;  %2413 = vmatpush3.bf16.msra.mxu1 %v2722_v15  ;;  %v1336_v15 = vld [vmem:[#allocation3 + $0xa8] sm:$0xff] }
 0x682   :  { %2390 = vmatprep.subr.bf16.mxu0 %v2709_v4  ;;  %2414 = vmatprep.subr.bf16.mxu1 %v2584_v0 }
 0x685   :  { %2392 = vmatpush1.bf16.msra.mxu0 %v2713_v9  ;;  %2416 = vmatpush3.bf16.msra.mxu1 %v2728_v20 }
 0x6eb   :  { %v1507_v1 = vpop.permute.xlu1 %1506 }
 0x6ec   :  { %vm1508_vm0 = vcmp.eq.s32.totalorder %v1507_v1, 1 }
 0x73b   :  { %v1230_v11 = vpop.f32.mrb[12].mxu0  ;;  %v1301_v16 = vpop.f32.mrb[12].mxu1 }
 0x73c   :  { %v1305_v17 = vadd.f32 %v1230_v11, %v1161_v10  ;;  %v1232_v22 = vpop.f32.mrb[13].mxu0  ;;  %v1933_v24 = vpop.f32.mrb[13].mxu1  ;;  %v1319_v45 = vadd.f32 %v2774_v40, %v1301_v16  ;;  %v984_v11 = vsel %vm983_vm13, %v2949_v60, %v809_v48 }
 0x73d   :  { %v1312_v35 = vadd.f32 %v1232_v22, %v1162_v33  ;;  %v1159_v59 = vsel %vm1158_vm14, %v2992_v49, %v984_v11 }
 0x73e   :  { %v1547_v30 = vmul.f32 -1.442695, %v1305_v17 }
 0x73f   :  { %v1548_v0 = vmul.f32 -1.442695, %v1312_v35 }
 0x740   :  { %2488 = vpow2.f32 %v1547_v30 }
 0x741   :  { %2490 = vpow2.f32 %v1548_v0 }
 0x74a   :  { %v2489_v36 = vpop.eup %2488 }
 0x74b   :  { %v1309_v42 = vadd.f32 1.0, %v2489_v36  ;;  %v2491_v44 = vpop.eup %2490 }
 0x74c   :  { %v1316_v56 = vadd.f32 1.0, %v2491_v44 }
 0x74d   :  { %2492 = vrcp.f32 %v1309_v42 }
 0x757   :  { %v2493_v2 = vpop.eup %2492 }
 0x758   :  { %v1320_v53 = vmul.f32 %v2493_v2, %v1319_v45 }
 0x75a   :  { %v1321_v55 = vadd.f32 %v1320_v53, %v1163_v46 }
 0x75c   :  { %2494 = vtanh.f32 %v1321_v55 }
 0x75d   :  { %2496 = vrcp.f32 %v1316_v56 }
 0x766   :  { %v2495_v62 = vpop.eup %2494 }
 0x767   :  { %v1323_v3 = vsub.f32 %v2992_v49, %v2495_v62  ;;  %v2497_v4 = vpop.eup %2496 }
 0x769   :  { %v1324_v9 = vmul.f32 %v2497_v4, %v1323_v3 }
 0x76b   :  { %v1325_v12 = vadd.f32 %v2495_v62, %v1324_v9 }
 0x76d   :  { %1404 = vmatmul.mubr.f32.vlgmr.msra.gmra.mrb[14].mxu0 %v1325_v12  ;;  %1967 = vmatmul.mubr.f32.vlgmr.msra.gmra.mrb[14].mxu1 %v1325_v12 }
 0x840   :  { %v1405_v20 = vpop.f32.mrb[14].mxu0  ;;  %v1476_v50 = vpop.f32.mrb[14].mxu1 }
 0x841   :  { %v1480_v51 = vadd.f32 %v1405_v20, %v1336_v15  ;;  %v1407_v52 = vpop.f32.mrb[15].mxu0  ;;  %v1968_v54 = vpop.f32.mrb[15].mxu1  ;;  %v1494_v13 = vadd.f32 %v2774_v40, %v1476_v50 }
 0x842   :  { %v1487_v61 = vadd.f32 %v1407_v52, %v1337_v58  ;;  %v1332_v40 = vpop.permute.xlu0 %1331 }
 0x843   :  { %v1550_v57 = vmul.f32 -1.442695, %v1480_v51  ;;  %vm1333_vm15 = vcmp.eq.s32.totalorder %v1332_v40, 1 }
 0x844   :  { %v1551_v63 = vmul.f32 -1.442695, %v1487_v61  ;;  %v1334_v17 = vsel %vm1333_vm15, %v1325_v12, %v1159_v59 }
 0x845   :  { %2498 = vpow2.f32 %v1550_v57 }
 0x846   :  { %2500 = vpow2.f32 %v1551_v63 }
 0x84f   :  { %v2499_v5 = vpop.eup %2498 }
 0x850   :  { %v1484_v7 = vadd.f32 1.0, %v2499_v5  ;;  %v2501_v8 = vpop.eup %2500 }
 0x851   :  { %v1491_v26 = vadd.f32 1.0, %v2501_v8 }
 0x852   :  { %2502 = vrcp.f32 %v1484_v7 }
 0x85c   :  { %v2503_v18 = vpop.eup %2502 }
 0x85d   :  { %v1495_v21 = vmul.f32 %v2503_v18, %v1494_v13 }
 0x85f   :  { %v1496_v25 = vadd.f32 %v1495_v21, %v1338_v19 }
 0x861   :  { %2504 = vtanh.f32 %v1496_v25 }
 0x862   :  { %2506 = vrcp.f32 %v1491_v26 }
 0x86b   :  { %v2505_v34 = vpop.eup %2504 }
 0x86c   :  { %v1498_v39 = vsub.f32 %v1325_v12, %v2505_v34  ;;  %v2507_v41 = vpop.eup %2506 }
 0x86e   :  { %v1499_v10 = vmul.f32 %v2507_v41, %v1498_v39 }
 0x870   :  { %v1500_v16 = vadd.f32 %v2505_v34, %v1499_v10 }
 0x872   :  { %v1509_v43 = vsel %vm1508_vm0, %v1500_v16, %v1334_v17 }
 0x873   :  { %1511 = vst [vmem:[#allocation8] sm:$0xff] %v1509_v43 }
 0x874   :  { %2563 = shalt.err (!%p2560_p6)
}
 0x875   :  { %s2564_s20 = scalar_lea.hbm %s3056_s4, 128 }
 0x876   :  { %p2565_p7 = scmp.ne.s32.totalorder %s3056_s4, %s2564_s20  ;;  %p2568_p8 = scmp.lt.u32.totalorder %s2564_s20, %s3056_s4 }
 0x878   :  { %p2570_p9 = pnand %p2568_p8, %p2565_p7 }
 0x87a   :  { %2573 = shalt.err (!%p2570_p9)
}
 0x87b   :  { %1521 = dma.vmem_to_hbm [thread:$0]  %s1519_s16, 128, %s3056_s4, [#allocation5]  }
 0x87c   :  { %2578 = dma.done.wait [#allocation5], 128  }
 0x87d   :  { %2579 = vsyncadd [#allocation5], 4294967168 }
 0x87e   :  { %1525 = vsyncpa [#allocation4], 1 }
 0x87f   :  { %1526 = vsyncpa [#allocation7], 1 }
 0x880   :  { %1527 = vsyncpa [#allocation5], 1 }

// kernel: tpu_custom_call.1
= control target key start
LH: loop header
LB: loop body
LE: loop exit
PB: predicated region body
PF: predicated region fallthrough
CT: control target
= control target key end

     0   :  { %9 = vsyncpa [#allocation4], 0  ;;  %s3052_s0 = inlined_call_operand.hbm [shape: f32[8,8,384], index: 0, kind: input, shape index: {}]   ;;  %s3053_s1 = inlined_call_operand.hbm [shape: f32[128,384], index: 1, kind: input, shape index: {}]   ;;  %s3054_s2 = inlined_call_operand.vmem [shape: f32[1,128], index: 2, kind: input, shape index: {}]   ;;  %s3055_s3 = inlined_call_operand.vmem [shape: s32[8,1], index: 3, kind: input, shape index: {}]   ;;  %s3056_s4 = inlined_call_operand.hbm [shape: f32[8,128], index: 4, kind: output, shape index: {}]  }
   0x1   :  { %10 = vsyncpa [#allocation7], 0 }
   0x2   :  { %11 = vsyncpa [#allocation5], 0  ;;  %s2580_s15 = smov [#allocation3]   ;;  %s2508_s19 = scalar_lea.hbm %s3052_s0, 3072 }
   0x3   :  { %s17_s16 = sshll.u32 %s2580_s15, 4  ;;  %p2509_p0 = scmp.ne.s32.totalorder %s3052_s0, %s2508_s19  ;;  %s18_s16 = int_to_ptr.vmem [resolvable:$true] %s17_s16 }
   0x4   :  { %p2512_p1 = scmp.lt.u32.totalorder %s2508_s19, %s3052_s0 }
   0x6   :  { %p2514_p2 = pnand %p2512_p1, %p2509_p0 }
   0x8   :  { %2517 = shalt.err (!%p2514_p2)
}
   0x9   :  { %s2518_s24 = scalar_lea.vmem %s18_s16, 3072  ;;  %p2523_p4 = scmp.lt.s32.totalorder %s18_s16, %s18_s16 }
   0xa   :  { %p2519_p3 = scmp.ne.s32.totalorder %s18_s16, %s2518_s24  ;;  %p2524_p5 = scmp.lt.s32.totalorder %s2518_s24, %s2518_s24 }
   0xc   :  { %p2525_p6 = por %p2524_p5, %p2523_p4 }
   0xe   :  { %p2526_p7 = pnand %p2525_p6, %p2519_p3 }
  0x10   :  { %2529 = shalt.err (!%p2526_p7)
}
  0x11   :  { %s2581_s25 = smov 384   ;;  %s2582_s26 = smov 24  }
  0x12   :  { %23 = dma.hbm_to_vmem [thread:$0]  %s3052_s0, 3072, %s18_s16, [#allocation4], %s2581_s25, %s2581_s25, %s2582_s26  }
  0x13   :  { %s2583_s29 = smov [#allocation6]   ;;  %s2530_s7 = scalar_lea.hbm %s3053_s1, 6144 }
  0x14   :  { %s29_s30 = sshll.u32 %s2583_s29, 4  ;;  %p2531_p8 = scmp.ne.s32.totalorder %s3053_s1, %s2530_s7  ;;  %s30_s30 = int_to_ptr.vmem [resolvable:$true] %s29_s30 }
  0x15   :  { %p2534_p9 = scmp.lt.u32.totalorder %s2530_s7, %s3053_s1 }
  0x17   :  { %p2536_p10 = pnand %p2534_p9, %p2531_p8 }
  0x19   :  { %2539 = shalt.err (!%p2536_p10)
}
  0x1a   :  { %s2540_s12 = scalar_lea.vmem %s30_s30, 6144  ;;  %p2545_p12 = scmp.lt.s32.totalorder %s30_s30, %s30_s30 }
  0x1b   :  { %p2541_p11 = scmp.ne.s32.totalorder %s30_s30, %s2540_s12  ;;  %p2546_p13 = scmp.lt.s32.totalorder %s2540_s12, %s2540_s12 }
  0x1d   :  { %p2547_p0 = por %p2546_p13, %p2545_p12 }
  0x1f   :  { %p2548_p1 = pnand %p2547_p0, %p2541_p11 }
  0x21   :  { %2551 = shalt.err (!%p2548_p1)
}
  0x22   :  { %35 = dma.hbm_to_vmem [thread:$0]  %s3053_s1, 6144, %s30_s30, [#allocation7], %s2581_s25, %s2581_s25, %s2582_s26  }
  0x23   :  { %2574 = dma.done.wait [#allocation4], 3072  }
  0x24   :  { %2575 = vsyncadd [#allocation4], 4294964224 }
  0x25   :  { %2576 = dma.done.wait [#allocation7], 6144  }
  0x26   :  { %2577 = vsyncadd [#allocation7], 4294961152  ;;  %v2584_v0 = vmov 0.0|0.0   ;;  %v2585_v1 = vmov 0.0   ;;  %vm2586_vm0 = vmmov 0   ;;  %v2587_v2 = vmov 0  }
  0x27   :  { %2001 = vmatprep.subr.bf16.mxu1 %v2584_v0  ;;  %178 = vmatprep.mubr.f32.mxu0 %v2585_v1  ;;  %v53_v3 = vld [vmem:[#allocation6 + $0x8] sm:$0xff]  ;;  %v56_v4 = vld [vmem:[#allocation6 + $0x20] sm:$0xff]  ;;  %v55_v7 = vld [vmem:[#allocation6 + $0x18] sm:$0xff] }
  0x28   :  { %1721 = vmatprep.mubr.msk.f32.mxu1 %vm2586_vm0, %v2585_v1  ;;  %2426 = vset.pattern.permute.xlu0 %v2587_v2  ;;  %v52_v5 = vld [vmem:[#allocation6] sm:$0xff]  ;;  %v2644_v6 = vpack.c.bf16 %v56_v4, %v53_v3  ;;  %v59_v8 = vld [vmem:[#allocation6 + $0x38] sm:$0xff]  ;;  %v62_v9 = vld [vmem:[#allocation6 + $0x50] sm:$0xff] }
  0x29   :  { %2427 = vset.pattern.permute.xlu1 %v2587_v2  ;;  %v2646_v10 = vpack.c.bf16 %v55_v7, %v52_v5  ;;  %v2648_v11 = vpack.c.bf16 %v62_v9, %v59_v8  ;;  %v58_v12 = vld [vmem:[#allocation6 + $0x30] sm:$0xff]  ;;  %v61_v13 = vld [vmem:[#allocation6 + $0x48] sm:$0xff]  ;;  %v68_v15 = vld [vmem:[#allocation6 + $0x80] sm:$0xff] }
  0x2a   :  { %v65_v14 = vld [vmem:[#allocation6 + $0x68] sm:$0xff]  ;;  %1970 = vmatprep.subr.bf16.mxu0 %v2644_v6  ;;  %v2652_v16 = vpack.c.bf16 %v61_v13, %v58_v12  ;;  %v64_v18 = vld [vmem:[#allocation6 + $0x60] sm:$0xff]  ;;  %v67_v19 = vld [vmem:[#allocation6 + $0x78] sm:$0xff] }
  0x2b   :  { %1972 = vmatpush1.bf16.msra.mxu0 %v2646_v10  ;;  %v2655_v17 = vpack.c.bf16 %v68_v15, %v65_v14  ;;  %v71_v20 = vld [vmem:[#allocation6 + $0x98] sm:$0xff]  ;;  %v74_v21 = vld [vmem:[#allocation6 + $0xb0] sm:$0xff]  ;;  %v2658_v22 = vpack.c.bf16 %v67_v19, %v64_v18  ;;  %v73_v25 = vld [vmem:[#allocation6 + $0xa8] sm:$0xff] }
  0x2c   :  { %1974 = vmatprep.subr.bf16.mxu0 %v2648_v11  ;;  %v70_v23 = vld [vmem:[#allocation6 + $0x90] sm:$0xff]  ;;  %v2661_v24 = vpack.c.bf16 %v74_v21, %v71_v20  ;;  %v57_v27 = vld [vmem:[#allocation6 + $0x28] sm:$0xff]  ;;  %v80_v29 = vld [vmem:[#allocation6 + $0xe0] sm:$0xff] }
  0x2d   :  { %v54_v26 = vld [vmem:[#allocation6 + $0x10] sm:$0xff]  ;;  %v77_v28 = vld [vmem:[#allocation6 + $0xc8] sm:$0xff]  ;;  %v60_v31 = vld [vmem:[#allocation6 + $0x40] sm:$0xff]  ;;  %v2666_v33 = vpack.c.bf16 %v73_v25, %v70_v23 }
  0x2e   :  { %v2663_v30 = vpack.c.bf16 %v57_v27, %v54_v26  ;;  %v63_v32 = vld [vmem:[#allocation6 + $0x58] sm:$0xff]  ;;  %v76_v34 = vld [vmem:[#allocation6 + $0xc0] sm:$0xff]  ;;  %v2672_v36 = vpack.c.bf16 %v80_v29, %v77_v28  ;;  %v66_v38 = vld [vmem:[#allocation6 + $0x70] sm:$0xff] }
  0x2f   :  { %1976 = vmatpush1.bf16.msra.mxu0 %v2652_v16  ;;  %v2669_v35 = vpack.c.bf16 %v63_v32, %v60_v31  ;;  %v79_v37 = vld [vmem:[#allocation6 + $0xd8] sm:$0xff]  ;;  %v69_v39 = vld [vmem:[#allocation6 + $0x88] sm:$0xff]  ;;  %v86_v41 = vld [vmem:[#allocation6 + $0x110] sm:$0xff] }
  0x30   :  { %1978 = vmatprep.subr.bf16.mxu0 %v2655_v17  ;;  %2003 = vmatpush3.bf16.msra.mxu1 %v2663_v30  ;;  %v83_v40 = vld [vmem:[#allocation6 + $0xf8] sm:$0xff]  ;;  %v2676_v42 = vpack.c.bf16 %v79_v37, %v76_v34  ;;  %v82_v43 = vld [vmem:[#allocation6 + $0xf0] sm:$0xff]  ;;  %v2679_v44 = vpack.c.bf16 %v69_v39, %v66_v38  ;;  %v2684_v45 = vld [vmem:[%s3055_s3] sm:$0xff] }
  0x31   :  { %2004 = vmatprep.subr.bf16.mxu1 %v2584_v0  ;;  %v2687_v46 = vpack.c.bf16 %v86_v41, %v83_v40  ;;  %v85_v47 = vld [vmem:[#allocation6 + $0x108] sm:$0xff]  ;;  %v72_v48 = vld [vmem:[#allocation6 + $0xa0] sm:$0xff]  ;;  %v75_v49 = vld [vmem:[#allocation6 + $0xb8] sm:$0xff]  ;;  %vm1531_vm1 = vcmp.ge.s32.totalorder %v2684_v45, 1  ;;  %vm1534_vm2 = vcmp.ge.s32.totalorder %v2684_v45, 2  ;;  %vm1537_vm3 = vcmp.ge.s32.totalorder %v2684_v45, 3 }
  0x32   :  { %v89_v50 = vld [vmem:[#allocation6 + $0x128] sm:$0xff]  ;;  %v92_v51 = vld [vmem:[#allocation6 + $0x140] sm:$0xff]  ;;  %v279_v52 = vsel %vm1531_vm1, 1, %v2587_v2  ;;  %v2693_v53 = vpack.c.bf16 %v85_v47, %v82_v43  ;;  %v2696_v55 = vpack.c.bf16 %v75_v49, %v72_v48  ;;  %v91_v57 = vld [vmem:[#allocation6 + $0x138] sm:$0xff]  ;;  %v454_v21 = vsel %vm1534_vm2, 1, %v2587_v2 }
  0x33   :  { %1980 = vmatpush1.bf16.msra.mxu0 %v2658_v22  ;;  %281 = vperm.xlu0 %2426, %v279_v52   ;;  %v88_v54 = vld [vmem:[#allocation6 + $0x120] sm:$0xff]  ;;  %v2699_v56 = vpack.c.bf16 %v92_v51, %v89_v50  ;;  %v78_v58 = vld [vmem:[#allocation6 + $0xd0] sm:$0xff]  ;;  %v81_v59 = vld [vmem:[#allocation6 + $0xe8] sm:$0xff]  ;;  %vm1540_vm4 = vcmp.ge.s32.totalorder %v2684_v45, 4  ;;  %vm1543_vm5 = vcmp.ge.s32.totalorder %v2684_v45, 5  ;;  %vm1546_vm6 = vcmp.ge.s32.totalorder %v2684_v45, 6 }
  0x34   :  { %1982 = vmatprep.subr.bf16.mxu0 %v2661_v24  ;;  %2006 = vmatpush3.bf16.msra.mxu1 %v2669_v35  ;;  %v95_v60 = vld [vmem:[#allocation6 + $0x158] sm:$0xff]  ;;  %v98_v61 = vld [vmem:[#allocation6 + $0x170] sm:$0xff]  ;;  %v2703_v62 = vpack.c.bf16 %v91_v57, %v88_v54  ;;  %v2706_v3 = vpack.c.bf16 %v81_v59, %v78_v58  ;;  %v97_v5 = vld [vmem:[#allocation6 + $0x168] sm:$0xff]  ;;  %vm1549_vm7 = vcmp.ge.s32.totalorder %v2684_v45, 7  ;;  %vm1552_vm8 = vcmp.ge.s32.totalorder %v2684_v45, 8 }
  0x35   :  { %2007 = vmatprep.subr.bf16.mxu1 %v2584_v0  ;;  %v94_v63 = vld [vmem:[#allocation6 + $0x150] sm:$0xff]  ;;  %v2709_v4 = vpack.c.bf16 %v98_v61, %v95_v60  ;;  %v84_v7 = vld [vmem:[#allocation6 + $0x100] sm:$0xff]  ;;  %v87_v8 = vld [vmem:[#allocation6 + $0x118] sm:$0xff]  ;;  %v629_v60 = vsel %vm1537_vm3, 1, %v2587_v2 }
  0x36   :  { %v2713_v9 = vpack.c.bf16 %v97_v5, %v94_v63  ;;  %v2716_v12 = vpack.c.bf16 %v87_v8, %v84_v7  ;;  %v90_v13 = vld [vmem:[#allocation6 + $0x130] sm:$0xff]  ;;  %v93_v14 = vld [vmem:[#allocation6 + $0x148] sm:$0xff]  ;;  %v96_v18 = vld [vmem:[#allocation6 + $0x160] sm:$0xff]  ;;  %631 = vperm.xlu1 %2427, %v629_v60  }
  0x37   :  { %1984 = vmatpush1.bf16.msra.mxu0 %v2666_v33  ;;  %v2722_v15 = vpack.c.bf16 %v93_v14, %v90_v13  ;;  %v99_v19 = vld [vmem:[#allocation6 + $0x178] sm:$0xff]  ;;  %456 = vperm.xlu0 %2426, %v454_v21   ;;  %v111_v23 = vld [vmem:[#allocation3] sm:$0xff]  ;;  %v112_v29 = vld [vmem:[#allocation3 + $0x8] sm:$0xff] }
  0x38   :  { %1986 = vmatprep.subr.bf16.mxu0 %v2672_v36  ;;  %2009 = vmatpush3.bf16.msra.mxu1 %v2679_v44  ;;  %v2728_v20 = vpack.c.bf16 %v99_v19, %v96_v18  ;;  %v2774_v40 = vld [vmem:[%s3054_s2] ss:$0 sm:$0xff]  ;;  %v113_v48 = vld [vmem:[#allocation3 + $0x10] sm:$0xff]  ;;  %v286_v61 = vld [vmem:[#allocation3 + $0x18] sm:$0xff]  ;;  %s2588_s2 = smov [#allocation8]  }
  0x39   :  { %2010 = vmatprep.subr.bf16.mxu1 %v2584_v0  ;;  %v287_v18 = vld [vmem:[#allocation3 + $0x20] sm:$0xff]  ;;  %s1518_s16 = sshll.u32 %s2588_s2, 4  ;;  %s1519_s16 = int_to_ptr.vmem [resolvable:$true] %s1518_s16 }
  0x3a   :  { %s2552_s17 = scalar_lea.vmem %s1519_s16, 128  ;;  %p2557_p3 = scmp.lt.s32.totalorder %s1519_s16, %s1519_s16 }
  0x3b   :  { %1988 = vmatpush1.bf16.msra.mxu0 %v2676_v42  ;;  %p2553_p2 = scmp.ne.s32.totalorder %s1519_s16, %s2552_s17  ;;  %p2558_p4 = scmp.lt.s32.totalorder %s2552_s17, %s2552_s17 }
  0x3c   :  { %1990 = vmatprep.subr.bf16.mxu0 %v2687_v46  ;;  %2012 = vmatpush3.bf16.msra.mxu1 %v2696_v55 }
  0x3d   :  { %2013 = vmatprep.subr.bf16.mxu1 %v2584_v0  ;;  %p2559_p5 = por %p2558_p4, %p2557_p3 }
  0x3f   :  { %1992 = vmatpush1.bf16.msra.mxu0 %v2693_v53  ;;  %p2560_p6 = pnand %p2559_p5, %p2553_p2 }
  0x40   :  { %1994 = vmatprep.subr.bf16.mxu0 %v2699_v56  ;;  %2015 = vmatpush3.bf16.msra.mxu1 %v2706_v3 }
  0x41   :  { %2016 = vmatprep.subr.bf16.mxu1 %v2584_v0 }
  0x43   :  { %1996 = vmatpush1.bf16.msra.mxu0 %v2703_v62 }
  0x44   :  { %1998 = vmatprep.subr.bf16.mxu0 %v2709_v4  ;;  %2018 = vmatpush3.bf16.msra.mxu1 %v2716_v12 }
  0x45   :  { %2019 = vmatprep.subr.bf16.mxu1 %v2584_v0 }
  0x47   :  { %2000 = vmatpush1.bf16.msra.mxu0 %v2713_v9 }
  0x48   :  { %2026 = vmatprep.subr.bf16.mxu0 %v2644_v6  ;;  %2021 = vmatpush3.bf16.msra.mxu1 %v2722_v15 }
  0x49   :  { %2022 = vmatprep.subr.bf16.mxu1 %v2584_v0 }
  0x4a   :  { %179 = vmatmul.mubr.f32.vlgmr.msra.gmra.mrb[0].mxu0 %v2585_v1 }
  0x4b   :  { %2028 = vmatpush1.bf16.msra.mxu0 %v2646_v10  ;;  %353 = vmatprep.mubr.f32.mxu0 %v2585_v1 }
  0x4c   :  { %2030 = vmatprep.subr.bf16.mxu0 %v2648_v11  ;;  %2024 = vmatpush3.bf16.msra.mxu1 %v2728_v20 }
  0x4d   :  { %2057 = vmatprep.subr.bf16.mxu1 %v2584_v0 }
  0x4f   :  { %2032 = vmatpush1.bf16.msra.mxu0 %v2652_v16  ;;  %1722 = vmatmul.mubr.f32.vlgmr.msra.gmra.mrb[0].mxu1 %v2585_v1 }
  0x50   :  { %2034 = vmatprep.subr.bf16.mxu0 %v2655_v17  ;;  %2059 = vmatpush3.bf16.msra.mxu1 %v2663_v30 }
  0x51   :  { %2060 = vmatprep.subr.bf16.mxu1 %v2584_v0  ;;  %1756 = vmatprep.mubr.msk.f32.mxu1 %vm2586_vm0, %v2585_v1 }
  0x53   :  { %2036 = vmatpush1.bf16.msra.mxu0 %v2658_v22 }
  0x54   :  { %2038 = vmatprep.subr.bf16.mxu0 %v2661_v24  ;;  %2062 = vmatpush3.bf16.msra.mxu1 %v2669_v35 }
  0x55   :  { %2063 = vmatprep.subr.bf16.mxu1 %v2584_v0 }
  0x57   :  { %2040 = vmatpush1.bf16.msra.mxu0 %v2666_v33 }
  0x58   :  { %2042 = vmatprep.subr.bf16.mxu0 %v2672_v36  ;;  %2065 = vmatpush3.bf16.msra.mxu1 %v2679_v44 }
  0x59   :  { %2066 = vmatprep.subr.bf16.mxu1 %v2584_v0 }
  0x5b   :  { %2044 = vmatpush1.bf16.msra.mxu0 %v2676_v42 }
  0x5c   :  { %2046 = vmatprep.subr.bf16.mxu0 %v2687_v46  ;;  %2068 = vmatpush3.bf16.msra.mxu1 %v2696_v55 }
  0x5d   :  { %2069 = vmatprep.subr.bf16.mxu1 %v2584_v0 }
  0x5f   :  { %2048 = vmatpush1.bf16.msra.mxu0 %v2693_v53 }
  0x60   :  { %2050 = vmatprep.subr.bf16.mxu0 %v2699_v56  ;;  %2071 = vmatpush3.bf16.msra.mxu1 %v2706_v3 }
  0x61   :  { %2072 = vmatprep.subr.bf16.mxu1 %v2584_v0 }
  0x63   :  { %2052 = vmatpush1.bf16.msra.mxu0 %v2703_v62 }
  0x64   :  { %2054 = vmatprep.subr.bf16.mxu0 %v2709_v4  ;;  %2074 = vmatpush3.bf16.msra.mxu1 %v2716_v12 }
  0x65   :  { %2075 = vmatprep.subr.bf16.mxu1 %v2584_v0 }
  0x67   :  { %2056 = vmatpush1.bf16.msra.mxu0 %v2713_v9 }
  0x68   :  { %2082 = vmatprep.subr.bf16.mxu0 %v2644_v6  ;;  %2077 = vmatpush3.bf16.msra.mxu1 %v2722_v15 }
  0x69   :  { %2078 = vmatprep.subr.bf16.mxu1 %v2584_v0 }
  0x6c   :  { %2080 = vmatpush3.bf16.msra.mxu1 %v2728_v20 }
  0x6d   :  { %2113 = vmatprep.subr.bf16.mxu1 %v2584_v0 }
 0x11d   :  { %v180_v25 = vpop.f32.mrb[0].mxu0 }
 0x11e   :  { %v255_v26 = vadd.f32 %v180_v25, %v111_v23  ;;  %v182_v27 = vpop.f32.mrb[1].mxu0 }
 0x11f   :  { %v262_v32 = vadd.f32 %v182_v27, %v112_v29  ;;  %v288_v29 = vld [vmem:[#allocation3 + $0x28] sm:$0xff] }
 0x120   :  { %v1529_v28 = vmul.f32 -1.442695, %v255_v26 }
 0x121   :  { %v1530_v37 = vmul.f32 -1.442695, %v262_v32 }
 0x122   :  { %2428 = vpow2.f32 %v1529_v28  ;;  %v251_v31 = vpop.f32.mrb[0].mxu1 }
 0x123   :  { %v1723_v34 = vpop.f32.mrb[1].mxu1  ;;  %2430 = vpow2.f32 %v1530_v37  ;;  %v269_v41 = vadd.f32 %v2774_v40, %v251_v31 }
 0x12c   :  { %v2429_v38 = vpop.eup %2428 }
 0x12d   :  { %v259_v39 = vadd.f32 1.0, %v2429_v38  ;;  %v2431_v43 = vpop.eup %2430 }
 0x12e   :  { %v266_v50 = vadd.f32 1.0, %v2431_v43 }
 0x12f   :  { %2432 = vrcp.f32 %v259_v39 }
 0x139   :  { %v2433_v47 = vpop.eup %2432 }
 0x13a   :  { %v270_v49 = vmul.f32 %v2433_v47, %v269_v41  ;;  %v804_v47 = vsel %vm1540_vm4, 1, %v2587_v2 }
 0x13b   :  { %806 = vperm.xlu1 %2427, %v804_v47   ;;  %v637_v47 = vld [vmem:[#allocation3 + $0x50] sm:$0xff] }
 0x13c   :  { %v271_v51 = vadd.f32 %v270_v49, %v113_v48  ;;  %v461_v48 = vld [vmem:[#allocation3 + $0x30] sm:$0xff] }
 0x13e   :  { %2434 = vtanh.f32 %v271_v51 }
 0x13f   :  { %2436 = vrcp.f32 %v266_v50 }
 0x148   :  { %v2435_v52 = vpop.eup %2434 }
 0x149   :  { %v273_v54 = vsub.f32 0.0, %v2435_v52  ;;  %v2437_v57 = vpop.eup %2436 }
 0x14b   :  { %v274_v58 = vmul.f32 %v2437_v57, %v273_v54 }
 0x14d   :  { %v2777_v59 = vadd.f32 %v2435_v52, %v274_v58  ;;  %v462_v58 = vld [vmem:[#allocation3 + $0x38] sm:$0xff] }
 0x14f   :  { %354 = vmatmul.mubr.f32.vlgmr.msra.gmra.mrb[2].mxu0 %v2777_v59  ;;  %1757 = vmatmul.mubr.f32.vlgmr.msra.gmra.mrb[2].mxu1 %v2777_v59 }
 0x150   :  { %2084 = vmatpush1.bf16.msra.mxu0 %v2646_v10  ;;  %2115 = vmatpush3.bf16.msra.mxu1 %v2663_v30 }
 0x151   :  { %2086 = vmatprep.subr.bf16.mxu0 %v2648_v11  ;;  %2116 = vmatprep.subr.bf16.mxu1 %v2584_v0 }
 0x152   :  { %528 = vmatprep.mubr.f32.mxu0 %v2585_v1  ;;  %1791 = vmatprep.mubr.msk.f32.mxu1 %vm2586_vm0, %v2585_v1 }
 0x154   :  { %2088 = vmatpush1.bf16.msra.mxu0 %v2652_v16  ;;  %2118 = vmatpush3.bf16.msra.mxu1 %v2669_v35 }
 0x155   :  { %2090 = vmatprep.subr.bf16.mxu0 %v2655_v17  ;;  %2119 = vmatprep.subr.bf16.mxu1 %v2584_v0 }
 0x158   :  { %2092 = vmatpush1.bf16.msra.mxu0 %v2658_v22  ;;  %2121 = vmatpush3.bf16.msra.mxu1 %v2679_v44 }
 0x159   :  { %2094 = vmatprep.subr.bf16.mxu0 %v2661_v24  ;;  %2122 = vmatprep.subr.bf16.mxu1 %v2584_v0 }
 0x15c   :  { %2096 = vmatpush1.bf16.msra.mxu0 %v2666_v33  ;;  %2124 = vmatpush3.bf16.msra.mxu1 %v2696_v55 }
 0x15d   :  { %2098 = vmatprep.subr.bf16.mxu0 %v2672_v36  ;;  %2125 = vmatprep.subr.bf16.mxu1 %v2584_v0 }
 0x160   :  { %2100 = vmatpush1.bf16.msra.mxu0 %v2676_v42  ;;  %2127 = vmatpush3.bf16.msra.mxu1 %v2706_v3 }
 0x161   :  { %2102 = vmatprep.subr.bf16.mxu0 %v2687_v46  ;;  %2128 = vmatprep.subr.bf16.mxu1 %v2584_v0 }
 0x164   :  { %2104 = vmatpush1.bf16.msra.mxu0 %v2693_v53  ;;  %2130 = vmatpush3.bf16.msra.mxu1 %v2716_v12 }
 0x165   :  { %2106 = vmatprep.subr.bf16.mxu0 %v2699_v56  ;;  %2131 = vmatprep.subr.bf16.mxu1 %v2584_v0 }
 0x168   :  { %2108 = vmatpush1.bf16.msra.mxu0 %v2703_v62  ;;  %2133 = vmatpush3.bf16.msra.mxu1 %v2722_v15 }
 0x169   :  { %2110 = vmatprep.subr.bf16.mxu0 %v2709_v4  ;;  %2134 = vmatprep.subr.bf16.mxu1 %v2584_v0 }
 0x16c   :  { %2112 = vmatpush1.bf16.msra.mxu0 %v2713_v9  ;;  %2136 = vmatpush3.bf16.msra.mxu1 %v2728_v20 }
 0x16d   :  { %2138 = vmatprep.subr.bf16.mxu0 %v2644_v6  ;;  %2169 = vmatprep.subr.bf16.mxu1 %v2584_v0 }
 0x222   :  { %v355_v63 = vpop.f32.mrb[2].mxu0  ;;  %v426_v5 = vpop.f32.mrb[2].mxu1 }
 0x223   :  { %v430_v7 = vadd.f32 %v355_v63, %v286_v61  ;;  %v357_v8 = vpop.f32.mrb[3].mxu0  ;;  %v1758_v13 = vpop.f32.mrb[3].mxu1  ;;  %v444_v27 = vadd.f32 %v2774_v40, %v426_v5 }
 0x224   :  { %v437_v19 = vadd.f32 %v357_v8, %v287_v18 }
 0x225   :  { %v1532_v14 = vmul.f32 -1.442695, %v430_v7 }
 0x226   :  { %v1533_v21 = vmul.f32 -1.442695, %v437_v19 }
 0x227   :  { %2438 = vpow2.f32 %v1532_v14  ;;  %v463_v14 = vld [vmem:[#allocation3 + $0x40] sm:$0xff] }
 0x228   :  { %2440 = vpow2.f32 %v1533_v21 }
 0x231   :  { %v2439_v23 = vpop.eup %2438 }
 0x232   :  { %v434_v25 = vadd.f32 1.0, %v2439_v23  ;;  %v2441_v26 = vpop.eup %2440 }
 0x233   :  { %v441_v34 = vadd.f32 1.0, %v2441_v26 }
 0x234   :  { %2442 = vrcp.f32 %v434_v25 }
 0x23e   :  { %v2443_v28 = vpop.eup %2442 }
 0x23f   :  { %v445_v31 = vmul.f32 %v2443_v28, %v444_v27 }
 0x241   :  { %v446_v32 = vadd.f32 %v445_v31, %v288_v29  ;;  %v979_v29 = vsel %vm1543_vm5, 1, %v2587_v2  ;;  %v636_v31 = vld [vmem:[#allocation3 + $0x48] sm:$0xff] }
 0x242   :  { %981 = vperm.xlu0 %2426, %v979_v29  }
 0x243   :  { %2444 = vtanh.f32 %v446_v32 }
 0x244   :  { %2446 = vrcp.f32 %v441_v34 }
 0x24d   :  { %v2445_v37 = vpop.eup %2444 }
 0x24e   :  { %v448_v38 = vsub.f32 %v2777_v59, %v2445_v37  ;;  %v2447_v39 = vpop.eup %2446 }
 0x250   :  { %v449_v41 = vmul.f32 %v2447_v39, %v448_v38 }
 0x252   :  { %v2820_v43 = vadd.f32 %v2445_v37, %v449_v41 }
 0x254   :  { %529 = vmatmul.mubr.f32.vlgmr.msra.gmra.mrb[4].mxu0 %v2820_v43  ;;  %1792 = vmatmul.mubr.f32.vlgmr.msra.gmra.mrb[4].mxu1 %v2820_v43 }
 0x255   :  { %2140 = vmatpush1.bf16.msra.mxu0 %v2646_v10  ;;  %2171 = vmatpush3.bf16.msra.mxu1 %v2663_v30 }
 0x256   :  { %2142 = vmatprep.subr.bf16.mxu0 %v2648_v11  ;;  %2172 = vmatprep.subr.bf16.mxu1 %v2584_v0 }
 0x257   :  { %703 = vmatprep.mubr.f32.mxu0 %v2585_v1  ;;  %1826 = vmatprep.mubr.msk.f32.mxu1 %vm2586_vm0, %v2585_v1 }
 0x259   :  { %2144 = vmatpush1.bf16.msra.mxu0 %v2652_v16  ;;  %2174 = vmatpush3.bf16.msra.mxu1 %v2669_v35 }
 0x25a   :  { %2146 = vmatprep.subr.bf16.mxu0 %v2655_v17  ;;  %2175 = vmatprep.subr.bf16.mxu1 %v2584_v0 }
 0x25d   :  { %2148 = vmatpush1.bf16.msra.mxu0 %v2658_v22  ;;  %2177 = vmatpush3.bf16.msra.mxu1 %v2679_v44 }
 0x25e   :  { %2150 = vmatprep.subr.bf16.mxu0 %v2661_v24  ;;  %2178 = vmatprep.subr.bf16.mxu1 %v2584_v0 }
 0x261   :  { %2152 = vmatpush1.bf16.msra.mxu0 %v2666_v33  ;;  %2180 = vmatpush3.bf16.msra.mxu1 %v2696_v55 }
 0x262   :  { %2154 = vmatprep.subr.bf16.mxu0 %v2672_v36  ;;  %2181 = vmatprep.subr.bf16.mxu1 %v2584_v0 }
 0x265   :  { %2156 = vmatpush1.bf16.msra.mxu0 %v2676_v42  ;;  %2183 = vmatpush3.bf16.msra.mxu1 %v2706_v3 }
 0x266   :  { %2158 = vmatprep.subr.bf16.mxu0 %v2687_v46  ;;  %2184 = vmatprep.subr.bf16.mxu1 %v2584_v0 }
 0x269   :  { %2160 = vmatpush1.bf16.msra.mxu0 %v2693_v53  ;;  %2186 = vmatpush3.bf16.msra.mxu1 %v2716_v12 }
 0x26a   :  { %2162 = vmatprep.subr.bf16.mxu0 %v2699_v56  ;;  %2187 = vmatprep.subr.bf16.mxu1 %v2584_v0 }
 0x26d   :  { %2164 = vmatpush1.bf16.msra.mxu0 %v2703_v62  ;;  %2189 = vmatpush3.bf16.msra.mxu1 %v2722_v15 }
 0x26e   :  { %2166 = vmatprep.subr.bf16.mxu0 %v2709_v4  ;;  %2190 = vmatprep.subr.bf16.mxu1 %v2584_v0 }
 0x271   :  { %2168 = vmatpush1.bf16.msra.mxu0 %v2713_v9  ;;  %2192 = vmatpush3.bf16.msra.mxu1 %v2728_v20 }
 0x272   :  { %2194 = vmatprep.subr.bf16.mxu0 %v2644_v6  ;;  %2225 = vmatprep.subr.bf16.mxu1 %v2584_v0 }
 0x327   :  { %v530_v49 = vpop.f32.mrb[4].mxu0  ;;  %v601_v50 = vpop.f32.mrb[4].mxu1 }
 0x328   :  { %v605_v51 = vadd.f32 %v530_v49, %v461_v48  ;;  %v532_v52 = vpop.f32.mrb[5].mxu0  ;;  %v1793_v54 = vpop.f32.mrb[5].mxu1  ;;  %v619_v8 = vadd.f32 %v2774_v40, %v601_v50 }
 0x329   :  { %v612_v60 = vadd.f32 %v532_v52, %v462_v58  ;;  %v638_v58 = vld [vmem:[#allocation3 + $0x58] sm:$0xff] }
 0x32a   :  { %v1535_v57 = vmul.f32 -1.442695, %v605_v51 }
 0x32b   :  { %v1536_v61 = vmul.f32 -1.442695, %v612_v60 }
 0x32c   :  { %2448 = vpow2.f32 %v1535_v57 }
 0x32d   :  { %2450 = vpow2.f32 %v1536_v61 }
 0x336   :  { %v2449_v63 = vpop.eup %2448 }
 0x337   :  { %v609_v5 = vadd.f32 1.0, %v2449_v63  ;;  %v2451_v7 = vpop.eup %2450 }
 0x338   :  { %v616_v21 = vadd.f32 1.0, %v2451_v7 }
 0x339   :  { %2452 = vrcp.f32 %v609_v5 }
 0x343   :  { %v2453_v13 = vpop.eup %2452 }
 0x344   :  { %v620_v18 = vmul.f32 %v2453_v13, %v619_v8 }
 0x346   :  { %v621_v19 = vadd.f32 %v620_v18, %v463_v14  ;;  %v1154_v18 = vsel %vm1546_vm6, 1, %v2587_v2 }
 0x347   :  { %1156 = vperm.xlu1 %2427, %v1154_v18  }
 0x348   :  { %2454 = vtanh.f32 %v621_v19  ;;  %v811_v19 = vld [vmem:[#allocation3 + $0x60] sm:$0xff] }
 0x349   :  { %2456 = vrcp.f32 %v616_v21 }
 0x352   :  { %v2455_v23 = vpop.eup %2454 }
 0x353   :  { %v623_v25 = vsub.f32 %v2820_v43, %v2455_v23  ;;  %v2457_v26 = vpop.eup %2456 }
 0x355   :  { %v624_v27 = vmul.f32 %v2457_v26, %v623_v25 }
 0x357   :  { %v2863_v28 = vadd.f32 %v2455_v23, %v624_v27 }
 0x359   :  { %704 = vmatmul.mubr.f32.vlgmr.msra.gmra.mrb[6].mxu0 %v2863_v28  ;;  %1827 = vmatmul.mubr.f32.vlgmr.msra.gmra.mrb[6].mxu1 %v2863_v28 }
 0x35a   :  { %2196 = vmatpush1.bf16.msra.mxu0 %v2646_v10  ;;  %2227 = vmatpush3.bf16.msra.mxu1 %v2663_v30 }
 0x35b   :  { %2198 = vmatprep.subr.bf16.mxu0 %v2648_v11  ;;  %2228 = vmatprep.subr.bf16.mxu1 %v2584_v0 }
 0x35c   :  { %878 = vmatprep.mubr.f32.mxu0 %v2585_v1  ;;  %1861 = vmatprep.mubr.msk.f32.mxu1 %vm2586_vm0, %v2585_v1 }
 0x35e   :  { %2200 = vmatpush1.bf16.msra.mxu0 %v2652_v16  ;;  %2230 = vmatpush3.bf16.msra.mxu1 %v2669_v35 }
 0x35f   :  { %2202 = vmatprep.subr.bf16.mxu0 %v2655_v17  ;;  %2231 = vmatprep.subr.bf16.mxu1 %v2584_v0 }
 0x362   :  { %2204 = vmatpush1.bf16.msra.mxu0 %v2658_v22  ;;  %2233 = vmatpush3.bf16.msra.mxu1 %v2679_v44 }
 0x363   :  { %2206 = vmatprep.subr.bf16.mxu0 %v2661_v24  ;;  %2234 = vmatprep.subr.bf16.mxu1 %v2584_v0 }
 0x366   :  { %2208 = vmatpush1.bf16.msra.mxu0 %v2666_v33  ;;  %2236 = vmatpush3.bf16.msra.mxu1 %v2696_v55 }
 0x367   :  { %2210 = vmatprep.subr.bf16.mxu0 %v2672_v36  ;;  %2237 = vmatprep.subr.bf16.mxu1 %v2584_v0 }
 0x36a   :  { %2212 = vmatpush1.bf16.msra.mxu0 %v2676_v42  ;;  %2239 = vmatpush3.bf16.msra.mxu1 %v2706_v3 }
 0x36b   :  { %2214 = vmatprep.subr.bf16.mxu0 %v2687_v46  ;;  %2240 = vmatprep.subr.bf16.mxu1 %v2584_v0 }
 0x36e   :  { %2216 = vmatpush1.bf16.msra.mxu0 %v2693_v53  ;;  %2242 = vmatpush3.bf16.msra.mxu1 %v2716_v12 }
 0x36f   :  { %2218 = vmatprep.subr.bf16.mxu0 %v2699_v56  ;;  %2243 = vmatprep.subr.bf16.mxu1 %v2584_v0 }
 0x372   :  { %2220 = vmatpush1.bf16.msra.mxu0 %v2703_v62  ;;  %2245 = vmatpush3.bf16.msra.mxu1 %v2722_v15 }
 0x373   :  { %2222 = vmatprep.subr.bf16.mxu0 %v2709_v4  ;;  %2246 = vmatprep.subr.bf16.mxu1 %v2584_v0 }
 0x376   :  { %2224 = vmatpush1.bf16.msra.mxu0 %v2713_v9  ;;  %2248 = vmatpush3.bf16.msra.mxu1 %v2728_v20 }
 0x377   :  { %2250 = vmatprep.subr.bf16.mxu0 %v2644_v6  ;;  %2281 = vmatprep.subr.bf16.mxu1 %v2584_v0 }
 0x42c   :  { %v705_v32 = vpop.f32.mrb[6].mxu0  ;;  %v776_v34 = vpop.f32.mrb[6].mxu1 }
 0x42d   :  { %v780_v37 = vadd.f32 %v705_v32, %v636_v31  ;;  %v707_v38 = vpop.f32.mrb[7].mxu0  ;;  %v1828_v39 = vpop.f32.mrb[7].mxu1  ;;  %v794_v54 = vadd.f32 %v2774_v40, %v776_v34  ;;  %v812_v31 = vld [vmem:[#allocation3 + $0x68] sm:$0xff] }
 0x42e   :  { %v787_v48 = vadd.f32 %v707_v38, %v637_v47 }
 0x42f   :  { %v1538_v41 = vmul.f32 -1.442695, %v780_v37 }
 0x430   :  { %v1539_v49 = vmul.f32 -1.442695, %v787_v48  ;;  %v813_v48 = vld [vmem:[#allocation3 + $0x70] sm:$0xff] }
 0x431   :  { %2458 = vpow2.f32 %v1538_v41 }
 0x432   :  { %2460 = vpow2.f32 %v1539_v49 }
 0x43b   :  { %v2459_v50 = vpop.eup %2458 }
 0x43c   :  { %v784_v51 = vadd.f32 1.0, %v2459_v50  ;;  %v2461_v52 = vpop.eup %2460 }
 0x43d   :  { %v791_v63 = vadd.f32 1.0, %v2461_v52 }
 0x43e   :  { %2462 = vrcp.f32 %v784_v51 }
 0x448   :  { %v2463_v57 = vpop.eup %2462 }
 0x449   :  { %v795_v60 = vmul.f32 %v2463_v57, %v794_v54 }
 0x44b   :  { %v796_v61 = vadd.f32 %v795_v60, %v638_v58 }
 0x44d   :  { %2464 = vtanh.f32 %v796_v61  ;;  %v1329_v61 = vsel %vm1549_vm7, 1, %v2587_v2 }
 0x44e   :  { %2466 = vrcp.f32 %v791_v63  ;;  %1331 = vperm.xlu0 %2426, %v1329_v61   ;;  %v986_v63 = vld [vmem:[#allocation3 + $0x78] sm:$0xff] }
 0x457   :  { %v2465_v5 = vpop.eup %2464 }
 0x458   :  { %v798_v7 = vsub.f32 %v2863_v28, %v2465_v5  ;;  %v2467_v8 = vpop.eup %2466 }
 0x45a   :  { %v799_v13 = vmul.f32 %v2467_v8, %v798_v7 }
 0x45c   :  { %v2906_v14 = vadd.f32 %v2465_v5, %v799_v13 }
 0x45e   :  { %879 = vmatmul.mubr.f32.vlgmr.msra.gmra.mrb[8].mxu0 %v2906_v14  ;;  %1862 = vmatmul.mubr.f32.vlgmr.msra.gmra.mrb[8].mxu1 %v2906_v14 }
 0x45f   :  { %2252 = vmatpush1.bf16.msra.mxu0 %v2646_v10  ;;  %2283 = vmatpush3.bf16.msra.mxu1 %v2663_v30 }
 0x460   :  { %2254 = vmatprep.subr.bf16.mxu0 %v2648_v11  ;;  %2284 = vmatprep.subr.bf16.mxu1 %v2584_v0 }
 0x461   :  { %1053 = vmatprep.mubr.f32.mxu0 %v2585_v1  ;;  %1896 = vmatprep.mubr.msk.f32.mxu1 %vm2586_vm0, %v2585_v1 }
 0x463   :  { %2256 = vmatpush1.bf16.msra.mxu0 %v2652_v16  ;;  %2286 = vmatpush3.bf16.msra.mxu1 %v2669_v35 }
 0x464   :  { %2258 = vmatprep.subr.bf16.mxu0 %v2655_v17  ;;  %2287 = vmatprep.subr.bf16.mxu1 %v2584_v0 }
 0x467   :  { %2260 = vmatpush1.bf16.msra.mxu0 %v2658_v22  ;;  %2289 = vmatpush3.bf16.msra.mxu1 %v2679_v44 }
 0x468   :  { %2262 = vmatprep.subr.bf16.mxu0 %v2661_v24  ;;  %2290 = vmatprep.subr.bf16.mxu1 %v2584_v0 }
 0x46b   :  { %2264 = vmatpush1.bf16.msra.mxu0 %v2666_v33  ;;  %2292 = vmatpush3.bf16.msra.mxu1 %v2696_v55 }
 0x46c   :  { %2266 = vmatprep.subr.bf16.mxu0 %v2672_v36  ;;  %2293 = vmatprep.subr.bf16.mxu1 %v2584_v0 }
 0x46f   :  { %2268 = vmatpush1.bf16.msra.mxu0 %v2676_v42  ;;  %2295 = vmatpush3.bf16.msra.mxu1 %v2706_v3 }
 0x470   :  { %2270 = vmatprep.subr.bf16.mxu0 %v2687_v46  ;;  %2296 = vmatprep.subr.bf16.mxu1 %v2584_v0 }
 0x473   :  { %2272 = vmatpush1.bf16.msra.mxu0 %v2693_v53  ;;  %2298 = vmatpush3.bf16.msra.mxu1 %v2716_v12 }
 0x474   :  { %2274 = vmatprep.subr.bf16.mxu0 %v2699_v56  ;;  %2299 = vmatprep.subr.bf16.mxu1 %v2584_v0 }
 0x477   :  { %2276 = vmatpush1.bf16.msra.mxu0 %v2703_v62  ;;  %2301 = vmatpush3.bf16.msra.mxu1 %v2722_v15 }
 0x478   :  { %2278 = vmatprep.subr.bf16.mxu0 %v2709_v4  ;;  %2302 = vmatprep.subr.bf16.mxu1 %v2584_v0 }
 0x47b   :  { %2280 = vmatpush1.bf16.msra.mxu0 %v2713_v9  ;;  %2304 = vmatpush3.bf16.msra.mxu1 %v2728_v20 }
 0x47c   :  { %2306 = vmatprep.subr.bf16.mxu0 %v2644_v6  ;;  %2337 = vmatprep.subr.bf16.mxu1 %v2584_v0 }
 0x531   :  { %v880_v21 = vpop.f32.mrb[8].mxu0  ;;  %v951_v23 = vpop.f32.mrb[8].mxu1 }
 0x532   :  { %v955_v25 = vadd.f32 %v880_v21, %v811_v19  ;;  %v882_v26 = vpop.f32.mrb[9].mxu0  ;;  %v1863_v27 = vpop.f32.mrb[9].mxu1  ;;  %v969_v41 = vadd.f32 %v2774_v40, %v951_v23  ;;  %v987_v21 = vld [vmem:[#allocation3 + $0x80] sm:$0xff] }
 0x533   :  { %v962_v32 = vadd.f32 %v882_v26, %v812_v31 }
 0x534   :  { %v1541_v29 = vmul.f32 -1.442695, %v955_v25 }
 0x535   :  { %v1542_v34 = vmul.f32 -1.442695, %v962_v32  ;;  %v988_v32 = vld [vmem:[#allocation3 + $0x88] sm:$0xff] }
 0x536   :  { %2468 = vpow2.f32 %v1541_v29 }
 0x537   :  { %2470 = vpow2.f32 %v1542_v34 }
 0x540   :  { %v2469_v37 = vpop.eup %2468 }
 0x541   :  { %v959_v38 = vadd.f32 1.0, %v2469_v37  ;;  %v2471_v39 = vpop.eup %2470 }
 0x542   :  { %v966_v51 = vadd.f32 1.0, %v2471_v39 }
 0x543   :  { %2472 = vrcp.f32 %v959_v38 }
 0x54d   :  { %v2473_v47 = vpop.eup %2472 }
 0x54e   :  { %v970_v49 = vmul.f32 %v2473_v47, %v969_v41 }
 0x550   :  { %v971_v50 = vadd.f32 %v970_v49, %v813_v48 }
 0x552   :  { %2474 = vtanh.f32 %v971_v50 }
 0x553   :  { %2476 = vrcp.f32 %v966_v51 }
 0x55c   :  { %v2475_v52 = vpop.eup %2474 }
 0x55d   :  { %v973_v54 = vsub.f32 %v2906_v14, %v2475_v52  ;;  %v2477_v57 = vpop.eup %2476 }
 0x55f   :  { %v974_v58 = vmul.f32 %v2477_v57, %v973_v54 }
 0x561   :  { %v2949_v60 = vadd.f32 %v2475_v52, %v974_v58  ;;  %v1337_v58 = vld [vmem:[#allocation3 + $0xb0] sm:$0xff] }
 0x563   :  { %1054 = vmatmul.mubr.f32.vlgmr.msra.gmra.mrb[10].mxu0 %v2949_v60  ;;  %1897 = vmatmul.mubr.f32.vlgmr.msra.gmra.mrb[10].mxu1 %v2949_v60 }
 0x564   :  { %2308 = vmatpush1.bf16.msra.mxu0 %v2646_v10  ;;  %2339 = vmatpush3.bf16.msra.mxu1 %v2663_v30 }
 0x565   :  { %2310 = vmatprep.subr.bf16.mxu0 %v2648_v11  ;;  %2340 = vmatprep.subr.bf16.mxu1 %v2584_v0 }
 0x566   :  { %1228 = vmatprep.mubr.f32.mxu0 %v2585_v1  ;;  %1931 = vmatprep.mubr.msk.f32.mxu1 %vm2586_vm0, %v2585_v1 }
 0x568   :  { %2312 = vmatpush1.bf16.msra.mxu0 %v2652_v16  ;;  %2342 = vmatpush3.bf16.msra.mxu1 %v2669_v35 }
 0x569   :  { %2314 = vmatprep.subr.bf16.mxu0 %v2655_v17  ;;  %2343 = vmatprep.subr.bf16.mxu1 %v2584_v0 }
 0x56c   :  { %2316 = vmatpush1.bf16.msra.mxu0 %v2658_v22  ;;  %2345 = vmatpush3.bf16.msra.mxu1 %v2679_v44 }
 0x56d   :  { %2318 = vmatprep.subr.bf16.mxu0 %v2661_v24  ;;  %2346 = vmatprep.subr.bf16.mxu1 %v2584_v0 }
 0x570   :  { %2320 = vmatpush1.bf16.msra.mxu0 %v2666_v33  ;;  %2348 = vmatpush3.bf16.msra.mxu1 %v2696_v55 }
 0x571   :  { %2322 = vmatprep.subr.bf16.mxu0 %v2672_v36  ;;  %2349 = vmatprep.subr.bf16.mxu1 %v2584_v0 }
 0x574   :  { %2324 = vmatpush1.bf16.msra.mxu0 %v2676_v42  ;;  %2351 = vmatpush3.bf16.msra.mxu1 %v2706_v3 }
 0x575   :  { %2326 = vmatprep.subr.bf16.mxu0 %v2687_v46  ;;  %2352 = vmatprep.subr.bf16.mxu1 %v2584_v0 }
 0x578   :  { %2328 = vmatpush1.bf16.msra.mxu0 %v2693_v53  ;;  %2354 = vmatpush3.bf16.msra.mxu1 %v2716_v12 }
 0x579   :  { %2330 = vmatprep.subr.bf16.mxu0 %v2699_v56  ;;  %2355 = vmatprep.subr.bf16.mxu1 %v2584_v0 }
 0x57c   :  { %2332 = vmatpush1.bf16.msra.mxu0 %v2703_v62  ;;  %2357 = vmatpush3.bf16.msra.mxu1 %v2722_v15 }
 0x57d   :  { %2334 = vmatprep.subr.bf16.mxu0 %v2709_v4  ;;  %2358 = vmatprep.subr.bf16.mxu1 %v2584_v0 }
 0x580   :  { %2336 = vmatpush1.bf16.msra.mxu0 %v2713_v9  ;;  %2360 = vmatpush3.bf16.msra.mxu1 %v2728_v20 }
 0x581   :  { %2362 = vmatprep.subr.bf16.mxu0 %v2644_v6  ;;  %2393 = vmatprep.subr.bf16.mxu1 %v2584_v0 }
 0x636   :  { %v1055_v5 = vpop.f32.mrb[10].mxu0  ;;  %v1126_v7 = vpop.f32.mrb[10].mxu1 }
 0x637   :  { %v1130_v8 = vadd.f32 %v1055_v5, %v986_v63  ;;  %v1057_v13 = vpop.f32.mrb[11].mxu0  ;;  %v1898_v18 = vpop.f32.mrb[11].mxu1  ;;  %v1144_v29 = vadd.f32 %v2774_v40, %v1126_v7 }
 0x638   :  { %v1137_v23 = vadd.f32 %v1057_v13, %v987_v21 }
 0x639   :  { %v1544_v19 = vmul.f32 -1.442695, %v1130_v8 }
 0x63a   :  { %v1545_v25 = vmul.f32 -1.442695, %v1137_v23  ;;  %v282_v23 = vpop.permute.xlu0 %281 }
 0x63b   :  { %2478 = vpow2.f32 %v1544_v19  ;;  %v1338_v19 = vld [vmem:[#allocation3 + $0xb8] sm:$0xff]  ;;  %vm283_vm9 = vcmp.eq.s32.totalorder %v282_v23, 1 }
 0x63c   :  { %2480 = vpow2.f32 %v1545_v25 }
 0x645   :  { %v2479_v26 = vpop.eup %2478 }
 0x646   :  { %v1134_v6 = vadd.f32 1.0, %v2479_v26  ;;  %v2481_v27 = vpop.eup %2480 }
 0x647   :  { %v1141_v38 = vadd.f32 1.0, %v2481_v27  ;;  %v457_v27 = vpop.permute.xlu0 %456 }
 0x648   :  { %2482 = vrcp.f32 %v1134_v6  ;;  %v632_v6 = vpop.permute.xlu1 %631  ;;  %vm458_vm10 = vcmp.eq.s32.totalorder %v457_v27, 1 }
 0x649   :  { %vm633_vm11 = vcmp.eq.s32.totalorder %v632_v6, 1 }
 0x652   :  { %v2483_v31 = vpop.eup %2482 }
 0x653   :  { %v1145_v34 = vmul.f32 %v2483_v31, %v1144_v29  ;;  %v807_v29 = vpop.permute.xlu1 %806  ;;  %v982_v31 = vpop.permute.xlu0 %981 }
 0x654   :  { %vm808_vm12 = vcmp.eq.s32.totalorder %v807_v29, 1  ;;  %vm983_vm13 = vcmp.eq.s32.totalorder %v982_v31, 1 }
 0x655   :  { %v1146_v37 = vadd.f32 %v1145_v34, %v988_v32 }
 0x657   :  { %2484 = vtanh.f32 %v1146_v37  ;;  %v1157_v32 = vpop.permute.xlu1 %1156  ;;  %v284_v37 = vsel %vm283_vm9, %v2777_v59, 0.0 }
 0x658   :  { %2486 = vrcp.f32 %v1141_v38  ;;  %v459_v38 = vsel %vm458_vm10, %v2820_v43, %v284_v37  ;;  %vm1158_vm14 = vcmp.eq.s32.totalorder %v1157_v32, 1 }
 0x661   :  { %v2485_v39 = vpop.eup %2484 }
 0x662   :  { %v1148_v41 = vsub.f32 %v2949_v60, %v2485_v39  ;;  %v2487_v47 = vpop.eup %2486 }
 0x664   :  { %v1149_v48 = vmul.f32 %v2487_v47, %v1148_v41  ;;  %v634_v47 = vsel %vm633_vm11, %v2863_v28, %v459_v38 }
 0x666   :  { %v2992_v49 = vadd.f32 %v2485_v39, %v1149_v48  ;;  %v809_v48 = vsel %vm808_vm12, %v2906_v14, %v634_v47 }
 0x668   :  { %1229 = vmatmul.mubr.f32.vlgmr.msra.gmra.mrb[12].mxu0 %v2992_v49  ;;  %1932 = vmatmul.mubr.f32.vlgmr.msra.gmra.mrb[12].mxu1 %v2992_v49 }
 0x669   :  { %2364 = vmatpush1.bf16.msra.mxu0 %v2646_v10  ;;  %2395 = vmatpush3.bf16.msra.mxu1 %v2663_v30  ;;  %v1161_v10 = vld [vmem:[#allocation3 + $0x90] sm:$0xff] }
 0x66a   :  { %2366 = vmatprep.subr.bf16.mxu0 %v2648_v11  ;;  %2396 = vmatprep.subr.bf16.mxu1 %v2584_v0 }
 0x66b   :  { %1403 = vmatprep.mubr.f32.mxu0 %v2585_v1  ;;  %1966 = vmatprep.mubr.msk.f32.mxu1 %vm2586_vm0, %v2585_v1  ;;  %v1504_v1 = vsel %vm1552_vm8, 1, %v2587_v2 }
 0x66c   :  { %1506 = vperm.xlu1 %2427, %v1504_v1  }
 0x66d   :  { %2368 = vmatpush1.bf16.msra.mxu0 %v2652_v16  ;;  %2398 = vmatpush3.bf16.msra.mxu1 %v2669_v35 }
 0x66e   :  { %2370 = vmatprep.subr.bf16.mxu0 %v2655_v17  ;;  %2399 = vmatprep.subr.bf16.mxu1 %v2584_v0 }
 0x671   :  { %2372 = vmatpush1.bf16.msra.mxu0 %v2658_v22  ;;  %2401 = vmatpush3.bf16.msra.mxu1 %v2679_v44 }
 0x672   :  { %2374 = vmatprep.subr.bf16.mxu0 %v2661_v24  ;;  %2402 = vmatprep.subr.bf16.mxu1 %v2584_v0 }
 0x675   :  { %2376 = vmatpush1.bf16.msra.mxu0 %v2666_v33  ;;  %2404 = vmatpush3.bf16.msra.mxu1 %v2696_v55  ;;  %v1162_v33 = vld [vmem:[#allocation3 + $0x98] sm:$0xff] }
 0x676   :  { %2378 = vmatprep.subr.bf16.mxu0 %v2672_v36  ;;  %2405 = vmatprep.subr.bf16.mxu1 %v2584_v0 }
 0x679   :  { %2380 = vmatpush1.bf16.msra.mxu0 %v2676_v42  ;;  %2407 = vmatpush3.bf16.msra.mxu1 %v2706_v3 }
 0x67a   :  { %2382 = vmatprep.subr.bf16.mxu0 %v2687_v46  ;;  %2408 = vmatprep.subr.bf16.mxu1 %v2584_v0  ;;  %v1163_v46 = vld [vmem:[#allocation3 + $0xa0] sm:$0xff] }
 0x67d   :  { %2384 = vmatpush1.bf16.msra.mxu0 %v2693_v53  ;;  %2410 = vmatpush3.bf16.msra.mxu1 %v2716_v12 }
 0x67e   :  { %2386 = vmatprep.subr.bf16.mxu0 %v2699_v56  ;;  %2411 = vmatprep.subr.bf16.mxu1 %v2584_v0 }
 0x681   :  { %2388 = vmatpush1.bf16.msra.mxu0 %v2703_v62  ;;  %2413 = vmatpush3.bf16.msra.mxu1 %v2722_v15  ;;  %v1336_v15 = vld [vmem:[#allocation3 + $0xa8] sm:$0xff] }
 0x682   :  { %2390 = vmatprep.subr.bf16.mxu0 %v2709_v4  ;;  %2414 = vmatprep.subr.bf16.mxu1 %v2584_v0 }
 0x685   :  { %2392 = vmatpush1.bf16.msra.mxu0 %v2713_v9  ;;  %2416 = vmatpush3.bf16.msra.mxu1 %v2728_v20 }
 0x6eb   :  { %v1507_v1 = vpop.permute.xlu1 %1506 }
 0x6ec   :  { %vm1508_vm0 = vcmp.eq.s32.totalorder %v1507_v1, 1 }
 0x73b   :  { %v1230_v11 = vpop.f32.mrb[12].mxu0  ;;  %v1301_v16 = vpop.f32.mrb[12].mxu1 }
 0x73c   :  { %v1305_v17 = vadd.f32 %v1230_v11, %v1161_v10  ;;  %v1232_v22 = vpop.f32.mrb[13].mxu0  ;;  %v1933_v24 = vpop.f32.mrb[13].mxu1  ;;  %v1319_v45 = vadd.f32 %v2774_v40, %v1301_v16  ;;  %v984_v11 = vsel %vm983_vm13, %v2949_v60, %v809_v48 }
 0x73d   :  { %v1312_v35 = vadd.f32 %v1232_v22, %v1162_v33  ;;  %v1159_v59 = vsel %vm1158_vm14, %v2992_v49, %v984_v11 }
 0x73e   :  { %v1547_v30 = vmul.f32 -1.442695, %v1305_v17 }
 0x73f   :  { %v1548_v0 = vmul.f32 -1.442695, %v1312_v35 }
 0x740   :  { %2488 = vpow2.f32 %v1547_v30 }
 0x741   :  { %2490 = vpow2.f32 %v1548_v0 }
 0x74a   :  { %v2489_v36 = vpop.eup %2488 }
 0x74b   :  { %v1309_v42 = vadd.f32 1.0, %v2489_v36  ;;  %v2491_v44 = vpop.eup %2490 }
 0x74c   :  { %v1316_v56 = vadd.f32 1.0, %v2491_v44 }
 0x74d   :  { %2492 = vrcp.f32 %v1309_v42 }
 0x757   :  { %v2493_v2 = vpop.eup %2492 }
 0x758   :  { %v1320_v53 = vmul.f32 %v2493_v2, %v1319_v45 }
 0x75a   :  { %v1321_v55 = vadd.f32 %v1320_v53, %v1163_v46 }
 0x75c   :  { %2494 = vtanh.f32 %v1321_v55 }
 0x75d   :  { %2496 = vrcp.f32 %v1316_v56 }
 0x766   :  { %v2495_v62 = vpop.eup %2494 }
 0x767   :  { %v1323_v3 = vsub.f32 %v2992_v49, %v2495_v62  ;;  %v2497_v4 = vpop.eup %2496 }
 0x769   :  { %v1324_v9 = vmul.f32 %v2497_v4, %v1323_v3 }
 0x76b   :  { %v1325_v12 = vadd.f32 %v2495_v62, %v1324_v9 }
 0x76d   :  { %1404 = vmatmul.mubr.f32.vlgmr.msra.gmra.mrb[14].mxu0 %v1325_v12  ;;  %1967 = vmatmul.mubr.f32.vlgmr.msra.gmra.mrb[14].mxu1 %v1325_v12 }
 0x840   :  { %v1405_v20 = vpop.f32.mrb[14].mxu0  ;;  %v1476_v50 = vpop.f32.mrb[14].mxu1 }
 0x841   :  { %v1480_v51 = vadd.f32 %v1405_v20, %v1336_v15  ;;  %v1407_v52 = vpop.f32.mrb[15].mxu0  ;;  %v1968_v54 = vpop.f32.mrb[15].mxu1  ;;  %v1494_v13 = vadd.f32 %v2774_v40, %v1476_v50 }
 0x842   :  { %v1487_v61 = vadd.f32 %v1407_v52, %v1337_v58  ;;  %v1332_v40 = vpop.permute.xlu0 %1331 }
 0x843   :  { %v1550_v57 = vmul.f32 -1.442695, %v1480_v51  ;;  %vm1333_vm15 = vcmp.eq.s32.totalorder %v1332_v40, 1 }
 0x844   :  { %v1551_v63 = vmul.f32 -1.442695, %v1487_v61  ;;  %v1334_v17 = vsel %vm1333_vm15, %v1325_v12, %v1159_v59 }
 0x845   :  { %2498 = vpow2.f32 %v1550_v57 }
 0x846   :  { %2500 = vpow2.f32 %v1551_v63 }
 0x84f   :  { %v2499_v5 = vpop.eup %2498 }
 0x850   :  { %v1484_v7 = vadd.f32 1.0, %v2499_v5  ;;  %v2501_v8 = vpop.eup %2500 }
 0x851   :  { %v1491_v26 = vadd.f32 1.0, %v2501_v8 }
 0x852   :  { %2502 = vrcp.f32 %v1484_v7 }
 0x85c   :  { %v2503_v18 = vpop.eup %2502 }
 0x85d   :  { %v1495_v21 = vmul.f32 %v2503_v18, %v1494_v13 }
 0x85f   :  { %v1496_v25 = vadd.f32 %v1495_v21, %v1338_v19 }
 0x861   :  { %2504 = vtanh.f32 %v1496_v25 }
 0x862   :  { %2506 = vrcp.f32 %v1491_v26 }
 0x86b   :  { %v2505_v34 = vpop.eup %2504 }
 0x86c   :  { %v1498_v39 = vsub.f32 %v1325_v12, %v2505_v34  ;;  %v2507_v41 = vpop.eup %2506 }
 0x86e   :  { %v1499_v10 = vmul.f32 %v2507_v41, %v1498_v39 }
 0x870   :  { %v1500_v16 = vadd.f32 %v2505_v34, %v1499_v10 }
 0x872   :  { %v1509_v43 = vsel %vm1508_vm0, %v1500_v16, %v1334_v17 }
 0x873   :  { %1511 = vst [vmem:[#allocation8] sm:$0xff] %v1509_v43 }
 0x874   :  { %2563 = shalt.err (!%p2560_p6)
}
 0x875   :  { %s2564_s20 = scalar_lea.hbm %s3056_s4, 128 }
 0x876   :  { %p2565_p7 = scmp.ne.s32.totalorder %s3056_s4, %s2564_s20  ;;  %p2568_p8 = scmp.lt.u32.totalorder %s2564_s20, %s3056_s4 }
 0x878   :  { %p2570_p9 = pnand %p2568_p8, %p2565_p7 }
 0x87a   :  { %2573 = shalt.err (!%p2570_p9)
}
 0x87b   :  { %1521 = dma.vmem_to_hbm [thread:$0]  %s1519_s16, 128, %s3056_s4, [#allocation5]  }
 0x87c   :  { %2578 = dma.done.wait [#allocation5], 128  }
 0x87d   :  { %2579 = vsyncadd [#allocation5], 4294967168 }
 0x87e   :  { %1525 = vsyncpa [#allocation4], 1 }
 0x87f   :  { %1526 = vsyncpa [#allocation7], 1 }
 0x880   :  { %1527 = vsyncpa [#allocation5], 1 }

</bundles_post_ra>
